<compile_context>
chip_gen: v7x
topology: tpu7x:2x2x1
jax: 0.10.0
libtpu: 0.0.40
codegen_flags: <defaults>
</compile_context>

<pallas_src>
import jax
import jax.numpy as jnp
import numpy as np
from jax import lax
from jax.experimental import pallas as pl
from jax.experimental.pallas import tpu as pltpu

# ---------------- small, self-consistent config ----------------
B = 2                 # number of graphs in the batch
N = 16                # points (atoms) per graph (dense fixed-size graphs)
CART = 3              # cartesian_dimension
NUM_ATOM_TYPES = 5    # synthetic atom-type vocabulary (num_atom_feats=1 -> type id)
ATOM_EMB = 8          # atom_type_embedding_dims
D = 32                # embedding_depth == graph_node_dims == graph_message_depth == output dim
H = 4                 # num_attention_heads
DH = D // H
L = 2                 # num_graph_convolutions
R = 8                 # num_radial (gaussian radial_function)
CUTOFF = 2.0          # convolution_cutoff (positions in [0,1]^3 -> all pairs connected)
GAMMA = 8.0           # gaussian RBF width
MU = [r * CUTOFF / (R - 1) for r in range(R)]   # RBF centers
F0 = ATOM_EMB + CART  # concat_pos_to_atom_features=True

BN = B * N            # 32: both graphs batched along sublanes
HB = H * BN           # 128: packed head axis == full vreg lane width
RH = R * H            # 32
OUT_PAD = 128         # lane-dense output / bias width

LOG2N = int(np.log2(N))
LOG2BN = int(np.log2(BN))
LOG2DH = int(np.log2(DH))
assert (1 << LOG2N) == N and (1 << LOG2BN) == BN and (1 << LOG2DH) == DH

NW = 1 + 7 * L        # W0 + per layer {Wq, Wk, Wv, WeP, WeS, Wskip, Wfc}
NB = 2 + 2 * L        # b0 + per layer {bskip, bfc} + bout


def _gelu(x):
    # tanh-approximate GELU (activation='gelu').
    # TODO(synk): torch nn.GELU default is erf-exact; tanh approx used for robust Mosaic lowering.
    return 0.5 * x * (1.0 + jnp.tanh(0.7978845608028654 * (x + 0.044715 * x * x * x)))


# ---------------------------- Pallas kernel ----------------------------
def _encoder_kernel(feat_ref, W_ref, b_ref, Wout_ref, out_ref):
    f32 = jnp.float32
    x_feat = feat_ref[...]                    # (BN, D)   [atom emb | pos | zero pad]
    b_all = b_ref[...]                        # (NB, 128) packed biases (zero-padded lanes)
    Wout = Wout_ref[...]                      # (D, 128)  zero-padded output projection

    # ---------------- one-time constants (iota-built, no extra DMAs) ----------------
    ri = lax.broadcasted_iota(jnp.int32, (BN, BN), 0)
    ci = lax.broadcasted_iota(jnp.int32, (BN, BN), 1)
    eye = (ri == ci).astype(f32)

    dcol = lax.broadcasted_iota(jnp.int32, (1, D), 1)
    pos_mask = jnp.logical_and(dcol >= ATOM_EMB, dcol < ATOM_EMB + CART).astype(f32)

    # ---------------- initial node embedding (atom feats + pos -> D) ----------------
    x = _gelu(jnp.dot(x_feat, W_ref[0], preferred_element_type=f32) + b_all[0:1, :D])

    # ---------------- pairwise distances (dense radius graph, both graphs) ----------
    pm = x_feat * pos_mask                                              # pos-only columns
    gram = lax.dot_general(pm, pm, (((1,), (1,)), ((), ())),
                           preferred_element_type=f32)                  # (BN, BN)
    gdiag = gram * eye
    sq_col = jnp.dot(gdiag, jnp.ones((BN, 1), f32), preferred_element_type=f32)  # |pos_i|^2
    sq_row = jnp.dot(jnp.ones((1, BN), f32), gdiag, preferred_element_type=f32)  # |pos_j|^2
    d2 = jnp.maximum(sq_col + sq_row - 2.0 * gram, 0.0)
    dist = jnp.sqrt(d2 + 1e-12)                                         # (BN, BN)

    # head-packed (lane axis = H*BN = 128) distance / adjacency slabs
    dist_t = jnp.concatenate([dist] * H, axis=1)                        # (BN, HB)
    rI = lax.broadcasted_iota(jnp.int32, (BN, HB), 0)
    cJ = jnp.bitwise_and(lax.broadcasted_iota(jnp.int32, (BN, HB), 1), BN - 1)
    adj_t = jnp.logical_and(
        jnp.logical_and(dist_t < CUTOFF, rI != cJ),                     # radius graph, no self loops
        jnp.right_shift(rI, LOG2N) == jnp.right_shift(cJ, LOG2N))       # block-diagonal graph mask
    # TODO(synk): max_num_neighbors truncation not modeled (dense cutoff graph).

    # gaussian radial basis, computed once on the packed slab, reused by all layers
    rbf_t = [jnp.exp(-GAMMA * (dist_t - MU[r]) ** 2) for r in range(R)]

    # head-packing selector / mask matrices (built once)
    rD = lax.broadcasted_iota(jnp.int32, (D, HB), 0)
    cD = lax.broadcasted_iota(jnp.int32, (D, HB), 1)
    HRM = (jnp.right_shift(rD, LOG2DH) == jnp.right_shift(cD, LOG2BN)).astype(f32)   # (D, HB)
    rV = lax.broadcasted_iota(jnp.int32, (HB, D), 0)
    cV = lax.broadcasted_iota(jnp.int32, (HB, D), 1)
    VRM = (jnp.right_shift(rV, LOG2BN) == jnp.right_shift(cV, LOG2DH)).astype(f32)   # (HB, D)
    rS = lax.broadcasted_iota(jnp.int32, (H, HB), 0)
    cS = lax.broadcasted_iota(jnp.int32, (H, HB), 1)
    S = (rS == jnp.right_shift(cS, LOG2BN)).astype(f32)                              # (H, HB)
    rT = lax.broadcasted_iota(jnp.int32, (HB, H), 0)
    cT = lax.broadcasted_iota(jnp.int32, (HB, H), 1)
    ST = (jnp.right_shift(rT, LOG2BN) == cT).astype(f32)                             # (HB, H)

    inv_sqrt_dh = f32(1.0 / (DH ** 0.5))
    neg_big = f32(-1e9)

    # ---------------- L TransformerConv blocks (heads packed into lanes) -------------
    for l in range(L):
        wb = 1 + 7 * l
        Wq, Wk, Wv = W_ref[wb], W_ref[wb + 1], W_ref[wb + 2]
        WeP, WeS = W_ref[wb + 3], W_ref[wb + 4]          # (D, RH) and (RH, D), head-masked
        Wskip, Wfc = W_ref[wb + 5], W_ref[wb + 6]
        bskip = b_all[1 + 2 * l:2 + 2 * l, :D]
        bfc = b_all[2 + 2 * l:3 + 2 * l, :D]

        q = jnp.dot(x, Wq, preferred_element_type=f32)               # (BN, D)
        k = jnp.dot(x, Wk, preferred_element_type=f32)
        v = jnp.dot(x, Wv, preferred_element_type=f32)

        # all-head q.k in a single MXU call: scores (BN, H*BN) = (32, 128)
        kT = jnp.transpose(k)                                        # (D, BN)
        k_pack = jnp.concatenate([kT] * H, axis=1) * HRM             # (D, HB)
        scores = jnp.dot(q, k_pack, preferred_element_type=f32)

        # edge (RBF) attention term: Mk[:, r*H+h] = q_h . We[r]
        Mk = jnp.dot(q, WeP, preferred_element_type=f32)             # (BN, RH)
        for r in range(R):
            mk_r = Mk[:, r * H:(r + 1) * H]                          # (BN, H)
            scores = scores + rbf_t[r] * jnp.dot(mk_r, S, preferred_element_type=f32)

        scores = scores * inv_sqrt_dh
        scores = jnp.where(adj_t, scores, neg_big)

        # per-head softmax on the packed slab (row-global max is constant per row -> valid)
        m = jnp.max(scores, axis=1, keepdims=True)
        e = jnp.exp(scores - m)
        denom = jnp.dot(e, ST, preferred_element_type=f32)           # (BN, H) per-head sums via MXU
        inv = pl.reciprocal(denom, approx=True)                      # EUP reciprocal
        alpha = e * jnp.dot(inv, S, preferred_element_type=f32)      # (BN, HB)

        # message: all heads with one (32,128)@(128,32) MXU call
        v_pack = jnp.concatenate([v] * H, axis=0) * VRM              # (HB, D)
        msg = jnp.dot(alpha, v_pack, preferred_element_type=f32)     # (BN, D)

        # edge-value term: P[:, r*H+h] = sum_j alpha_h * rbf_r, then one matmul
        pcols = [jnp.dot(alpha * rbf_t[r], ST, preferred_element_type=f32) for r in range(R)]
        P = jnp.concatenate(pcols, axis=1)                           # (BN, RH)
        msg = msg + jnp.dot(P, WeS, preferred_element_type=f32)

        conv = msg + jnp.dot(x, Wskip, preferred_element_type=f32) + bskip
        x = x + _gelu(conv)                                          # residual graph conv
        x = x + _gelu(jnp.dot(x, Wfc, preferred_element_type=f32) + bfc)   # nodewise FC, residual
        # TODO(synk): graph_node_norm / graph_node_dropout / graph_message_dropout omitted
        #             (dropout is identity in eval; norm not modeled).

    # ---------------- 'sum' graph pooling + output projection (lane-dense store) -----
    rP = lax.broadcasted_iota(jnp.int32, (B, BN), 0)
    cP = lax.broadcasted_iota(jnp.int32, (B, BN), 1)
    Gp = (rP == jnp.right_shift(cP, LOG2N)).astype(f32)              # (B, BN) per-graph selector
    g = jnp.dot(Gp, x, preferred_element_type=f32)                   # (B, D) sum pool via MXU
    out_ref[...] = (jnp.dot(g, Wout, preferred_element_type=f32)
                    + b_all[1 + 2 * L:2 + 2 * L, :])                 # (B, 128)


# --------------------- weight packing (host/XLA side, outside kernel) ---------------------
def _pack_params(params):
    f32 = jnp.float32
    W0_pad = jnp.zeros((D, D), f32).at[:F0, :].set(params["W0"])
    head_of_d = jnp.arange(D) // DH                      # head index of feature lane d
    head_of_rh = jnp.arange(RH) % H                      # row r*H + h  -> h
    hmask = (head_of_rh[:, None] == head_of_d[None, :]).astype(f32)   # (RH, D)

    mats = [W0_pad]
    for l in range(L):
        WeS = jnp.repeat(params["We"][l], H, axis=0) * hmask   # (RH, D): row r*H+h = We[r]*mask_h
        WeP = WeS.T                                            # (D, RH): col r*H+h
        mats += [params["Wq"][l], params["Wk"][l], params["Wv"][l],
                 WeP, WeS, params["Wskip"][l], params["Wfc"][l]]
    W_all = jnp.stack(mats)                                    # (NW, D, D)

    def _pad_row(v):
        return jnp.pad(jnp.reshape(v, (-1,)), (0, OUT_PAD - D))
    rows = [_pad_row(params["b0"])]
    for l in range(L):
        rows += [_pad_row(params["bskip"][l]), _pad_row(params["bfc"][l])]
    rows.append(_pad_row(params["bout"]))
    b_all = jnp.stack(rows)                                    # (NB, 128)

    Wout_pad = jnp.pad(params["Wout"], ((0, 0), (0, OUT_PAD - D)))   # (D, 128)
    return W_all, b_all, Wout_pad


@jax.jit
def point_encoder_forward(atom_types, pos, params):
    # Glue in plain JAX: atom-type embedding lookup + concat of cartesian positions,
    # flattened to (B*N, D) with zero lane-padding (positions ride inside the feature slab).
    feat = jnp.concatenate(
        [params["emb"][atom_types], pos.astype(jnp.float32)], axis=-1)   # (B, N, F0)
    feat_pad = jnp.pad(feat.reshape(B * N, F0), ((0, 0), (0, D - F0)))   # (BN, D)
    W_all, b_all, Wout_pad = _pack_params(params)

    vmem = pl.BlockSpec(memory_space=pltpu.MemorySpace.VMEM)
    out_pad = pl.pallas_call(
        _encoder_kernel,
        out_shape=jax.ShapeDtypeStruct((B, OUT_PAD), jnp.float32),
        in_specs=[vmem, vmem, vmem, vmem],
        out_specs=vmem,
    )(feat_pad, W_all, b_all, Wout_pad)
    return out_pad[:, :D]


# -------------------------- pure-JAX reference (per graph / per head) --------------------------
def _ref_graph_forward(feat, pos, p):
    """Independent per-graph, per-head reference (PyG TransformerConv semantics)."""
    f32 = jnp.float32
    x = _gelu(jnp.dot(feat, p["W0"], preferred_element_type=f32) + p["b0"])          # (N, D)

    sq = jnp.sum(pos * pos, axis=1, keepdims=True)
    gram = lax.dot_general(pos, pos, (((1,), (1,)), ((), ())), preferred_element_type=f32)
    d2 = jnp.maximum(sq + jnp.transpose(sq) - 2.0 * gram, 0.0)
    dist = jnp.sqrt(d2 + 1e-12)

    row = lax.broadcasted_iota(jnp.int32, (N, N), 0)
    col = lax.broadcasted_iota(jnp.int32, (N, N), 1)
    adj = jnp.logical_and(dist < CUTOFF, row != col)
    neg_big = f32(-1e9)
    rbf = [jnp.exp(-GAMMA * (dist - MU[r]) ** 2) for r in range(R)]

    cid = lax.broadcasted_iota(jnp.int32, (1, D), 1)
    head_mask = [jnp.logical_and(cid >= h * DH, cid < (h + 1) * DH).astype(f32) for h in range(H)]
    inv_sqrt_dh = f32(1.0 / (DH ** 0.5))

    for l in range(L):
        Wq, Wk, Wv = p["Wq"][l], p["Wk"][l], p["Wv"][l]
        We, Wskip, bskip = p["We"][l], p["Wskip"][l], p["bskip"][l]

        q = jnp.dot(x, Wq, preferred_element_type=f32)
        k = jnp.dot(x, Wk, preferred_element_type=f32)
        v = jnp.dot(x, Wv, preferred_element_type=f32)

        msg = jnp.zeros((N, D), f32)
        for h in range(H):
            mh = head_mask[h]
            qh, kh, vh = q * mh, k * mh, v * mh
            Weh = We * mh

            base = lax.dot_general(qh, kh, (((1,), (1,)), ((), ())), preferred_element_type=f32)
            Mk = lax.dot_general(qh, Weh, (((1,), (1,)), ((), ())), preferred_element_type=f32)
            escore = jnp.zeros((N, N), f32)
            for r in range(R):
                escore = escore + rbf[r] * Mk[:, r:r + 1]
            scores = (base + escore) * inv_sqrt_dh
            scores = jnp.where(adj, scores, neg_big)
            scores = scores - jnp.max(scores, axis=1, keepdims=True)
            e = jnp.exp(scores)
            alpha = e / jnp.sum(e, axis=1, keepdims=True)

            out_h = jnp.dot(alpha, vh, preferred_element_type=f32)
            for r in range(R):
                ar = jnp.sum(alpha * rbf[r], axis=1, keepdims=True)
                out_h = out_h + ar * Weh[r:r + 1, :]
            msg = msg + out_h

        conv = msg + jnp.dot(x, Wskip, preferred_element_type=f32) + bskip
        x = x + _gelu(conv)
        x = x + _gelu(jnp.dot(x, p["Wfc"][l], preferred_element_type=f32) + p["bfc"][l])

    g = jnp.sum(x, axis=0, keepdims=True)
    out = jnp.dot(g, p["Wout"], preferred_element_type=f32) + p["bout"]
    return out


def ref_forward(atom_types, pos, params):
    feat = jnp.concatenate([params["emb"][atom_types], pos.astype(jnp.float32)], axis=-1)
    outs = [_ref_graph_forward(feat[b], pos[b], params) for b in range(B)]
    return jnp.concatenate(outs, axis=0)


# ------------------------------ parameters ------------------------------
def init_params(key):
    ks = jax.random.split(key, 10)

    def nrm(k, shape, fan_in):
        return (jax.random.normal(k, shape, jnp.float32) / jnp.sqrt(fan_in)).astype(jnp.float32)

    return {
        "emb": nrm(ks[0], (NUM_ATOM_TYPES, ATOM_EMB), 1.0),
        "W0": nrm(ks[1], (F0, D), F0),
        "b0": jnp.full((1, D), 0.01, jnp.float32),
        "Wq": nrm(ks[2], (L, D, D), D),
        "Wk": nrm(ks[3], (L, D, D), D),
        "Wv": nrm(ks[4], (L, D, D), D),
        "We": nrm(ks[5], (L, R, D), R),
        "Wskip": nrm(ks[6], (L, D, D), D),
        "bskip": jnp.full((L, 1, D), 0.01, jnp.float32),
        "Wfc": nrm(ks[7], (L, D, D), D),
        "bfc": jnp.full((L, 1, D), 0.01, jnp.float32),
        "Wout": nrm(ks[8], (D, D), D),
        "bout": jnp.full((1, D), 0.0, jnp.float32),
    }


if __name__ == "__main__":
    key = jax.random.PRNGKey(0)
    kp, kt, kx = jax.random.split(key, 3)
    params = init_params(kp)
    atom_types = jax.random.randint(kt, (B, N), 0, NUM_ATOM_TYPES)            # (2, 16) int
    pos = jax.random.uniform(kx, (B, N, CART), jnp.float32)                   # (2, 16, 3)

    out = point_encoder_forward(atom_types, pos, params)
    out = jax.block_until_ready(out)

    ref = ref_forward(atom_types, pos, params)
    assert out.shape == (B, D)
    assert bool(jnp.all(jnp.isfinite(out)))
    # approx-reciprocal softmax in the kernel -> slightly looser tolerance than exact ref
    np.testing.assert_allclose(np.asarray(out), np.asarray(ref), rtol=5e-3, atol=5e-3)
    print("KERNEL_OK")
</pallas_src>

<mosaic_0001>
module attributes {stable_mosaic.version = 11 : i64} {
  func.func @_encoder_kernel(%arg0: memref<32x32xf32, #tpu.memory_space<vmem>>, %arg1: memref<15x32x32xf32, #tpu.memory_space<vmem>>, %arg2: memref<6x128xf32, #tpu.memory_space<vmem>>, %arg3: memref<32x128xf32, #tpu.memory_space<vmem>>, %arg4: memref<2x128xf32, #tpu.memory_space<vmem>>) attributes {dimension_semantics = [], scalar_prefetch = 0 : i64, scratch_operands = 0 : i64, tpu.core_type = #tpu.core_type<tc>} {
    %c0 = arith.constant 0 : index
    %c0_0 = arith.constant 0 : index
    %0 = vector.load %arg0[%c0, %c0_0] : memref<32x32xf32, #tpu.memory_space<vmem>>, vector<32x32xf32>
    %c0_1 = arith.constant 0 : index
    %c0_2 = arith.constant 0 : index
    %1 = vector.load %arg2[%c0_1, %c0_2] : memref<6x128xf32, #tpu.memory_space<vmem>>, vector<6x128xf32>
    %c0_3 = arith.constant 0 : index
    %c0_4 = arith.constant 0 : index
    %2 = vector.load %arg3[%c0_3, %c0_4] : memref<32x128xf32, #tpu.memory_space<vmem>>, vector<32x128xf32>
    %3 = tpu.iota {dimensions = array<i32: 0>} : vector<32x32xi32>
    %4 = tpu.iota {dimensions = array<i32: 1>} : vector<32x32xi32>
    %5 = arith.cmpi eq, %3, %4 : vector<32x32xi32>
    %6 = arith.extui %5 : vector<32x32xi1> to vector<32x32xi32>
    %7 = arith.sitofp %6 : vector<32x32xi32> to vector<32x32xf32>
    %8 = tpu.iota {dimensions = array<i32: 1>} : vector<1x32xi32>
    %c8_i32 = arith.constant 8 : i32
    %9 = vector.broadcast %c8_i32 : i32 to vector<1x32xi32>
    %10 = arith.cmpi sge, %8, %9 : vector<1x32xi32>
    %c11_i32 = arith.constant 11 : i32
    %11 = vector.broadcast %c11_i32 : i32 to vector<1x32xi32>
    %12 = arith.cmpi slt, %8, %11 : vector<1x32xi32>
    %13 = arith.andi %10, %12 : vector<1x32xi1>
    %14 = arith.extui %13 : vector<1x32xi1> to vector<1x32xi32>
    %15 = arith.sitofp %14 : vector<1x32xi32> to vector<1x32xf32>
    %c0_5 = arith.constant 0 : index
    %c0_6 = arith.constant 0 : index
    %c0_7 = arith.constant 0 : index
    %16 = vector.load %arg1[%c0_5, %c0_6, %c0_7] : memref<15x32x32xf32, #tpu.memory_space<vmem>>, vector<1x32x32xf32>
    %17 = vector.shape_cast %16 : vector<1x32x32xf32> to vector<32x32xf32>
    %cst = arith.constant dense<0.000000e+00> : vector<32x32xf32>
    %18 = tpu.matmul %0, %17, %cst {dimension_numbers = #tpu.dot_dimension_numbers<[1], [0], [0], [1], [0, 0, 1, 1], [], []>} : vector<32x32xf32>, vector<32x32xf32>, vector<32x32xf32> -> vector<32x32xf32>
    %19 = vector.extract_strided_slice %1 {offsets = [0, 0], sizes = [1, 32], strides = [1, 1]} : vector<6x128xf32> to vector<1x32xf32>
    %20 = vector.broadcast %19 : vector<1x32xf32> to vector<32x32xf32>
    %21 = arith.addf %18, %20 : vector<32x32xf32>
    %cst_8 = arith.constant 5.000000e-01 : f32
    %22 = vector.broadcast %cst_8 : f32 to vector<32x32xf32>
    %23 = arith.mulf %22, %21 : vector<32x32xf32>
    %cst_9 = arith.constant 4.471500e-02 : f32
    %24 = vector.broadcast %cst_9 : f32 to vector<32x32xf32>
    %25 = arith.mulf %24, %21 : vector<32x32xf32>
    %26 = arith.mulf %25, %21 : vector<32x32xf32>
    %27 = arith.mulf %26, %21 : vector<32x32xf32>
    %28 = arith.addf %21, %27 : vector<32x32xf32>
    %cst_10 = arith.constant 0.797884583 : f32
    %29 = vector.broadcast %cst_10 : f32 to vector<32x32xf32>
    %30 = arith.mulf %29, %28 : vector<32x32xf32>
    %31 = math.tanh %30 : vector<32x32xf32>
    %cst_11 = arith.constant 1.000000e+00 : f32
    %32 = vector.broadcast %cst_11 : f32 to vector<32x32xf32>
    %33 = arith.addf %32, %31 : vector<32x32xf32>
    %34 = arith.mulf %23, %33 : vector<32x32xf32>
    %35 = vector.broadcast %15 : vector<1x32xf32> to vector<32x32xf32>
    %36 = arith.mulf %0, %35 : vector<32x32xf32>
    %cst_12 = arith.constant dense<0.000000e+00> : vector<32x32xf32>
    %37 = tpu.matmul %36, %36, %cst_12 {dimension_numbers = #tpu.dot_dimension_numbers<[1], [1], [0], [0], [0, 0, 1, 0], [], []>} : vector<32x32xf32>, vector<32x32xf32>, vector<32x32xf32> -> vector<32x32xf32>
    %38 = arith.mulf %37, %7 : vector<32x32xf32>
    %cst_13 = arith.constant 1.000000e+00 : f32
    %39 = vector.broadcast %cst_13 : f32 to vector<32x1xf32>
    %cst_14 = arith.constant dense<0.000000e+00> : vector<32x1xf32>
    %40 = tpu.matmul %38, %39, %cst_14 {dimension_numbers = #tpu.dot_dimension_numbers<[1], [0], [0], [1], [0, 0, 1, 1], [], []>} : vector<32x32xf32>, vector<32x1xf32>, vector<32x1xf32> -> vector<32x1xf32>
    %cst_15 = arith.constant 1.000000e+00 : f32
    %41 = vector.broadcast %cst_15 : f32 to vector<1x32xf32>
    %cst_16 = arith.constant dense<0.000000e+00> : vector<1x32xf32>
    %42 = tpu.matmul %41, %38, %cst_16 {dimension_numbers = #tpu.dot_dimension_numbers<[1], [0], [0], [1], [0, 0, 1, 1], [], []>} : vector<1x32xf32>, vector<32x32xf32>, vector<1x32xf32> -> vector<1x32xf32>
    %43 = vector.broadcast %40 : vector<32x1xf32> to vector<32x32xf32>
    %44 = vector.broadcast %42 : vector<1x32xf32> to vector<32x32xf32>
    %45 = arith.addf %43, %44 : vector<32x32xf32>
    %cst_17 = arith.constant 2.000000e+00 : f32
    %46 = vector.broadcast %cst_17 : f32 to vector<32x32xf32>
    %47 = arith.mulf %46, %37 : vector<32x32xf32>
    %48 = arith.subf %45, %47 : vector<32x32xf32>
    %cst_18 = arith.constant 0.000000e+00 : f32
    %49 = vector.broadcast %cst_18 : f32 to vector<32x32xf32>
    %50 = arith.maximumf %48, %49 : vector<32x32xf32>
    %cst_19 = arith.constant 9.99999996E-13 : f32
    %51 = vector.broadcast %cst_19 : f32 to vector<32x32xf32>
    %52 = arith.addf %50, %51 : vector<32x32xf32>
    %53 = math.sqrt %52 : vector<32x32xf32>
    %54 = tpu.concatenate %53, %53, %53, %53 in 1 : vector<32x32xf32>, vector<32x32xf32>, vector<32x32xf32>, vector<32x32xf32> -> vector<32x128xf32>
    %55 = tpu.iota {dimensions = array<i32: 0>} : vector<32x128xi32>
    %56 = tpu.iota {dimensions = array<i32: 1>} : vector<32x128xi32>
    %c31_i32 = arith.constant 31 : i32
    %57 = vector.broadcast %c31_i32 : i32 to vector<32x128xi32>
    %58 = arith.andi %56, %57 : vector<32x128xi32>
    %cst_20 = arith.constant 2.000000e+00 : f32
    %59 = vector.broadcast %cst_20 : f32 to vector<32x128xf32>
    %60 = arith.cmpf olt, %54, %59 : vector<32x128xf32>
    %61 = arith.cmpi ne, %55, %58 : vector<32x128xi32>
    %62 = arith.andi %60, %61 : vector<32x128xi1>
    %c4_i32 = arith.constant 4 : i32
    %63 = vector.broadcast %c4_i32 : i32 to vector<32x128xi32>
    %64 = arith.shrsi %55, %63 : vector<32x128xi32>
    %c4_i32_21 = arith.constant 4 : i32
    %65 = vector.broadcast %c4_i32_21 : i32 to vector<32x128xi32>
    %66 = arith.shrsi %58, %65 : vector<32x128xi32>
    %67 = arith.cmpi eq, %64, %66 : vector<32x128xi32>
    %68 = arith.andi %62, %67 : vector<32x128xi1>
    %cst_22 = arith.constant 0.000000e+00 : f32
    %69 = vector.broadcast %cst_22 : f32 to vector<32x128xf32>
    %70 = arith.subf %54, %69 : vector<32x128xf32>
    %71 = arith.mulf %70, %70 : vector<32x128xf32>
    %cst_23 = arith.constant -8.000000e+00 : f32
    %72 = vector.broadcast %cst_23 : f32 to vector<32x128xf32>
    %73 = arith.mulf %72, %71 : vector<32x128xf32>
    %74 = math.exp %73 : vector<32x128xf32>
    %cst_24 = arith.constant 0.285714298 : f32
    %75 = vector.broadcast %cst_24 : f32 to vector<32x128xf32>
    %76 = arith.subf %54, %75 : vector<32x128xf32>
    %77 = arith.mulf %76, %76 : vector<32x128xf32>
    %cst_25 = arith.constant -8.000000e+00 : f32
    %78 = vector.broadcast %cst_25 : f32 to vector<32x128xf32>
    %79 = arith.mulf %78, %77 : vector<32x128xf32>
    %80 = math.exp %79 : vector<32x128xf32>
    %cst_26 = arith.constant 0.571428597 : f32
    %81 = vector.broadcast %cst_26 : f32 to vector<32x128xf32>
    %82 = arith.subf %54, %81 : vector<32x128xf32>
    %83 = arith.mulf %82, %82 : vector<32x128xf32>
    %cst_27 = arith.constant -8.000000e+00 : f32
    %84 = vector.broadcast %cst_27 : f32 to vector<32x128xf32>
    %85 = arith.mulf %84, %83 : vector<32x128xf32>
    %86 = math.exp %85 : vector<32x128xf32>
    %cst_28 = arith.constant 0.857142865 : f32
    %87 = vector.broadcast %cst_28 : f32 to vector<32x128xf32>
    %88 = arith.subf %54, %87 : vector<32x128xf32>
    %89 = arith.mulf %88, %88 : vector<32x128xf32>
    %cst_29 = arith.constant -8.000000e+00 : f32
    %90 = vector.broadcast %cst_29 : f32 to vector<32x128xf32>
    %91 = arith.mulf %90, %89 : vector<32x128xf32>
    %92 = math.exp %91 : vector<32x128xf32>
    %cst_30 = arith.constant 1.14285719 : f32
    %93 = vector.broadcast %cst_30 : f32 to vector<32x128xf32>
    %94 = arith.subf %54, %93 : vector<32x128xf32>
    %95 = arith.mulf %94, %94 : vector<32x128xf32>
    %cst_31 = arith.constant -8.000000e+00 : f32
    %96 = vector.broadcast %cst_31 : f32 to vector<32x128xf32>
    %97 = arith.mulf %96, %95 : vector<32x128xf32>
    %98 = math.exp %97 : vector<32x128xf32>
    %cst_32 = arith.constant 1.42857146 : f32
    %99 = vector.broadcast %cst_32 : f32 to vector<32x128xf32>
    %100 = arith.subf %54, %99 : vector<32x128xf32>
    %101 = arith.mulf %100, %100 : vector<32x128xf32>
    %cst_33 = arith.constant -8.000000e+00 : f32
    %102 = vector.broadcast %cst_33 : f32 to vector<32x128xf32>
    %103 = arith.mulf %102, %101 : vector<32x128xf32>
    %104 = math.exp %103 : vector<32x128xf32>
    %cst_34 = arith.constant 1.71428573 : f32
    %105 = vector.broadcast %cst_34 : f32 to vector<32x128xf32>
    %106 = arith.subf %54, %105 : vector<32x128xf32>
    %107 = arith.mulf %106, %106 : vector<32x128xf32>
    %cst_35 = arith.constant -8.000000e+00 : f32
    %108 = vector.broadcast %cst_35 : f32 to vector<32x128xf32>
    %109 = arith.mulf %108, %107 : vector<32x128xf32>
    %110 = math.exp %109 : vector<32x128xf32>
    %cst_36 = arith.constant 2.000000e+00 : f32
    %111 = vector.broadcast %cst_36 : f32 to vector<32x128xf32>
    %112 = arith.subf %54, %111 : vector<32x128xf32>
    %113 = arith.mulf %112, %112 : vector<32x128xf32>
    %cst_37 = arith.constant -8.000000e+00 : f32
    %114 = vector.broadcast %cst_37 : f32 to vector<32x128xf32>
    %115 = arith.mulf %114, %113 : vector<32x128xf32>
    %116 = math.exp %115 : vector<32x128xf32>
    %117 = tpu.iota {dimensions = array<i32: 0>} : vector<32x128xi32>
    %118 = tpu.iota {dimensions = array<i32: 1>} : vector<32x128xi32>
    %c3_i32 = arith.constant 3 : i32
    %119 = vector.broadcast %c3_i32 : i32 to vector<32x128xi32>
    %120 = arith.shrsi %117, %119 : vector<32x128xi32>
    %c5_i32 = arith.constant 5 : i32
    %121 = vector.broadcast %c5_i32 : i32 to vector<32x128xi32>
    %122 = arith.shrsi %118, %121 : vector<32x128xi32>
    %123 = arith.cmpi eq, %120, %122 : vector<32x128xi32>
    %124 = arith.extui %123 : vector<32x128xi1> to vector<32x128xi32>
    %125 = arith.sitofp %124 : vector<32x128xi32> to vector<32x128xf32>
    %126 = tpu.iota {dimensions = array<i32: 0>} : vector<128x32xi32>
    %127 = tpu.iota {dimensions = array<i32: 1>} : vector<128x32xi32>
    %c5_i32_38 = arith.constant 5 : i32
    %128 = vector.broadcast %c5_i32_38 : i32 to vector<128x32xi32>
    %129 = arith.shrsi %126, %128 : vector<128x32xi32>
    %c3_i32_39 = arith.constant 3 : i32
    %130 = vector.broadcast %c3_i32_39 : i32 to vector<128x32xi32>
    %131 = arith.shrsi %127, %130 : vector<128x32xi32>
    %132 = arith.cmpi eq, %129, %131 : vector<128x32xi32>
    %133 = arith.extui %132 : vector<128x32xi1> to vector<128x32xi32>
    %134 = arith.sitofp %133 : vector<128x32xi32> to vector<128x32xf32>
    %135 = tpu.iota {dimensions = array<i32: 0>} : vector<4x128xi32>
    %136 = tpu.iota {dimensions = array<i32: 1>} : vector<4x128xi32>
    %c5_i32_40 = arith.constant 5 : i32
    %137 = vector.broadcast %c5_i32_40 : i32 to vector<4x128xi32>
    %138 = arith.shrsi %136, %137 : vector<4x128xi32>
    %139 = arith.cmpi eq, %135, %138 : vector<4x128xi32>
    %140 = arith.extui %139 : vector<4x128xi1> to vector<4x128xi32>
    %141 = arith.sitofp %140 : vector<4x128xi32> to vector<4x128xf32>
    %142 = tpu.iota {dimensions = array<i32: 0>} : vector<128x4xi32>
    %143 = tpu.iota {dimensions = array<i32: 1>} : vector<128x4xi32>
    %c5_i32_41 = arith.constant 5 : i32
    %144 = vector.broadcast %c5_i32_41 : i32 to vector<128x4xi32>
    %145 = arith.shrsi %142, %144 : vector<128x4xi32>
    %146 = arith.cmpi eq, %145, %143 : vector<128x4xi32>
    %147 = arith.extui %146 : vector<128x4xi1> to vector<128x4xi32>
    %148 = arith.sitofp %147 : vector<128x4xi32> to vector<128x4xf32>
    %c1 = arith.constant 1 : index
    %c0_42 = arith.constant 0 : index
    %c0_43 = arith.constant 0 : index
    %149 = vector.load %arg1[%c1, %c0_42, %c0_43] : memref<15x32x32xf32, #tpu.memory_space<vmem>>, vector<1x32x32xf32>
    %150 = vector.shape_cast %149 : vector<1x32x32xf32> to vector<32x32xf32>
    %c2 = arith.constant 2 : index
    %c0_44 = arith.constant 0 : index
    %c0_45 = arith.constant 0 : index
    %151 = vector.load %arg1[%c2, %c0_44, %c0_45] : memref<15x32x32xf32, #tpu.memory_space<vmem>>, vector<1x32x32xf32>
    %152 = vector.shape_cast %151 : vector<1x32x32xf32> to vector<32x32xf32>
    %c3 = arith.constant 3 : index
    %c0_46 = arith.constant 0 : index
    %c0_47 = arith.constant 0 : index
    %153 = vector.load %arg1[%c3, %c0_46, %c0_47] : memref<15x32x32xf32, #tpu.memory_space<vmem>>, vector<1x32x32xf32>
    %154 = vector.shape_cast %153 : vector<1x32x32xf32> to vector<32x32xf32>
    %c4 = arith.constant 4 : index
    %c0_48 = arith.constant 0 : index
    %c0_49 = arith.constant 0 : index
    %155 = vector.load %arg1[%c4, %c0_48, %c0_49] : memref<15x32x32xf32, #tpu.memory_space<vmem>>, vector<1x32x32xf32>
    %156 = vector.shape_cast %155 : vector<1x32x32xf32> to vector<32x32xf32>
    %c5 = arith.constant 5 : index
    %c0_50 = arith.constant 0 : index
    %c0_51 = arith.constant 0 : index
    %157 = vector.load %arg1[%c5, %c0_50, %c0_51] : memref<15x32x32xf32, #tpu.memory_space<vmem>>, vector<1x32x32xf32>
    %158 = vector.shape_cast %157 : vector<1x32x32xf32> to vector<32x32xf32>
    %c6 = arith.constant 6 : index
    %c0_52 = arith.constant 0 : index
    %c0_53 = arith.constant 0 : index
    %159 = vector.load %arg1[%c6, %c0_52, %c0_53] : memref<15x32x32xf32, #tpu.memory_space<vmem>>, vector<1x32x32xf32>
    %160 = vector.shape_cast %159 : vector<1x32x32xf32> to vector<32x32xf32>
    %c7 = arith.constant 7 : index
    %c0_54 = arith.constant 0 : index
    %c0_55 = arith.constant 0 : index
    %161 = vector.load %arg1[%c7, %c0_54, %c0_55] : memref<15x32x32xf32, #tpu.memory_space<vmem>>, vector<1x32x32xf32>
    %162 = vector.shape_cast %161 : vector<1x32x32xf32> to vector<32x32xf32>
    %163 = vector.extract_strided_slice %1 {offsets = [1, 0], sizes = [1, 32], strides = [1, 1]} : vector<6x128xf32> to vector<1x32xf32>
    %164 = vector.extract_strided_slice %1 {offsets = [2, 0], sizes = [1, 32], strides = [1, 1]} : vector<6x128xf32> to vector<1x32xf32>
    %cst_56 = arith.constant dense<0.000000e+00> : vector<32x32xf32>
    %165 = tpu.matmul %34, %150, %cst_56 {dimension_numbers = #tpu.dot_dimension_numbers<[1], [0], [0], [1], [0, 0, 1, 1], [], []>} : vector<32x32xf32>, vector<32x32xf32>, vector<32x32xf32> -> vector<32x32xf32>
    %cst_57 = arith.constant dense<0.000000e+00> : vector<32x32xf32>
    %166 = tpu.matmul %34, %152, %cst_57 {dimension_numbers = #tpu.dot_dimension_numbers<[1], [0], [0], [1], [0, 0, 1, 1], [], []>} : vector<32x32xf32>, vector<32x32xf32>, vector<32x32xf32> -> vector<32x32xf32>
    %cst_58 = arith.constant dense<0.000000e+00> : vector<32x32xf32>
    %167 = tpu.matmul %34, %154, %cst_58 {dimension_numbers = #tpu.dot_dimension_numbers<[1], [0], [0], [1], [0, 0, 1, 1], [], []>} : vector<32x32xf32>, vector<32x32xf32>, vector<32x32xf32> -> vector<32x32xf32>
    %168 = tpu.transpose %166, [1, 0] : vector<32x32xf32> -> vector<32x32xf32>
    %169 = tpu.concatenate %168, %168, %168, %168 in 1 : vector<32x32xf32>, vector<32x32xf32>, vector<32x32xf32>, vector<32x32xf32> -> vector<32x128xf32>
    %170 = arith.mulf %169, %125 : vector<32x128xf32>
    %cst_59 = arith.constant dense<0.000000e+00> : vector<32x128xf32>
    %171 = tpu.matmul %165, %170, %cst_59 {dimension_numbers = #tpu.dot_dimension_numbers<[1], [0], [0], [1], [0, 0, 1, 1], [], []>} : vector<32x32xf32>, vector<32x128xf32>, vector<32x128xf32> -> vector<32x128xf32>
    %cst_60 = arith.constant dense<0.000000e+00> : vector<32x32xf32>
    %172 = tpu.matmul %165, %156, %cst_60 {dimension_numbers = #tpu.dot_dimension_numbers<[1], [0], [0], [1], [0, 0, 1, 1], [], []>} : vector<32x32xf32>, vector<32x32xf32>, vector<32x32xf32> -> vector<32x32xf32>
    %173 = vector.extract_strided_slice %172 {offsets = [0, 0], sizes = [32, 4], strides = [1, 1]} : vector<32x32xf32> to vector<32x4xf32>
    %cst_61 = arith.constant dense<0.000000e+00> : vector<32x128xf32>
    %174 = tpu.matmul %173, %141, %cst_61 {dimension_numbers = #tpu.dot_dimension_numbers<[1], [0], [0], [1], [0, 0, 1, 1], [], []>} : vector<32x4xf32>, vector<4x128xf32>, vector<32x128xf32> -> vector<32x128xf32>
    %175 = arith.mulf %74, %174 : vector<32x128xf32>
    %176 = arith.addf %171, %175 : vector<32x128xf32>
    %177 = vector.extract_strided_slice %172 {offsets = [0, 4], sizes = [32, 4], strides = [1, 1]} : vector<32x32xf32> to vector<32x4xf32>
    %cst_62 = arith.constant dense<0.000000e+00> : vector<32x128xf32>
    %178 = tpu.matmul %177, %141, %cst_62 {dimension_numbers = #tpu.dot_dimension_numbers<[1], [0], [0], [1], [0, 0, 1, 1], [], []>} : vector<32x4xf32>, vector<4x128xf32>, vector<32x128xf32> -> vector<32x128xf32>
    %179 = arith.mulf %80, %178 : vector<32x128xf32>
    %180 = arith.addf %176, %179 : vector<32x128xf32>
    %181 = vector.extract_strided_slice %172 {offsets = [0, 8], sizes = [32, 4], strides = [1, 1]} : vector<32x32xf32> to vector<32x4xf32>
    %cst_63 = arith.constant dense<0.000000e+00> : vector<32x128xf32>
    %182 = tpu.matmul %181, %141, %cst_63 {dimension_numbers = #tpu.dot_dimension_numbers<[1], [0], [0], [1], [0, 0, 1, 1], [], []>} : vector<32x4xf32>, vector<4x128xf32>, vector<32x128xf32> -> vector<32x128xf32>
    %183 = arith.mulf %86, %182 : vector<32x128xf32>
    %184 = arith.addf %180, %183 : vector<32x128xf32>
    %185 = vector.extract_strided_slice %172 {offsets = [0, 12], sizes = [32, 4], strides = [1, 1]} : vector<32x32xf32> to vector<32x4xf32>
    %cst_64 = arith.constant dense<0.000000e+00> : vector<32x128xf32>
    %186 = tpu.matmul %185, %141, %cst_64 {dimension_numbers = #tpu.dot_dimension_numbers<[1], [0], [0], [1], [0, 0, 1, 1], [], []>} : vector<32x4xf32>, vector<4x128xf32>, vector<32x128xf32> -> vector<32x128xf32>
    %187 = arith.mulf %92, %186 : vector<32x128xf32>
    %188 = arith.addf %184, %187 : vector<32x128xf32>
    %189 = vector.extract_strided_slice %172 {offsets = [0, 16], sizes = [32, 4], strides = [1, 1]} : vector<32x32xf32> to vector<32x4xf32>
    %cst_65 = arith.constant dense<0.000000e+00> : vector<32x128xf32>
    %190 = tpu.matmul %189, %141, %cst_65 {dimension_numbers = #tpu.dot_dimension_numbers<[1], [0], [0], [1], [0, 0, 1, 1], [], []>} : vector<32x4xf32>, vector<4x128xf32>, vector<32x128xf32> -> vector<32x128xf32>
    %191 = arith.mulf %98, %190 : vector<32x128xf32>
    %192 = arith.addf %188, %191 : vector<32x128xf32>
    %193 = vector.extract_strided_slice %172 {offsets = [0, 20], sizes = [32, 4], strides = [1, 1]} : vector<32x32xf32> to vector<32x4xf32>
    %cst_66 = arith.constant dense<0.000000e+00> : vector<32x128xf32>
    %194 = tpu.matmul %193, %141, %cst_66 {dimension_numbers = #tpu.dot_dimension_numbers<[1], [0], [0], [1], [0, 0, 1, 1], [], []>} : vector<32x4xf32>, vector<4x128xf32>, vector<32x128xf32> -> vector<32x128xf32>
    %195 = arith.mulf %104, %194 : vector<32x128xf32>
    %196 = arith.addf %192, %195 : vector<32x128xf32>
    %197 = vector.extract_strided_slice %172 {offsets = [0, 24], sizes = [32, 4], strides = [1, 1]} : vector<32x32xf32> to vector<32x4xf32>
    %cst_67 = arith.constant dense<0.000000e+00> : vector<32x128xf32>
    %198 = tpu.matmul %197, %141, %cst_67 {dimension_numbers = #tpu.dot_dimension_numbers<[1], [0], [0], [1], [0, 0, 1, 1], [], []>} : vector<32x4xf32>, vector<4x128xf32>, vector<32x128xf32> -> vector<32x128xf32>
    %199 = arith.mulf %110, %198 : vector<32x128xf32>
    %200 = arith.addf %196, %199 : vector<32x128xf32>
    %201 = vector.extract_strided_slice %172 {offsets = [0, 28], sizes = [32, 4], strides = [1, 1]} : vector<32x32xf32> to vector<32x4xf32>
    %cst_68 = arith.constant dense<0.000000e+00> : vector<32x128xf32>
    %202 = tpu.matmul %201, %141, %cst_68 {dimension_numbers = #tpu.dot_dimension_numbers<[1], [0], [0], [1], [0, 0, 1, 1], [], []>} : vector<32x4xf32>, vector<4x128xf32>, vector<32x128xf32> -> vector<32x128xf32>
    %203 = arith.mulf %116, %202 : vector<32x128xf32>
    %204 = arith.addf %200, %203 : vector<32x128xf32>
    %cst_69 = arith.constant 0.353553385 : f32
    %205 = vector.broadcast %cst_69 : f32 to vector<32x128xf32>
    %206 = arith.mulf %204, %205 : vector<32x128xf32>
    %cst_70 = arith.constant -1.000000e+09 : f32
    %207 = vector.broadcast %cst_70 : f32 to vector<32x128xf32>
    %208 = arith.select %68, %206, %207 : vector<32x128xi1>, vector<32x128xf32>
    %cst_71 = arith.constant dense<0xFF800000> : vector<32xf32>
    %209 = vector.multi_reduction <maximumf>, %208, %cst_71 [1] : vector<32x128xf32> to vector<32xf32>
    %210 = vector.shape_cast %209 : vector<32xf32> to vector<32x1xf32>
    %211 = vector.broadcast %210 : vector<32x1xf32> to vector<32x128xf32>
    %212 = arith.subf %208, %211 : vector<32x128xf32>
    %213 = math.exp %212 : vector<32x128xf32>
    %cst_72 = arith.constant dense<0.000000e+00> : vector<32x4xf32>
    %214 = tpu.matmul %213, %148, %cst_72 {dimension_numbers = #tpu.dot_dimension_numbers<[1], [0], [0], [1], [0, 0, 1, 1], [], []>} : vector<32x128xf32>, vector<128x4xf32>, vector<32x4xf32> -> vector<32x4xf32>
    %215 = tpu.reciprocal %214 {approx = true} : vector<32x4xf32> -> vector<32x4xf32>
    %cst_73 = arith.constant dense<0.000000e+00> : vector<32x128xf32>
    %216 = tpu.matmul %215, %141, %cst_73 {dimension_numbers = #tpu.dot_dimension_numbers<[1], [0], [0], [1], [0, 0, 1, 1], [], []>} : vector<32x4xf32>, vector<4x128xf32>, vector<32x128xf32> -> vector<32x128xf32>
    %217 = arith.mulf %213, %216 : vector<32x128xf32>
    %218 = tpu.concatenate %167, %167, %167, %167 in 0 : vector<32x32xf32>, vector<32x32xf32>, vector<32x32xf32>, vector<32x32xf32> -> vector<128x32xf32>
    %219 = arith.mulf %218, %134 : vector<128x32xf32>
    %cst_74 = arith.constant dense<0.000000e+00> : vector<32x32xf32>
    %220 = tpu.matmul %217, %219, %cst_74 {dimension_numbers = #tpu.dot_dimension_numbers<[1], [0], [0], [1], [0, 0, 1, 1], [], []>} : vector<32x128xf32>, vector<128x32xf32>, vector<32x32xf32> -> vector<32x32xf32>
    %221 = arith.mulf %217, %74 : vector<32x128xf32>
    %cst_75 = arith.constant dense<0.000000e+00> : vector<32x4xf32>
    %222 = tpu.matmul %221, %148, %cst_75 {dimension_numbers = #tpu.dot_dimension_numbers<[1], [0], [0], [1], [0, 0, 1, 1], [], []>} : vector<32x128xf32>, vector<128x4xf32>, vector<32x4xf32> -> vector<32x4xf32>
    %223 = arith.mulf %217, %80 : vector<32x128xf32>
    %cst_76 = arith.constant dense<0.000000e+00> : vector<32x4xf32>
    %224 = tpu.matmul %223, %148, %cst_76 {dimension_numbers = #tpu.dot_dimension_numbers<[1], [0], [0], [1], [0, 0, 1, 1], [], []>} : vector<32x128xf32>, vector<128x4xf32>, vector<32x4xf32> -> vector<32x4xf32>
    %225 = arith.mulf %217, %86 : vector<32x128xf32>
    %cst_77 = arith.constant dense<0.000000e+00> : vector<32x4xf32>
    %226 = tpu.matmul %225, %148, %cst_77 {dimension_numbers = #tpu.dot_dimension_numbers<[1], [0], [0], [1], [0, 0, 1, 1], [], []>} : vector<32x128xf32>, vector<128x4xf32>, vector<32x4xf32> -> vector<32x4xf32>
    %227 = arith.mulf %217, %92 : vector<32x128xf32>
    %cst_78 = arith.constant dense<0.000000e+00> : vector<32x4xf32>
    %228 = tpu.matmul %227, %148, %cst_78 {dimension_numbers = #tpu.dot_dimension_numbers<[1], [0], [0], [1], [0, 0, 1, 1], [], []>} : vector<32x128xf32>, vector<128x4xf32>, vector<32x4xf32> -> vector<32x4xf32>
    %229 = arith.mulf %217, %98 : vector<32x128xf32>
    %cst_79 = arith.constant dense<0.000000e+00> : vector<32x4xf32>
    %230 = tpu.matmul %229, %148, %cst_79 {dimension_numbers = #tpu.dot_dimension_numbers<[1], [0], [0], [1], [0, 0, 1, 1], [], []>} : vector<32x128xf32>, vector<128x4xf32>, vector<32x4xf32> -> vector<32x4xf32>
    %231 = arith.mulf %217, %104 : vector<32x128xf32>
    %cst_80 = arith.constant dense<0.000000e+00> : vector<32x4xf32>
    %232 = tpu.matmul %231, %148, %cst_80 {dimension_numbers = #tpu.dot_dimension_numbers<[1], [0], [0], [1], [0, 0, 1, 1], [], []>} : vector<32x128xf32>, vector<128x4xf32>, vector<32x4xf32> -> vector<32x4xf32>
    %233 = arith.mulf %217, %110 : vector<32x128xf32>
    %cst_81 = arith.constant dense<0.000000e+00> : vector<32x4xf32>
    %234 = tpu.matmul %233, %148, %cst_81 {dimension_numbers = #tpu.dot_dimension_numbers<[1], [0], [0], [1], [0, 0, 1, 1], [], []>} : vector<32x128xf32>, vector<128x4xf32>, vector<32x4xf32> -> vector<32x4xf32>
    %235 = arith.mulf %217, %116 : vector<32x128xf32>
    %cst_82 = arith.constant dense<0.000000e+00> : vector<32x4xf32>
    %236 = tpu.matmul %235, %148, %cst_82 {dimension_numbers = #tpu.dot_dimension_numbers<[1], [0], [0], [1], [0, 0, 1, 1], [], []>} : vector<32x128xf32>, vector<128x4xf32>, vector<32x4xf32> -> vector<32x4xf32>
    %237 = tpu.concatenate %222, %224, %226, %228, %230, %232, %234, %236 in 1 : vector<32x4xf32>, vector<32x4xf32>, vector<32x4xf32>, vector<32x4xf32>, vector<32x4xf32>, vector<32x4xf32>, vector<32x4xf32>, vector<32x4xf32> -> vector<32x32xf32>
    %cst_83 = arith.constant dense<0.000000e+00> : vector<32x32xf32>
    %238 = tpu.matmul %237, %158, %cst_83 {dimension_numbers = #tpu.dot_dimension_numbers<[1], [0], [0], [1], [0, 0, 1, 1], [], []>} : vector<32x32xf32>, vector<32x32xf32>, vector<32x32xf32> -> vector<32x32xf32>
    %239 = arith.addf %220, %238 : vector<32x32xf32>
    %cst_84 = arith.constant dense<0.000000e+00> : vector<32x32xf32>
    %240 = tpu.matmul %34, %160, %cst_84 {dimension_numbers = #tpu.dot_dimension_numbers<[1], [0], [0], [1], [0, 0, 1, 1], [], []>} : vector<32x32xf32>, vector<32x32xf32>, vector<32x32xf32> -> vector<32x32xf32>
    %241 = arith.addf %239, %240 : vector<32x32xf32>
    %242 = vector.broadcast %163 : vector<1x32xf32> to vector<32x32xf32>
    %243 = arith.addf %241, %242 : vector<32x32xf32>
    %cst_85 = arith.constant 5.000000e-01 : f32
    %244 = vector.broadcast %cst_85 : f32 to vector<32x32xf32>
    %245 = arith.mulf %244, %243 : vector<32x32xf32>
    %cst_86 = arith.constant 4.471500e-02 : f32
    %246 = vector.broadcast %cst_86 : f32 to vector<32x32xf32>
    %247 = arith.mulf %246, %243 : vector<32x32xf32>
    %248 = arith.mulf %247, %243 : vector<32x32xf32>
    %249 = arith.mulf %248, %243 : vector<32x32xf32>
    %250 = arith.addf %243, %249 : vector<32x32xf32>
    %cst_87 = arith.constant 0.797884583 : f32
    %251 = vector.broadcast %cst_87 : f32 to vector<32x32xf32>
    %252 = arith.mulf %251, %250 : vector<32x32xf32>
    %253 = math.tanh %252 : vector<32x32xf32>
    %cst_88 = arith.constant 1.000000e+00 : f32
    %254 = vector.broadcast %cst_88 : f32 to vector<32x32xf32>
    %255 = arith.addf %254, %253 : vector<32x32xf32>
    %256 = arith.mulf %245, %255 : vector<32x32xf32>
    %257 = arith.addf %34, %256 : vector<32x32xf32>
    %cst_89 = arith.constant dense<0.000000e+00> : vector<32x32xf32>
    %258 = tpu.matmul %257, %162, %cst_89 {dimension_numbers = #tpu.dot_dimension_numbers<[1], [0], [0], [1], [0, 0, 1, 1], [], []>} : vector<32x32xf32>, vector<32x32xf32>, vector<32x32xf32> -> vector<32x32xf32>
    %259 = vector.broadcast %164 : vector<1x32xf32> to vector<32x32xf32>
    %260 = arith.addf %258, %259 : vector<32x32xf32>
    %cst_90 = arith.constant 5.000000e-01 : f32
    %261 = vector.broadcast %cst_90 : f32 to vector<32x32xf32>
    %262 = arith.mulf %261, %260 : vector<32x32xf32>
    %cst_91 = arith.constant 4.471500e-02 : f32
    %263 = vector.broadcast %cst_91 : f32 to vector<32x32xf32>
    %264 = arith.mulf %263, %260 : vector<32x32xf32>
    %265 = arith.mulf %264, %260 : vector<32x32xf32>
    %266 = arith.mulf %265, %260 : vector<32x32xf32>
    %267 = arith.addf %260, %266 : vector<32x32xf32>
    %cst_92 = arith.constant 0.797884583 : f32
    %268 = vector.broadcast %cst_92 : f32 to vector<32x32xf32>
    %269 = arith.mulf %268, %267 : vector<32x32xf32>
    %270 = math.tanh %269 : vector<32x32xf32>
    %cst_93 = arith.constant 1.000000e+00 : f32
    %271 = vector.broadcast %cst_93 : f32 to vector<32x32xf32>
    %272 = arith.addf %271, %270 : vector<32x32xf32>
    %273 = arith.mulf %262, %272 : vector<32x32xf32>
    %274 = arith.addf %257, %273 : vector<32x32xf32>
    %c8 = arith.constant 8 : index
    %c0_94 = arith.constant 0 : index
    %c0_95 = arith.constant 0 : index
    %275 = vector.load %arg1[%c8, %c0_94, %c0_95] : memref<15x32x32xf32, #tpu.memory_space<vmem>>, vector<1x32x32xf32>
    %276 = vector.shape_cast %275 : vector<1x32x32xf32> to vector<32x32xf32>
    %c9 = arith.constant 9 : index
    %c0_96 = arith.constant 0 : index
    %c0_97 = arith.constant 0 : index
    %277 = vector.load %arg1[%c9, %c0_96, %c0_97] : memref<15x32x32xf32, #tpu.memory_space<vmem>>, vector<1x32x32xf32>
    %278 = vector.shape_cast %277 : vector<1x32x32xf32> to vector<32x32xf32>
    %c10 = arith.constant 10 : index
    %c0_98 = arith.constant 0 : index
    %c0_99 = arith.constant 0 : index
    %279 = vector.load %arg1[%c10, %c0_98, %c0_99] : memref<15x32x32xf32, #tpu.memory_space<vmem>>, vector<1x32x32xf32>
    %280 = vector.shape_cast %279 : vector<1x32x32xf32> to vector<32x32xf32>
    %c11 = arith.constant 11 : index
    %c0_100 = arith.constant 0 : index
    %c0_101 = arith.constant 0 : index
    %281 = vector.load %arg1[%c11, %c0_100, %c0_101] : memref<15x32x32xf32, #tpu.memory_space<vmem>>, vector<1x32x32xf32>
    %282 = vector.shape_cast %281 : vector<1x32x32xf32> to vector<32x32xf32>
    %c12 = arith.constant 12 : index
    %c0_102 = arith.constant 0 : index
    %c0_103 = arith.constant 0 : index
    %283 = vector.load %arg1[%c12, %c0_102, %c0_103] : memref<15x32x32xf32, #tpu.memory_space<vmem>>, vector<1x32x32xf32>
    %284 = vector.shape_cast %283 : vector<1x32x32xf32> to vector<32x32xf32>
    %c13 = arith.constant 13 : index
    %c0_104 = arith.constant 0 : index
    %c0_105 = arith.constant 0 : index
    %285 = vector.load %arg1[%c13, %c0_104, %c0_105] : memref<15x32x32xf32, #tpu.memory_space<vmem>>, vector<1x32x32xf32>
    %286 = vector.shape_cast %285 : vector<1x32x32xf32> to vector<32x32xf32>
    %c14 = arith.constant 14 : index
    %c0_106 = arith.constant 0 : index
    %c0_107 = arith.constant 0 : index
    %287 = vector.load %arg1[%c14, %c0_106, %c0_107] : memref<15x32x32xf32, #tpu.memory_space<vmem>>, vector<1x32x32xf32>
    %288 = vector.shape_cast %287 : vector<1x32x32xf32> to vector<32x32xf32>
    %289 = vector.extract_strided_slice %1 {offsets = [3, 0], sizes = [1, 32], strides = [1, 1]} : vector<6x128xf32> to vector<1x32xf32>
    %290 = vector.extract_strided_slice %1 {offsets = [4, 0], sizes = [1, 32], strides = [1, 1]} : vector<6x128xf32> to vector<1x32xf32>
    %cst_108 = arith.constant dense<0.000000e+00> : vector<32x32xf32>
    %291 = tpu.matmul %274, %276, %cst_108 {dimension_numbers = #tpu.dot_dimension_numbers<[1], [0], [0], [1], [0, 0, 1, 1], [], []>} : vector<32x32xf32>, vector<32x32xf32>, vector<32x32xf32> -> vector<32x32xf32>
    %cst_109 = arith.constant dense<0.000000e+00> : vector<32x32xf32>
    %292 = tpu.matmul %274, %278, %cst_109 {dimension_numbers = #tpu.dot_dimension_numbers<[1], [0], [0], [1], [0, 0, 1, 1], [], []>} : vector<32x32xf32>, vector<32x32xf32>, vector<32x32xf32> -> vector<32x32xf32>
    %cst_110 = arith.constant dense<0.000000e+00> : vector<32x32xf32>
    %293 = tpu.matmul %274, %280, %cst_110 {dimension_numbers = #tpu.dot_dimension_numbers<[1], [0], [0], [1], [0, 0, 1, 1], [], []>} : vector<32x32xf32>, vector<32x32xf32>, vector<32x32xf32> -> vector<32x32xf32>
    %294 = tpu.transpose %292, [1, 0] : vector<32x32xf32> -> vector<32x32xf32>
    %295 = tpu.concatenate %294, %294, %294, %294 in 1 : vector<32x32xf32>, vector<32x32xf32>, vector<32x32xf32>, vector<32x32xf32> -> vector<32x128xf32>
    %296 = arith.mulf %295, %125 : vector<32x128xf32>
    %cst_111 = arith.constant dense<0.000000e+00> : vector<32x128xf32>
    %297 = tpu.matmul %291, %296, %cst_111 {dimension_numbers = #tpu.dot_dimension_numbers<[1], [0], [0], [1], [0, 0, 1, 1], [], []>} : vector<32x32xf32>, vector<32x128xf32>, vector<32x128xf32> -> vector<32x128xf32>
    %cst_112 = arith.constant dense<0.000000e+00> : vector<32x32xf32>
    %298 = tpu.matmul %291, %282, %cst_112 {dimension_numbers = #tpu.dot_dimension_numbers<[1], [0], [0], [1], [0, 0, 1, 1], [], []>} : vector<32x32xf32>, vector<32x32xf32>, vector<32x32xf32> -> vector<32x32xf32>
    %299 = vector.extract_strided_slice %298 {offsets = [0, 0], sizes = [32, 4], strides = [1, 1]} : vector<32x32xf32> to vector<32x4xf32>
    %cst_113 = arith.constant dense<0.000000e+00> : vector<32x128xf32>
    %300 = tpu.matmul %299, %141, %cst_113 {dimension_numbers = #tpu.dot_dimension_numbers<[1], [0], [0], [1], [0, 0, 1, 1], [], []>} : vector<32x4xf32>, vector<4x128xf32>, vector<32x128xf32> -> vector<32x128xf32>
    %301 = arith.mulf %74, %300 : vector<32x128xf32>
    %302 = arith.addf %297, %301 : vector<32x128xf32>
    %303 = vector.extract_strided_slice %298 {offsets = [0, 4], sizes = [32, 4], strides = [1, 1]} : vector<32x32xf32> to vector<32x4xf32>
    %cst_114 = arith.constant dense<0.000000e+00> : vector<32x128xf32>
    %304 = tpu.matmul %303, %141, %cst_114 {dimension_numbers = #tpu.dot_dimension_numbers<[1], [0], [0], [1], [0, 0, 1, 1], [], []>} : vector<32x4xf32>, vector<4x128xf32>, vector<32x128xf32> -> vector<32x128xf32>
    %305 = arith.mulf %80, %304 : vector<32x128xf32>
    %306 = arith.addf %302, %305 : vector<32x128xf32>
    %307 = vector.extract_strided_slice %298 {offsets = [0, 8], sizes = [32, 4], strides = [1, 1]} : vector<32x32xf32> to vector<32x4xf32>
    %cst_115 = arith.constant dense<0.000000e+00> : vector<32x128xf32>
    %308 = tpu.matmul %307, %141, %cst_115 {dimension_numbers = #tpu.dot_dimension_numbers<[1], [0], [0], [1], [0, 0, 1, 1], [], []>} : vector<32x4xf32>, vector<4x128xf32>, vector<32x128xf32> -> vector<32x128xf32>
    %309 = arith.mulf %86, %308 : vector<32x128xf32>
    %310 = arith.addf %306, %309 : vector<32x128xf32>
    %311 = vector.extract_strided_slice %298 {offsets = [0, 12], sizes = [32, 4], strides = [1, 1]} : vector<32x32xf32> to vector<32x4xf32>
    %cst_116 = arith.constant dense<0.000000e+00> : vector<32x128xf32>
    %312 = tpu.matmul %311, %141, %cst_116 {dimension_numbers = #tpu.dot_dimension_numbers<[1], [0], [0], [1], [0, 0, 1, 1], [], []>} : vector<32x4xf32>, vector<4x128xf32>, vector<32x128xf32> -> vector<32x128xf32>
    %313 = arith.mulf %92, %312 : vector<32x128xf32>
    %314 = arith.addf %310, %313 : vector<32x128xf32>
    %315 = vector.extract_strided_slice %298 {offsets = [0, 16], sizes = [32, 4], strides = [1, 1]} : vector<32x32xf32> to vector<32x4xf32>
    %cst_117 = arith.constant dense<0.000000e+00> : vector<32x128xf32>
    %316 = tpu.matmul %315, %141, %cst_117 {dimension_numbers = #tpu.dot_dimension_numbers<[1], [0], [0], [1], [0, 0, 1, 1], [], []>} : vector<32x4xf32>, vector<4x128xf32>, vector<32x128xf32> -> vector<32x128xf32>
    %317 = arith.mulf %98, %316 : vector<32x128xf32>
    %318 = arith.addf %314, %317 : vector<32x128xf32>
    %319 = vector.extract_strided_slice %298 {offsets = [0, 20], sizes = [32, 4], strides = [1, 1]} : vector<32x32xf32> to vector<32x4xf32>
    %cst_118 = arith.constant dense<0.000000e+00> : vector<32x128xf32>
    %320 = tpu.matmul %319, %141, %cst_118 {dimension_numbers = #tpu.dot_dimension_numbers<[1], [0], [0], [1], [0, 0, 1, 1], [], []>} : vector<32x4xf32>, vector<4x128xf32>, vector<32x128xf32> -> vector<32x128xf32>
    %321 = arith.mulf %104, %320 : vector<32x128xf32>
    %322 = arith.addf %318, %321 : vector<32x128xf32>
    %323 = vector.extract_strided_slice %298 {offsets = [0, 24], sizes = [32, 4], strides = [1, 1]} : vector<32x32xf32> to vector<32x4xf32>
    %cst_119 = arith.constant dense<0.000000e+00> : vector<32x128xf32>
    %324 = tpu.matmul %323, %141, %cst_119 {dimension_numbers = #tpu.dot_dimension_numbers<[1], [0], [0], [1], [0, 0, 1, 1], [], []>} : vector<32x4xf32>, vector<4x128xf32>, vector<32x128xf32> -> vector<32x128xf32>
    %325 = arith.mulf %110, %324 : vector<32x128xf32>
    %326 = arith.addf %322, %325 : vector<32x128xf32>
    %327 = vector.extract_strided_slice %298 {offsets = [0, 28], sizes = [32, 4], strides = [1, 1]} : vector<32x32xf32> to vector<32x4xf32>
    %cst_120 = arith.constant dense<0.000000e+00> : vector<32x128xf32>
    %328 = tpu.matmul %327, %141, %cst_120 {dimension_numbers = #tpu.dot_dimension_numbers<[1], [0], [0], [1], [0, 0, 1, 1], [], []>} : vector<32x4xf32>, vector<4x128xf32>, vector<32x128xf32> -> vector<32x128xf32>
    %329 = arith.mulf %116, %328 : vector<32x128xf32>
    %330 = arith.addf %326, %329 : vector<32x128xf32>
    %cst_121 = arith.constant 0.353553385 : f32
    %331 = vector.broadcast %cst_121 : f32 to vector<32x128xf32>
    %332 = arith.mulf %330, %331 : vector<32x128xf32>
    %cst_122 = arith.constant -1.000000e+09 : f32
    %333 = vector.broadcast %cst_122 : f32 to vector<32x128xf32>
    %334 = arith.select %68, %332, %333 : vector<32x128xi1>, vector<32x128xf32>
    %cst_123 = arith.constant dense<0xFF800000> : vector<32xf32>
    %335 = vector.multi_reduction <maximumf>, %334, %cst_123 [1] : vector<32x128xf32> to vector<32xf32>
    %336 = vector.shape_cast %335 : vector<32xf32> to vector<32x1xf32>
    %337 = vector.broadcast %336 : vector<32x1xf32> to vector<32x128xf32>
    %338 = arith.subf %334, %337 : vector<32x128xf32>
    %339 = math.exp %338 : vector<32x128xf32>
    %cst_124 = arith.constant dense<0.000000e+00> : vector<32x4xf32>
    %340 = tpu.matmul %339, %148, %cst_124 {dimension_numbers = #tpu.dot_dimension_numbers<[1], [0], [0], [1], [0, 0, 1, 1], [], []>} : vector<32x128xf32>, vector<128x4xf32>, vector<32x4xf32> -> vector<32x4xf32>
    %341 = tpu.reciprocal %340 {approx = true} : vector<32x4xf32> -> vector<32x4xf32>
    %cst_125 = arith.constant dense<0.000000e+00> : vector<32x128xf32>
    %342 = tpu.matmul %341, %141, %cst_125 {dimension_numbers = #tpu.dot_dimension_numbers<[1], [0], [0], [1], [0, 0, 1, 1], [], []>} : vector<32x4xf32>, vector<4x128xf32>, vector<32x128xf32> -> vector<32x128xf32>
    %343 = arith.mulf %339, %342 : vector<32x128xf32>
    %344 = tpu.concatenate %293, %293, %293, %293 in 0 : vector<32x32xf32>, vector<32x32xf32>, vector<32x32xf32>, vector<32x32xf32> -> vector<128x32xf32>
    %345 = arith.mulf %344, %134 : vector<128x32xf32>
    %cst_126 = arith.constant dense<0.000000e+00> : vector<32x32xf32>
    %346 = tpu.matmul %343, %345, %cst_126 {dimension_numbers = #tpu.dot_dimension_numbers<[1], [0], [0], [1], [0, 0, 1, 1], [], []>} : vector<32x128xf32>, vector<128x32xf32>, vector<32x32xf32> -> vector<32x32xf32>
    %347 = arith.mulf %343, %74 : vector<32x128xf32>
    %cst_127 = arith.constant dense<0.000000e+00> : vector<32x4xf32>
    %348 = tpu.matmul %347, %148, %cst_127 {dimension_numbers = #tpu.dot_dimension_numbers<[1], [0], [0], [1], [0, 0, 1, 1], [], []>} : vector<32x128xf32>, vector<128x4xf32>, vector<32x4xf32> -> vector<32x4xf32>
    %349 = arith.mulf %343, %80 : vector<32x128xf32>
    %cst_128 = arith.constant dense<0.000000e+00> : vector<32x4xf32>
    %350 = tpu.matmul %349, %148, %cst_128 {dimension_numbers = #tpu.dot_dimension_numbers<[1], [0], [0], [1], [0, 0, 1, 1], [], []>} : vector<32x128xf32>, vector<128x4xf32>, vector<32x4xf32> -> vector<32x4xf32>
    %351 = arith.mulf %343, %86 : vector<32x128xf32>
    %cst_129 = arith.constant dense<0.000000e+00> : vector<32x4xf32>
    %352 = tpu.matmul %351, %148, %cst_129 {dimension_numbers = #tpu.dot_dimension_numbers<[1], [0], [0], [1], [0, 0, 1, 1], [], []>} : vector<32x128xf32>, vector<128x4xf32>, vector<32x4xf32> -> vector<32x4xf32>
    %353 = arith.mulf %343, %92 : vector<32x128xf32>
    %cst_130 = arith.constant dense<0.000000e+00> : vector<32x4xf32>
    %354 = tpu.matmul %353, %148, %cst_130 {dimension_numbers = #tpu.dot_dimension_numbers<[1], [0], [0], [1], [0, 0, 1, 1], [], []>} : vector<32x128xf32>, vector<128x4xf32>, vector<32x4xf32> -> vector<32x4xf32>
    %355 = arith.mulf %343, %98 : vector<32x128xf32>
    %cst_131 = arith.constant dense<0.000000e+00> : vector<32x4xf32>
    %356 = tpu.matmul %355, %148, %cst_131 {dimension_numbers = #tpu.dot_dimension_numbers<[1], [0], [0], [1], [0, 0, 1, 1], [], []>} : vector<32x128xf32>, vector<128x4xf32>, vector<32x4xf32> -> vector<32x4xf32>
    %357 = arith.mulf %343, %104 : vector<32x128xf32>
    %cst_132 = arith.constant dense<0.000000e+00> : vector<32x4xf32>
    %358 = tpu.matmul %357, %148, %cst_132 {dimension_numbers = #tpu.dot_dimension_numbers<[1], [0], [0], [1], [0, 0, 1, 1], [], []>} : vector<32x128xf32>, vector<128x4xf32>, vector<32x4xf32> -> vector<32x4xf32>
    %359 = arith.mulf %343, %110 : vector<32x128xf32>
    %cst_133 = arith.constant dense<0.000000e+00> : vector<32x4xf32>
    %360 = tpu.matmul %359, %148, %cst_133 {dimension_numbers = #tpu.dot_dimension_numbers<[1], [0], [0], [1], [0, 0, 1, 1], [], []>} : vector<32x128xf32>, vector<128x4xf32>, vector<32x4xf32> -> vector<32x4xf32>
    %361 = arith.mulf %343, %116 : vector<32x128xf32>
    %cst_134 = arith.constant dense<0.000000e+00> : vector<32x4xf32>
    %362 = tpu.matmul %361, %148, %cst_134 {dimension_numbers = #tpu.dot_dimension_numbers<[1], [0], [0], [1], [0, 0, 1, 1], [], []>} : vector<32x128xf32>, vector<128x4xf32>, vector<32x4xf32> -> vector<32x4xf32>
    %363 = tpu.concatenate %348, %350, %352, %354, %356, %358, %360, %362 in 1 : vector<32x4xf32>, vector<32x4xf32>, vector<32x4xf32>, vector<32x4xf32>, vector<32x4xf32>, vector<32x4xf32>, vector<32x4xf32>, vector<32x4xf32> -> vector<32x32xf32>
    %cst_135 = arith.constant dense<0.000000e+00> : vector<32x32xf32>
    %364 = tpu.matmul %363, %284, %cst_135 {dimension_numbers = #tpu.dot_dimension_numbers<[1], [0], [0], [1], [0, 0, 1, 1], [], []>} : vector<32x32xf32>, vector<32x32xf32>, vector<32x32xf32> -> vector<32x32xf32>
    %365 = arith.addf %346, %364 : vector<32x32xf32>
    %cst_136 = arith.constant dense<0.000000e+00> : vector<32x32xf32>
    %366 = tpu.matmul %274, %286, %cst_136 {dimension_numbers = #tpu.dot_dimension_numbers<[1], [0], [0], [1], [0, 0, 1, 1], [], []>} : vector<32x32xf32>, vector<32x32xf32>, vector<32x32xf32> -> vector<32x32xf32>
    %367 = arith.addf %365, %366 : vector<32x32xf32>
    %368 = vector.broadcast %289 : vector<1x32xf32> to vector<32x32xf32>
    %369 = arith.addf %367, %368 : vector<32x32xf32>
    %cst_137 = arith.constant 5.000000e-01 : f32
    %370 = vector.broadcast %cst_137 : f32 to vector<32x32xf32>
    %371 = arith.mulf %370, %369 : vector<32x32xf32>
    %cst_138 = arith.constant 4.471500e-02 : f32
    %372 = vector.broadcast %cst_138 : f32 to vector<32x32xf32>
    %373 = arith.mulf %372, %369 : vector<32x32xf32>
    %374 = arith.mulf %373, %369 : vector<32x32xf32>
    %375 = arith.mulf %374, %369 : vector<32x32xf32>
    %376 = arith.addf %369, %375 : vector<32x32xf32>
    %cst_139 = arith.constant 0.797884583 : f32
    %377 = vector.broadcast %cst_139 : f32 to vector<32x32xf32>
    %378 = arith.mulf %377, %376 : vector<32x32xf32>
    %379 = math.tanh %378 : vector<32x32xf32>
    %cst_140 = arith.constant 1.000000e+00 : f32
    %380 = vector.broadcast %cst_140 : f32 to vector<32x32xf32>
    %381 = arith.addf %380, %379 : vector<32x32xf32>
    %382 = arith.mulf %371, %381 : vector<32x32xf32>
    %383 = arith.addf %274, %382 : vector<32x32xf32>
    %cst_141 = arith.constant dense<0.000000e+00> : vector<32x32xf32>
    %384 = tpu.matmul %383, %288, %cst_141 {dimension_numbers = #tpu.dot_dimension_numbers<[1], [0], [0], [1], [0, 0, 1, 1], [], []>} : vector<32x32xf32>, vector<32x32xf32>, vector<32x32xf32> -> vector<32x32xf32>
    %385 = vector.broadcast %290 : vector<1x32xf32> to vector<32x32xf32>
    %386 = arith.addf %384, %385 : vector<32x32xf32>
    %cst_142 = arith.constant 5.000000e-01 : f32
    %387 = vector.broadcast %cst_142 : f32 to vector<32x32xf32>
    %388 = arith.mulf %387, %386 : vector<32x32xf32>
    %cst_143 = arith.constant 4.471500e-02 : f32
    %389 = vector.broadcast %cst_143 : f32 to vector<32x32xf32>
    %390 = arith.mulf %389, %386 : vector<32x32xf32>
    %391 = arith.mulf %390, %386 : vector<32x32xf32>
    %392 = arith.mulf %391, %386 : vector<32x32xf32>
    %393 = arith.addf %386, %392 : vector<32x32xf32>
    %cst_144 = arith.constant 0.797884583 : f32
    %394 = vector.broadcast %cst_144 : f32 to vector<32x32xf32>
    %395 = arith.mulf %394, %393 : vector<32x32xf32>
    %396 = math.tanh %395 : vector<32x32xf32>
    %cst_145 = arith.constant 1.000000e+00 : f32
    %397 = vector.broadcast %cst_145 : f32 to vector<32x32xf32>
    %398 = arith.addf %397, %396 : vector<32x32xf32>
    %399 = arith.mulf %388, %398 : vector<32x32xf32>
    %400 = arith.addf %383, %399 : vector<32x32xf32>
    %401 = tpu.iota {dimensions = array<i32: 0>} : vector<2x32xi32>
    %402 = tpu.iota {dimensions = array<i32: 1>} : vector<2x32xi32>
    %c4_i32_146 = arith.constant 4 : i32
    %403 = vector.broadcast %c4_i32_146 : i32 to vector<2x32xi32>
    %404 = arith.shrsi %402, %403 : vector<2x32xi32>
    %405 = arith.cmpi eq, %401, %404 : vector<2x32xi32>
    %406 = arith.extui %405 : vector<2x32xi1> to vector<2x32xi32>
    %407 = arith.sitofp %406 : vector<2x32xi32> to vector<2x32xf32>
    %cst_147 = arith.constant dense<0.000000e+00> : vector<2x32xf32>
    %408 = tpu.matmul %407, %400, %cst_147 {dimension_numbers = #tpu.dot_dimension_numbers<[1], [0], [0], [1], [0, 0, 1, 1], [], []>} : vector<2x32xf32>, vector<32x32xf32>, vector<2x32xf32> -> vector<2x32xf32>
    %cst_148 = arith.constant dense<0.000000e+00> : vector<2x128xf32>
    %409 = tpu.matmul %408, %2, %cst_148 {dimension_numbers = #tpu.dot_dimension_numbers<[1], [0], [0], [1], [0, 0, 1, 1], [], []>} : vector<2x32xf32>, vector<32x128xf32>, vector<2x128xf32> -> vector<2x128xf32>
    %410 = vector.extract_strided_slice %1 {offsets = [5, 0], sizes = [1, 128], strides = [1, 1]} : vector<6x128xf32> to vector<1x128xf32>
    %411 = vector.broadcast %410 : vector<1x128xf32> to vector<2x128xf32>
    %412 = arith.addf %409, %411 : vector<2x128xf32>
    %c0_149 = arith.constant 0 : index
    %c0_150 = arith.constant 0 : index
    %413 = vector.load %arg4[%c0_149, %c0_150] : memref<2x128xf32, #tpu.memory_space<vmem>>, vector<2x128xf32>
    tpu.vector_store %arg4[%c0_149, %c0_150], %412 {strides = array<i32>} : memref<2x128xf32, #tpu.memory_space<vmem>>, vector<2x128xf32>,
    return
  }
}

</mosaic_0001>

<bundles_post_ra>
// kernel: point_encoder_forward.1
= control target key start
LH: loop header
LB: loop body
LE: loop exit
PB: predicated region body
PF: predicated region fallthrough
CT: control target
= control target key end

     0   :  { %v27_v3 = vlaneseq  ;;  %vm13484_vm0 = vcmask 261120   ;;  %s13382_s0 = inlined_call_operand.vmem [shape: f32[32,32], index: 0, kind: input, shape index: {}]   ;;  %s13383_s1 = inlined_call_operand.vmem [shape: f32[15,32,32], index: 1, kind: input, shape index: {}]   ;;  %s13384_s2 = inlined_call_operand.vmem [shape: f32[6,128], index: 2, kind: input, shape index: {}]   ;;  %s13385_s3 = inlined_call_operand.vmem [shape: f32[32,128], index: 3, kind: input, shape index: {}]   ;;  %s13386_s4 = inlined_call_operand.hbm [shape: f32[2,128], index: 4, kind: output, shape index: {}]  }
   0x1   :  { %v51_v0 = vld [vmem:[%s13383_s1] sm:$0xff]  ;;  %v52_v1 = vld [vmem:[%s13383_s1 + $0x8] sm:$0xff]  ;;  %v53_v2 = vld [vmem:[%s13383_s1 + $0x10] sm:$0xff] }
   0x2   :  { %v9513_v4 = vpack.c.bf16 %v52_v1, %v51_v0  ;;  %v54_v5 = vld [vmem:[%s13383_s1 + $0x18] sm:$0xff]  ;;  %v18_v6 = vld [vmem:[%s13382_s0] sm:$0xff]  ;;  %v10599_v8 = vand.u32 127, %v27_v3 }
   0x3   :  { %v9517_v7 = vpack.c.bf16 %v54_v5, %v53_v2  ;;  %8318 = vmatprep.mubr.msk.f32.mxu1 %vm13484_vm0, %v18_v6 }
   0x4   :  { %13546 = vst [vmem:[#allocation5_spill] sm:$0xff] %v10599_v8  ;;  %9514 = vmatprep.subr.bf16.mxu1 %v9513_v4 }
   0x5   :  { %9 = vsyncpa [#allocation3], 0  ;;  %9516 = vmatpush3.bf16.msra.mxu1 %v9513_v4  ;;  %v19_v9 = vld [vmem:[%s13382_s0 + $0x8] sm:$0xff]  ;;  %vm46_vm1 = vcmp.ge.s32.totalorder %v10599_v8, 8  ;;  %vm47_vm2 = vcmp.lt.s32.totalorder %v10599_v8, 11  ;;  %v13415_v10 = vmov 0.0  }
   0x6   :  { %9518 = vmatprep.subr.bf16.mxu1 %v9517_v7  ;;  %vm48_vm3 = vmand %vm46_vm1, %vm47_vm2  ;;  %v20_v15 = vld [vmem:[%s13382_s0 + $0x10] sm:$0xff]  ;;  %v21_v16 = vld [vmem:[%s13382_s0 + $0x18] sm:$0xff]  ;;  %v13406_v20 = vmov 1.0|1.0   ;;  %v13387_v27 = vmov 0.0|0.0   ;;  %v10649_v31 = vshrl.u32 %v27_v3, 7 }
   0x7   :  { %v7069_v11 = vsel %vm48_vm3, 1.0, %v13415_v10  ;;  %vm9522_vm4 = vmpackc.low %vm13484_vm0, %vm13484_vm0  ;;  %9533 = vmatprep.subr.bf16.mxu0 %v13406_v20  ;;  %v7152_v21 = vld [vmem:[%s13383_s1 + $0x20] sm:$0xff]  ;;  %v7153_v22 = vld [vmem:[%s13383_s1 + $0x28] sm:$0xff]  ;;  %vm13391_vm9 = vmmov 0   ;;  %s10541_s11 = smov 32   ;;  %s10542_s12 = smov 96  }
   0x8   :  { %v193_v12 = vmul.f32 %v7069_v11, %v18_v6  ;;  %v194_v13 = vmul.f32 %v7069_v11, %v19_v9  ;;  %v195_v17 = vmul.f32 %v7069_v11, %v20_v15  ;;  %v196_v18 = vmul.f32 %v7069_v11, %v21_v16  ;;  %9534 = vmatpush3.bf16.msra.mxu0 %v13406_v20  ;;  %v7154_v24 = vld [vmem:[%s13383_s1 + $0x30] sm:$0xff]  ;;  %v7155_v25 = vld [vmem:[%s13383_s1 + $0x38] sm:$0xff]  ;;  %v7160_v28 = vld [vmem:[%s13383_s1 + $0x60] sm:$0xff]  ;;  %s10543_s13 = smov 64   ;;  %s10544_s14 = smov 124  }
   0x9   :  { %9520 = vmatpush3.bf16.msra.mxu1 %v9517_v7  ;;  %9535 = vmatprep.subr.bf16.mxu0 %v13406_v20  ;;  %v9543_v23 = vpack.c.bf16 %v7153_v22, %v7152_v21  ;;  %v9547_v26 = vpack.c.bf16 %v7155_v25, %v7154_v24  ;;  %v7161_v29 = vld [vmem:[%s13383_s1 + $0x68] sm:$0xff]  ;;  %13547 = vst [vmem:[#allocation6_spill] sm:$0xff] %v10649_v31  ;;  %v13397_v32 = vsub.s32 0, %v10649_v31  ;;  %v22_v33 = vld [vmem:[%s13384_s2] sm:$0x3f]  ;;  %v10663_v59 = vadd.s32 8, %v10649_v31 }
   0xa   :  { %v9521_v14 = vpack.c.bf16 %v194_v13, %v193_v12  ;;  %v9527_v19 = vpack.c.bf16 %v196_v18, %v195_v17  ;;  %v10646_v30 = vpack.c.bf16 %v7161_v29, %v7160_v28  ;;  %v10669_v0 = vadd.s32 24, %v10649_v31  ;;  %v7157_v21 = vld [vmem:[%s13383_s1 + $0x48] sm:$0xff]  ;;  %v7162_v25 = vld [vmem:[%s13383_s1 + $0x70] sm:$0xff]  ;;  %s10545_s15 = smov 120   ;;  %s10546_s16 = smov 116  }
   0xb   :  { %v58_v34 = vrot.slane %v22_v33, %v13397_v32  ;;  %vm35_vm5 = vcmp.eq.s32.totalorder %v10663_v59, %v10599_v8  ;;  %vm34_vm6 = vcmp.eq.s32.totalorder %v10649_v31, %v10599_v8  ;;  %v10674_v1 = vadd.s32 16, %v10649_v31  ;;  %s10547_s17 = smov 112   ;;  %s10548_s18 = smov 108  }
   0xc   :  { %8319 = vmatmul.mubr.msk.f32.vlgmr.msra.gmra.mrb[0].mxu1 %vm13484_vm0, %v19_v9  ;;  %9523 = vmatprep.subr.msk.bf16.mxu1 %vm9522_vm4, %v9521_v14  ;;  %v7066_v2 = vsel %vm35_vm5, 1.0, %v13415_v10  ;;  %vm37_vm7 = vcmp.eq.s32.totalorder %v10669_v0, %v10599_v8  ;;  %v7065_v3 = vsel %vm34_vm6, 1.0, %v13415_v10  ;;  %s10549_s19 = smov 104   ;;  %s10550_s20 = smov 100  }
   0xd   :  { %8321 = vmatprep.mubr.msk.f32.mxu1 %vm13484_vm0, %v20_v15  ;;  %9536 = vmatpush3.bf16.msra.mxu0 %v13406_v20  ;;  %vm36_vm8 = vcmp.eq.s32.totalorder %v10674_v1, %v10599_v8  ;;  %v7068_v9 = vsel %vm37_vm7, 1.0, %v13415_v10  ;;  %s10551_s29 = smov 4   ;;  %s10552_s30 = smov 8  }
   0xe   :  { %9537 = vmatprep.subr.bf16.mxu0 %v13387_v27  ;;  %s10553_s0 = smov 12   ;;  %s10554_s5 = smov 16  }
   0xf   :  { %s10555_s6 = smov 20   ;;  %s10556_s7 = smov 24  }
  0x10   :  { %8322 = vmatmul.mubr.msk.f32.gmra.mrb[2].mxu1 %vm13484_vm0, %v21_v16  ;;  %s10557_s8 = smov 28  }
  0x11   :  { %8332 = vmatprep.mubr.msk.f32.mxu1 %vm13484_vm0, %v193_v12 }
  0x12   :  { %9526 = vmatpush3.bf16.xpose.msk.msra.mxu1 %vm9522_vm4, %v9521_v14  ;;  %v7067_v14 = vsel %vm36_vm8, 1.0, %v13415_v10 }
  0x13   :  { %9529 = vmatprep.subr.msk.bf16.mxu1 %vm9522_vm4, %v9527_v19 }
  0x1a   :  { %9532 = vmatpush3.bf16.xpose.msk.msra.mxu1 %vm9522_vm4, %v9527_v19  ;;  %v7156_v19 = vld [vmem:[%s13383_s1 + $0x40] sm:$0xff] }
  0x1b   :  { %9544 = vmatprep.subr.bf16.mxu1 %v9543_v23 }
  0x21   :  { %8333 = vmatmul.mubr.msk.f32.vlgmr.msra.gmra.mrb[4].mxu1 %vm13484_vm0, %v194_v13 }
  0x22   :  { %8335 = vmatprep.mubr.msk.f32.mxu1 %vm13484_vm0, %v195_v17  ;;  %9546 = vmatpush3.bf16.msra.mxu1 %v9543_v23 }
  0x23   :  { %9548 = vmatprep.subr.bf16.mxu1 %v9547_v26 }
  0x25   :  { %8336 = vmatmul.mubr.msk.f32.gmra.mrb[6].mxu1 %vm13484_vm0, %v196_v18 }
  0x26   :  { %9550 = vmatpush3.bf16.msra.mxu1 %v9547_v26  ;;  %v7163_v26 = vld [vmem:[%s13383_s1 + $0x78] sm:$0xff] }
  0x27   :  { %9560 = vmatprep.subr.bf16.mxu1 %v10646_v30 }
  0xdf   :  { %v8320_v35 = vpop.f32.mrb[0].mxu1 }
  0xe0   :  { %v144_v36 = vadd.f32 %v8320_v35, %v58_v34  ;;  %v138_v37 = vpop.f32.mrb[1].mxu1 }
  0xe1   :  { %v139_v38 = vadd.f32 %v138_v37, %v58_v34  ;;  %v9551_v37 = vpack.c.bf16 %v7157_v21, %v7156_v19  ;;  %v10836_v19 = vadd.s32 120, %v10649_v31  ;;  %v13405_v21 = vshra.s32 %v10669_v0, 5 }
  0xe2   :  { %v162_v39 = vmul.f32 0.044715, %v144_v36  ;;  %v158_v22 = vmul.f32 0.5, %v144_v36 }
  0xe3   :  { %v161_v40 = vmul.f32 0.044715, %v139_v38  ;;  %v8323_v41 = vpop.f32.mrb[2].mxu1  ;;  %v157_v15 = vmul.f32 0.5, %v139_v38 }
  0xe4   :  { %v166_v42 = vmul.f32 %v162_v39, %v144_v36  ;;  %v10657_v43 = vadd.f32 %v8323_v41, %v58_v34  ;;  %v148_v44 = vpop.f32.mrb[3].mxu1  ;;  %v9563_v41 = vpack.c.bf16 %v7163_v26, %v7162_v25  ;;  %v10846_v25 = vadd.s32 112, %v10649_v31 }
  0xe5   :  { %v165_v45 = vmul.f32 %v161_v40, %v139_v38  ;;  %v149_v46 = vadd.f32 %v148_v44, %v58_v34  ;;  %v7158_v44 = vld [vmem:[%s13383_s1 + $0x50] sm:$0xff] }
  0xe6   :  { %v170_v47 = vmul.f32 %v166_v42, %v144_v36  ;;  %v164_v48 = vmul.f32 0.044715, %v10657_v43  ;;  %v160_v42 = vmul.f32 0.5, %v10657_v43 }
  0xe7   :  { %v169_v49 = vmul.f32 %v165_v45, %v139_v38  ;;  %v163_v50 = vmul.f32 0.044715, %v149_v46  ;;  %v7159_v45 = vld [vmem:[%s13383_s1 + $0x58] sm:$0xff] }
  0xe8   :  { %v174_v51 = vadd.f32 %v170_v47, %v144_v36  ;;  %v168_v52 = vmul.f32 %v164_v48, %v10657_v43  ;;  %v9555_v47 = vpack.c.bf16 %v7159_v45, %v7158_v44  ;;  %v7164_v48 = vld [vmem:[%s13383_s1 + $0x80] sm:$0xff] }
  0xe9   :  { %v173_v53 = vadd.f32 %v169_v49, %v139_v38  ;;  %v167_v54 = vmul.f32 %v163_v50, %v149_v46  ;;  %v159_v38 = vmul.f32 0.5, %v149_v46  ;;  %v10539_v49 = vmov 1.0  }
  0xea   :  { %v178_v55 = vmul.f32 0.7978846, %v174_v51  ;;  %v172_v56 = vmul.f32 %v168_v52, %v10657_v43  ;;  %v7166_v51 = vld [vmem:[%s13383_s1 + $0x90] sm:$0xff]  ;;  %v7167_v52 = vld [vmem:[%s13383_s1 + $0x98] sm:$0xff] }
  0xeb   :  { %v177_v57 = vmul.f32 0.7978846, %v173_v53  ;;  %v171_v58 = vmul.f32 %v167_v54, %v149_v46  ;;  %v9571_v53 = vpack.c.bf16 %v7167_v52, %v7166_v51  ;;  %v10769_v54 = vadd.s32 40, %v10649_v31 }
  0xec   :  { %10365 = vtanh.f32 %v178_v55  ;;  %v176_v60 = vadd.f32 %v172_v56, %v10657_v43  ;;  %v10772_v55 = vadd.s32 72, %v10649_v31  ;;  %v10775_v56 = vadd.s32 104, %v10649_v31 }
  0xed   :  { %10367 = vtanh.f32 %v177_v57  ;;  %v175_v61 = vadd.f32 %v171_v58, %v149_v46  ;;  %v10778_v57 = vadd.s32 32, %v10649_v31  ;;  %v10781_v58 = vadd.s32 64, %v10649_v31 }
  0xee   :  { %v180_v62 = vmul.f32 0.7978846, %v176_v60  ;;  %v13403_v60 = vshra.s32 %v10769_v54, 5  ;;  %v13409_v52 = vshra.s32 %v10663_v59, 5 }
  0xef   :  { %v179_v63 = vmul.f32 0.7978846, %v175_v61  ;;  %v13399_v61 = vshra.s32 %v10772_v55, 5 }
  0xf0   :  { %10369 = vtanh.f32 %v180_v62  ;;  %v13394_v62 = vshra.s32 %v10775_v56, 5 }
  0xf1   :  { %10371 = vtanh.f32 %v179_v63  ;;  %v821_v63 = vshra.s32 %v10599_v8, 3 }
  0xf3   :  { %vm10794_vm10 = vcmp.eq.s32.totalorder %v13403_v60, %v821_v63  ;;  %vm10800_vm11 = vcmp.eq.s32.totalorder %v13399_v61, %v821_v63  ;;  %vm10806_vm12 = vcmp.eq.s32.totalorder %v13394_v62, %v821_v63  ;;  %vm10854_vm1 = vcmp.eq.s32.totalorder %v13405_v21, %v821_v63 }
  0xf4   :  { %v10680_v4 = vpop.f32.mrb[4].mxu1  ;;  %v10938_v32 = vsel %vm10794_vm10, 1.0, %v13415_v10 }
  0xf5   :  { %v295_v5 = vmul.f32 %v10680_v4, %v7066_v2  ;;  %v10685_v6 = vpop.f32.mrb[5].mxu1  ;;  %v10788_v2 = vadd.s32 96, %v10649_v31  ;;  %13581 = vst [vmem:[#allocation12_spill] sm:$0xff] %v10938_v32 }
  0xf6   :  { %v10366_v7 = vpop.eup %10365  ;;  %v294_v11 = vmul.f32 %v7065_v3, %v10685_v6  ;;  %v13402_v3 = vshra.s32 %v10778_v57, 5 }
  0xf7   :  { %v10368_v12 = vpop.eup %10367  ;;  %v186_v13 = vadd.f32 1.0, %v10366_v7 }
  0xf8   :  { %v10690_v16 = vpop.f32.mrb[6].mxu1  ;;  %8346 = vmatprep.mubr.msk.f32.mxu0 %vm13484_vm0, %v294_v11  ;;  %v9538_v17 = vpack.c.bf16 %v295_v5, %v294_v11  ;;  %v185_v18 = vadd.f32 1.0, %v10368_v12  ;;  %v13393_v12 = vshra.s32 %v10788_v2, 5  ;;  %vm10813_vm13 = vcmp.eq.s32.totalorder %v13402_v3, %v821_v63 }
  0xf9   :  { %v297_v23 = vmul.f32 %v10690_v16, %v7068_v9  ;;  %v10700_v24 = vpop.f32.mrb[7].mxu1  ;;  %8347 = vmatmul.mubr.msk.f32.vlgmr.msra.gmra.mrb[0].mxu0 %vm13484_vm0, %v295_v5  ;;  %v10712_v35 = vmul.f32 %v186_v13, %v158_v22  ;;  %v13398_v5 = vshra.s32 %v10781_v58, 5  ;;  %v10840_v22 = vadd.s32 48, %v10649_v31 }
  0xfa   :  { %v10370_v28 = vpop.eup %10369  ;;  %v296_v29 = vmul.f32 %v7067_v14, %v10700_v24  ;;  %9539 = vmatpush3.bf16.msra.mxu0 %v9538_v17  ;;  %v10710_v33 = vmul.f32 %v185_v18, %v157_v15  ;;  %vm10825_vm15 = vcmp.eq.s32.totalorder %v13393_v12, %v821_v63  ;;  %v10830_v17 = vadd.s32 56, %v10649_v31 }
  0xfb   :  { %v10372_v34 = vpop.eup %10371  ;;  %13549 = vst [vmem:[#allocation8_spill] sm:$0xff] %v10712_v35  ;;  %9540 = vmatprep.subr.bf16.mxu0 %v13387_v27  ;;  %v188_v36 = vadd.f32 1.0, %v10370_v28  ;;  %vm10819_vm14 = vcmp.eq.s32.totalorder %v13398_v5, %v821_v63  ;;  %v10833_v18 = vadd.s32 88, %v10649_v31  ;;  %v10943_v5 = vsel %vm10800_vm11, 1.0, %v13415_v10 }
  0xfc   :  { %13548 = vst [vmem:[#allocation7_spill] sm:$0xff] %v10710_v33  ;;  %v9541_v39 = vpack.c.bf16 %v297_v23, %v296_v29  ;;  %8349 = vmatprep.mubr.msk.f32.mxu0 %vm13484_vm0, %v296_v29  ;;  %8371 = vmatprep.mubr.msk.f32.mxu1 %vm13484_vm0, %v10710_v33  ;;  %v187_v40 = vadd.f32 1.0, %v10372_v34  ;;  %v13401_v26 = vshra.s32 %v10830_v17, 5  ;;  %v13389_v29 = vshra.s32 %v10836_v19, 5  ;;  %13582 = vst [vmem:[#allocation13_spill] sm:$0xff] %v10943_v5 }
  0xfd   :  { %8350 = vmatmul.mubr.msk.f32.gmra.mrb[2].mxu0 %vm13484_vm0, %v297_v23  ;;  %8372 = vmatmul.mubr.msk.f32.vlgmr.msra.gmra.mrb[8].mxu1 %vm13484_vm0, %v10712_v35  ;;  %v10733_v43 = vmul.f32 %v188_v36, %v160_v42  ;;  %v10843_v23 = vadd.s32 80, %v10649_v31  ;;  %v13396_v28 = vshra.s32 %v10833_v18, 5  ;;  %v13404_v34 = vshra.s32 %v10674_v1, 5 }
  0xfe   :  { %9542 = vmatpush3.bf16.msra.mxu0 %v9541_v39  ;;  %9562 = vmatpush3.bf16.msra.mxu1 %v10646_v30  ;;  %v10729_v46 = vmul.f32 %v187_v40, %v159_v38  ;;  %v7165_v30 = vld [vmem:[%s13383_s1 + $0x88] sm:$0xff]  ;;  %vm10862_vm2 = vcmp.eq.s32.totalorder %v13401_v26, %v821_v63  ;;  %vm10874_vm4 = vcmp.eq.s32.totalorder %v13389_v29, %v821_v63  ;;  %v13390_v42 = vshra.s32 %v10846_v25, 5 }
  0xff   :  { %8360 = vmatprep.mubr.msk.f32.mxu0 %vm13391_vm9, %v13415_v10  ;;  %13551 = vst [vmem:[#allocation10_spill] sm:$0xff] %v10733_v43  ;;  %9552 = vmatprep.subr.bf16.mxu0 %v9551_v37  ;;  %v9567_v50 = vpack.c.bf16 %v7165_v30, %v7164_v48  ;;  %v13395_v38 = vshra.s32 %v10843_v23, 5  ;;  %vm10868_vm3 = vcmp.eq.s32.totalorder %v13396_v28, %v821_v63  ;;  %v13578_v48 = vmov 0 }
 0x100   :  { %13550 = vst [vmem:[#allocation9_spill] sm:$0xff] %v10729_v46  ;;  %8374 = vmatprep.mubr.msk.f32.mxu1 %vm13484_vm0, %v10729_v46  ;;  %9564 = vmatprep.subr.bf16.mxu1 %v9563_v41  ;;  %vm10881_vm5 = vcmp.eq.s32.totalorder %v13404_v34, %v821_v63  ;;  %vm10899_vm8 = vcmp.eq.s32.totalorder %v13390_v42, %v821_v63  ;;  %v13408_v29 = vshra.s32 %v10649_v31, 5  ;;  %v10957_v7 = vsel %vm10813_vm13, 1.0, %v13415_v10 }
 0x101   :  { %8361 = vmatmul.mubr.msk.f32.vlgmr.msra.gmra.mrb[4].mxu0 %vm13484_vm0, %v10539_v49  ;;  %8375 = vmatmul.mubr.msk.f32.gmra.mrb[10].mxu1 %vm13484_vm0, %v10733_v43  ;;  %vm10893_vm7 = vcmp.eq.s32.totalorder %v13395_v38, %v821_v63  ;;  %v13579_v48 = vsel %vm10899_vm8, 4294967295, %v13578_v48  ;;  %vm823_vm9 = vcmp.eq.s32.totalorder %v13409_v52, %v821_v63  ;;  %13585 = vst [vmem:[#allocation16_spill] sm:$0xff] %v10957_v7  ;;  %v10962_v9 = vsel %vm10819_vm14, 1.0, %v13415_v10 }
 0x102   :  { %9554 = vmatpush3.bf16.msra.mxu0 %v9551_v37  ;;  %8385 = vmatprep.mubr.msk.f32.mxu0 %vm13484_vm0, %v10710_v33  ;;  %v13400_v37 = vshra.s32 %v10840_v22, 5  ;;  %vm822_vm8 = vcmp.eq.s32.totalorder %v13408_v29, %v821_v63  ;;  %v10933_v28 = vsel %vm823_vm9, 1.0, %v13415_v10  ;;  %13586 = vst [vmem:[#allocation17_spill] sm:$0xff] %v10962_v9  ;;  %v10967_v11 = vsel %vm10825_vm15, 1.0, %v13415_v10 }
 0x103   :  { %9566 = vmatpush3.bf16.msra.mxu1 %v9563_v41  ;;  %8399 = vmatprep.mubr.msk.f32.mxu1 %vm13484_vm0, %v10710_v33  ;;  %13580 = vst [vmem:[#allocation11_spill] sm:$0xff] %v10933_v28  ;;  %13587 = vst [vmem:[#allocation18_spill] sm:$0xff] %v10967_v11  ;;  %v10977_v13 = vsel %vm10862_vm2, 1.0, %v13415_v10  ;;  %v10982_v14 = vsel %vm10868_vm3, 1.0, %v13415_v10  ;;  %v10987_v15 = vsel %vm10874_vm4, 1.0, %v13415_v10  ;;  %v11000_v20 = vsel %vm10881_vm5, 1.0, %v13415_v10 }
 0x104   :  { %9556 = vmatprep.subr.bf16.mxu0 %v9555_v47  ;;  %vm10887_vm6 = vcmp.eq.s32.totalorder %v13400_v37, %v821_v63  ;;  %v10948_v63 = vsel %vm10806_vm12, 1.0, %v13415_v10  ;;  %13589 = vst [vmem:[#allocation20_spill] sm:$0xff] %v10977_v13  ;;  %13590 = vst [vmem:[#allocation21_spill] sm:$0xff] %v10982_v14  ;;  %vm13595_vm9 = vnez %v13579_v48  ;;  %vm13425_vm11 = vcmask 1043456  }
 0x105   :  { %13583 = vst [vmem:[#allocation14_spill] sm:$0xff] %v10948_v63  ;;  %13591 = vst [vmem:[#allocation22_spill] sm:$0xff] %v10987_v15  ;;  %v11005_v29 = vsel %vm10887_vm6, 1.0, %v13415_v10  ;;  %vm13486_vm12 = vcmask 31744   ;;  %vm13483_vm13 = vcmask 523264   ;;  %vm13482_vm14 = vcmask 785408  }
 0x106   :  { %8400 = vmatmul.mubr.msk.f32.vlgmr.msra.gmra.mrb[12].mxu1 %vm13484_vm0, %v10712_v35  ;;  %9558 = vmatpush3.bf16.msra.mxu0 %v9555_v47  ;;  %13592 = vst [vmem:[#allocation23_spill] sm:$0xff] %v11000_v20  ;;  %13593 = vst [vmem:[#allocation24_spill] sm:$0xff] %v11005_v29 }
 0x107   :  { %8402 = vmatprep.mubr.msk.f32.mxu1 %vm13484_vm0, %v10729_v46  ;;  %9568 = vmatprep.subr.bf16.mxu0 %v9567_v50 }
 0x109   :  { %8386 = vmatmul.mubr.msk.f32.vlgmr.msra.gmra.mrb[6].mxu0 %vm13484_vm0, %v10712_v35 }
 0x10a   :  { %8403 = vmatmul.mubr.msk.f32.gmra.mrb[14].mxu1 %vm13484_vm0, %v10733_v43  ;;  %8388 = vmatprep.mubr.msk.f32.mxu0 %vm13484_vm0, %v10729_v46 }
 0x10b   :  { %9570 = vmatpush3.bf16.msra.mxu0 %v9567_v50 }
 0x10c   :  { %9572 = vmatprep.subr.bf16.mxu0 %v9571_v53 }
 0x10d   :  { %8389 = vmatmul.mubr.msk.f32.gmra.mrb[8].mxu0 %vm13484_vm0, %v10733_v43 }
 0x10f   :  { %9574 = vmatpush3.bf16.msra.mxu0 %v9571_v53 }
 0x1cc   :  { %v10903_v30 = vpop.f32.mrb[0].mxu0 }
 0x1cd   :  { %v10905_v49 = vpop.f32.mrb[1].mxu0 }
 0x1d0   :  { %v10907_v50 = vpop.f32.mrb[8].mxu1  ;;  %v10909_v51 = vpop.f32.mrb[2].mxu0 }
 0x1d1   :  { %v1034_v53 = vpop.f32.mrb[9].mxu1  ;;  %v10912_v27 = vpop.f32.mrb[3].mxu0 }
 0x1d2   :  { %8413 = vmatprep.mubr.msk.f32.mxu0 %vm13484_vm0, %v1034_v53 }
 0x1d3   :  { %8414 = vmatmul.mubr.msk.f32.vlgmr.msra.gmra.mrb[10].mxu0 %vm13484_vm0, %v10907_v50 }
 0x1d4   :  { %v10918_v42 = vpop.f32.mrb[10].mxu1  ;;  %v10922_v12 = vpop.f32.mrb[4].mxu0 }
 0x1d5   :  { %v10924_v62 = vpop.f32.mrb[11].mxu1  ;;  %v8362_v38 = vpop.f32.mrb[5].mxu0 }
 0x1d6   :  { %8416 = vmatprep.mubr.msk.f32.mxu0 %vm13484_vm0, %v10924_v62  ;;  %v10952_v38 = vsel %vm822_vm8, 1.0, %v13415_v10 }
 0x1d7   :  { %8417 = vmatmul.mubr.msk.f32.gmra.mrb[12].mxu0 %vm13484_vm0, %v10918_v42  ;;  %13584 = vst [vmem:[#allocation15_spill] sm:$0xff] %v10952_v38 }
 0x1d8   :  { %8435 = vmatprep.mubr.msk.f32.mxu0 %vm13484_vm0, %v1034_v53  ;;  %v10972_v53 = vsel %vm10854_vm1, 1.0, %v13415_v10 }
 0x1d9   :  { %v8401_v61 = vpop.f32.mrb[12].mxu1  ;;  %13588 = vst [vmem:[#allocation19_spill] sm:$0xff] %v10972_v53 }
 0x1da   :  { %v2581_v37 = vmul.f32 %v8401_v61, %v10933_v28  ;;  %v2585_v36 = vmul.f32 %v8401_v61, %v10938_v32  ;;  %v2589_v26 = vmul.f32 %v8401_v61, %v10943_v5  ;;  %v2593_v39 = vmul.f32 %v8401_v61, %v10948_v63  ;;  %v1204_v3 = vpop.f32.mrb[13].mxu1 }
 0x1db   :  { %v2580_v60 = vmul.f32 %v10952_v38, %v1204_v3  ;;  %v2584_v40 = vmul.f32 %v10957_v7, %v1204_v3  ;;  %v2588_v34 = vmul.f32 %v10962_v9, %v1204_v3  ;;  %v2592_v21 = vmul.f32 %v10967_v11, %v1204_v3 }
 0x1dc   :  { %v8387_v41 = vpop.f32.mrb[6].mxu0  ;;  %v11010_v61 = vsel %vm10893_vm7, 1.0, %v13415_v10  ;;  %v11015_v3 = vsel %vm13595_vm9, 1.0, %v13415_v10 }
 0x1dd   :  { %13594 = vst [vmem:[#allocation25_spill] sm:$0xff] %v11010_v61  ;;  %13596 = vst [vmem:[#allocation26_spill] sm:$0xff] %v11015_v3  ;;  %v8404_v52 = vpop.f32.mrb[14].mxu1  ;;  %v1119_v11 = vpop.f32.mrb[7].mxu0  ;;  %v11017_v44 = vpack.c.bf16 %v2581_v37, %v2580_v60  ;;  %v11019_v9 = vpack.c.bf16 %v2585_v36, %v2584_v40  ;;  %v11021_v7 = vpack.c.bf16 %v2589_v26, %v2588_v34 }
 0x1de   :  { %v11023_v45 = vpack.c.bf16 %v2593_v39, %v2592_v21  ;;  %v2583_v38 = vmul.f32 %v8404_v52, %v10972_v53  ;;  %v2587_v47 = vmul.f32 %v8404_v52, %v10977_v13  ;;  %v2591_v63 = vmul.f32 %v8404_v52, %v10982_v14  ;;  %v1214_v10 = vpop.f32.mrb[15].mxu1  ;;  %1223 = vxpose.xlu0.b32.start [1/4] (short) (narrow) %v1119_v11, 32 }
 0x1df   :  { %13597 = vst [vmem:[#allocation27_spill] sm:$0xff] %v11017_v44  ;;  %13598 = vst [vmem:[#allocation28_spill] sm:$0xff] %v11019_v9  ;;  %v2595_v48 = vmul.f32 %v8404_v52, %v10987_v15  ;;  %v2582_v5 = vmul.f32 %v11000_v20, %v1214_v10  ;;  %v2586_v60 = vmul.f32 %v11005_v29, %v1214_v10  ;;  %v11042_v52 = vshra.s32 %v10599_v8, 5 }
 0x1e0   :  { %13599 = vst [vmem:[#allocation29_spill] sm:$0xff] %v11021_v7  ;;  %13600 = vst [vmem:[#allocation30_spill] sm:$0xff] %v11023_v45  ;;  %v2590_v37 = vmul.f32 %v11010_v61, %v1214_v10  ;;  %v2594_v26 = vmul.f32 %v11015_v3, %v1214_v10  ;;  %v8390_v21 = vpop.f32.mrb[8].mxu0  ;;  %v13605_v10 = vmov 0.0   ;;  %v777_v61 = vshra.s32 %v10663_v59, 3 }
 0x1e1   :  { %v1129_v34 = vpop.f32.mrb[9].mxu0  ;;  %v11033_v36 = vpack.c.bf16 %v2583_v38, %v2582_v5  ;;  %v11035_v39 = vpack.c.bf16 %v2587_v47, %v2586_v60  ;;  %vm870_vm10 = vcmp.eq.s32.totalorder %v10649_v31, %v11042_v52  ;;  %v10540_v5 = vmov 0  }
 0x1e2   :  { %v11037_v40 = vpack.c.bf16 %v2591_v63, %v2590_v37  ;;  %v11039_v14 = vpack.c.bf16 %v2595_v48, %v2594_v26  ;;  %1224 = vxpose.xlu0.b32.cont [2/4] (short) (narrow) %v8387_v41, 32  ;;  %v11047_v11 = vsel %vm870_vm10, 1.0, %v13605_v10  ;;  %10364 = vset.pattern.permute.xlu1 %v10540_v5  ;;  %vm782_vm1 = vcmp.eq.s32.totalorder %v777_v61, %v11042_v52 }
 0x1e3   :  { %13601 = vst [vmem:[#allocation31_spill] sm:$0xff] %v11033_v36  ;;  %13602 = vst [vmem:[#allocation32_spill] sm:$0xff] %v11035_v39  ;;  %8419 = vmatprep.subr.msk.mxu1 %vm13425_vm11, %v11047_v11 }
 0x1e4   :  { %13603 = vst [vmem:[#allocation33_spill] sm:$0xff] %v11037_v40  ;;  %13604 = vst [vmem:[#allocation34_spill] sm:$0xff] %v11039_v14  ;;  %8420 = vmatpush3.msk.msra.mxu1 %vm13425_vm11, %v11047_v11 }
 0x1e5   :  { %13606 = vst [vmem:[#allocation35_spill] sm:$0xff] %v11047_v11  ;;  %8441 = vmatprep.subr.msk.mxu1 %vm13425_vm11, %v11047_v11 }
 0x1e6   :  { %1225 = vxpose.xlu0.b32.cont [3/4] (short) (narrow) %v1129_v34, 32 }
 0x1ea   :  { %1226 = vxpose.xlu0.b32.end [4/4] (short) (narrow) %v8390_v21, 32 }
 0x213   :  { %10363 = vset.pattern.permute.xlu0 %v10540_v5  ;;  %v776_v5 = vshra.s32 %v10649_v31, 3 }
 0x215   :  { %vm781_vm15 = vcmp.eq.s32.totalorder %v776_v5, %v11042_v52 }
 0x216   :  { %v11132_v20 = vsel %vm781_vm15, 1.0, %v13605_v10 }
 0x217   :  { %13607 = vst [vmem:[#allocation36_spill] sm:$0xff] %v11132_v20 }
 0x25e   :  { %v11055_v63 = vpop.trf.xlu0 }
 0x25f   :  { %1259 = vrot.lane.b32.xlu1 %v11055_v63, %s10541_s11  ;;  %1283 = vrot.lane.b32.xlu0 %v11055_v63, %s10542_s12 }
 0x262   :  { %v11063_v38 = vpop.trf.xlu0 }
 0x263   :  { %1271 = vrot.lane.b32.xlu1 %v11055_v63, %s10543_s13 }
 0x266   :  { %v11071_v41 = vpop.trf.xlu0 }
 0x267   :  { %1261 = vrot.lane.b32.xlu1 %v11063_v38, %s10541_s11 }
 0x26a   :  { %v11079_v47 = vpop.trf.xlu0 }
 0x26b   :  { %1273 = vrot.lane.b32.xlu1 %v11063_v38, %s10543_s13 }
 0x26f   :  { %1285 = vrot.lane.b32.xlu1 %v11063_v38, %s10542_s12 }
 0x273   :  { %1263 = vrot.lane.b32.xlu1 %v11071_v41, %s10541_s11 }
 0x277   :  { %1275 = vrot.lane.b32.xlu1 %v11071_v41, %s10543_s13 }
 0x27b   :  { %1287 = vrot.lane.b32.xlu1 %v11071_v41, %s10542_s12 }
 0x27f   :  { %1265 = vrot.lane.b32.xlu1 %v11079_v47, %s10541_s11 }
 0x283   :  { %1277 = vrot.lane.b32.xlu1 %v11079_v47, %s10543_s13 }
 0x287   :  { %1289 = vrot.lane.b32.xlu1 %v11079_v47, %s10542_s12 }
 0x2a6   :  { %v8415_v48 = vpop.f32.mrb[10].mxu0 }
 0x2a7   :  { %1601 = vrot.lane.b32.xlu1 %v8415_v48, %s10544_s14  ;;  %v1389_v60 = vpop.f32.mrb[11].mxu0 }
 0x2a8   :  { %1708 = vrot.lane.b32.xlu0 %v1389_v60, %s10545_s15  ;;  %8421 = vmatprep.mubr.msk.f32.mxu1 %vm13486_vm12, %v1389_v60 }
 0x2a9   :  { %8422 = vmatmul.mubr.msk.f32.vlgmr.msra.gmra.mrb[16].mxu1 %vm13486_vm12, %v8415_v48 }
 0x2aa   :  { %v8418_v37 = vpop.f32.mrb[12].mxu0  ;;  %8442 = vmatpush3.msk.msra.mxu1 %vm13425_vm11, %v11047_v11 }
 0x2ab   :  { %1710 = vrot.lane.b32.xlu1 %v8415_v48, %s10545_s15  ;;  %v1399_v26 = vpop.f32.mrb[13].mxu0  ;;  %8457 = vmatprep.subr.msk.mxu1 %vm13425_vm11, %v11047_v11 }
 0x2ac   :  { %1817 = vrot.lane.b32.xlu0 %v1389_v60, %s10546_s16  ;;  %8424 = vmatprep.mubr.msk.f32.mxu1 %vm13486_vm12, %v1399_v26 }
 0x2ad   :  { %8425 = vmatmul.mubr.msk.f32.gmra.mrb[18].mxu1 %vm13486_vm12, %v8418_v37 }
 0x2af   :  { %1819 = vrot.lane.b32.xlu1 %v8415_v48, %s10546_s16 }
 0x2b0   :  { %1926 = vrot.lane.b32.xlu0 %v1389_v60, %s10547_s17 }
 0x2b3   :  { %1599 = vrot.lane.b32.xlu1 %v1389_v60, %s10544_s14 }
 0x2b4   :  { %2035 = vrot.lane.b32.xlu0 %v1389_v60, %s10548_s18 }
 0x2b7   :  { %1605 = vrot.lane.b32.xlu1 %v8418_v37, %s10544_s14 }
 0x2b8   :  { %2144 = vrot.lane.b32.xlu0 %v1389_v60, %s10549_s19 }
 0x2bb   :  { %1714 = vrot.lane.b32.xlu1 %v8418_v37, %s10545_s15 }
 0x2bc   :  { %1712 = vrot.lane.b32.xlu0 %v1399_v26, %s10545_s15 }
 0x2bf   :  { %1823 = vrot.lane.b32.xlu1 %v8418_v37, %s10546_s16 }
 0x2c0   :  { %1821 = vrot.lane.b32.xlu0 %v1399_v26, %s10546_s16 }
 0x2c3   :  { %1603 = vrot.lane.b32.xlu1 %v1399_v26, %s10544_s14 }
 0x2c4   :  { %1930 = vrot.lane.b32.xlu0 %v1399_v26, %s10547_s17 }
 0x2c7   :  { %1928 = vrot.lane.b32.xlu1 %v8415_v48, %s10547_s17 }
 0x2c8   :  { %2039 = vrot.lane.b32.xlu0 %v1399_v26, %s10548_s18 }
 0x2cb   :  { %2037 = vrot.lane.b32.xlu1 %v8415_v48, %s10548_s18 }
 0x2cc   :  { %2253 = vrot.lane.b32.xlu0 %v1389_v60, %s10550_s20 }
 0x2cf   :  { %1932 = vrot.lane.b32.xlu1 %v8418_v37, %s10547_s17 }
 0x2d0   :  { %2148 = vrot.lane.b32.xlu0 %v1399_v26, %s10549_s19 }
 0x2d1   :  { %v1260_v21 = vpop.permute.xlu1 %1259  ;;  %v1284_v29 = vpop.permute.xlu0 %1283 }
 0x2d2   :  { %v1295_v60 = vsel %vm13484_vm0, %v11055_v63, %v1260_v21 }
 0x2d3   :  { %2041 = vrot.lane.b32.xlu1 %v8418_v37, %s10548_s18 }
 0x2d4   :  { %2257 = vrot.lane.b32.xlu0 %v1399_v26, %s10550_s20 }
 0x2d5   :  { %v1272_v34 = vpop.permute.xlu1 %1271 }
 0x2d6   :  { %v1299_v26 = vsel %vm13483_vm13, %v1295_v60, %v1272_v34 }
 0x2d7   :  { %2146 = vrot.lane.b32.xlu1 %v8415_v48, %s10549_s19 }
 0x2d8   :  { %470 = vperm.xlu0 %10363, %v10905_v49  }
 0x2d9   :  { %v1262_v3 = vpop.permute.xlu1 %1261 }
 0x2da   :  { %v1296_v63 = vsel %vm13484_vm0, %v11063_v38, %v1262_v3  ;;  %v778_v38 = vshra.s32 %v10674_v1, 3 }
 0x2db   :  { %2255 = vrot.lane.b32.xlu1 %v8415_v48, %s10550_s20  ;;  %v1303_v48 = vsel %vm13482_vm14, %v1299_v26, %v1284_v29 }
 0x2dc   :  { %485 = vperm.xlu0 %10363, %v10909_v51   ;;  %v11138_v51 = vsel %vm782_vm1, 1.0, %v13605_v10  ;;  %v1307_v61 = vmul.f32 %v11132_v20, %v1303_v48  ;;  %vm783_vm2 = vcmp.eq.s32.totalorder %v778_v38, %v11042_v52 }
 0x2dd   :  { %v1274_v49 = vpop.permute.xlu1 %1273  ;;  %13608 = vst [vmem:[#allocation37_spill] sm:$0xff] %v11138_v51 }
 0x2de   :  { %v1300_v21 = vsel %vm13483_vm13, %v1296_v63, %v1274_v49  ;;  %v779_v49 = vshra.s32 %v10669_v0, 3 }
 0x2df   :  { %2150 = vrot.lane.b32.xlu1 %v8418_v37, %s10549_s19 }
 0x2e0   :  { %vm784_vm3 = vcmp.eq.s32.totalorder %v779_v49, %v11042_v52 }
 0x2e1   :  { %v1286_v34 = vpop.permute.xlu1 %1285 }
 0x2e2   :  { %v1304_v5 = vsel %vm13482_vm14, %v1300_v21, %v1286_v34  ;;  %v11161_v21 = vsel %vm784_vm3, 1.0, %v13605_v10 }
 0x2e3   :  { %v1308_v60 = vmul.f32 %v11138_v51, %v1304_v5  ;;  %2259 = vrot.lane.b32.xlu1 %v8418_v37, %s10550_s20  ;;  %13610 = vst [vmem:[#allocation39_spill] sm:$0xff] %v11161_v21 }
 0x2e5   :  { %v1264_v15 = vpop.permute.xlu1 %1263  ;;  %v9575_v13 = vpack.c.bf16 %v1308_v60, %v1307_v61 }
 0x2e6   :  { %v1297_v37 = vsel %vm13484_vm0, %v11071_v41, %v1264_v15 }
 0x2e7   :  { %9576 = vmatprep.subr.bf16.mxu0 %v9575_v13  ;;  %475 = vperm.xlu1 %10364, %v10903_v30  }
 0x2e8   :  { %9578 = vmatpush3.bf16.msra.mxu0 %v9575_v13  ;;  %v11155_v13 = vsel %vm783_vm2, 1.0, %v13605_v10 }
 0x2e9   :  { %v1276_v29 = vpop.permute.xlu1 %1275  ;;  %13609 = vst [vmem:[#allocation38_spill] sm:$0xff] %v11155_v13 }
 0x2ea   :  { %v1301_v30 = vsel %vm13483_vm13, %v1297_v37, %v1276_v29 }
 0x2eb   :  { %480 = vperm.xlu1 %10364, %v10912_v27  }
 0x2ed   :  { %v1288_v3 = vpop.permute.xlu1 %1287 }
 0x2ee   :  { %v1305_v27 = vsel %vm13482_vm14, %v1301_v30, %v1288_v3 }
 0x2ef   :  { %v1309_v15 = vmul.f32 %v11155_v13, %v1305_v27 }
 0x2f1   :  { %v1266_v26 = vpop.permute.xlu1 %1265 }
 0x2f2   :  { %v1298_v63 = vsel %vm13484_vm0, %v11079_v47, %v1266_v26 }
 0x2f5   :  { %v1278_v48 = vpop.permute.xlu1 %1277 }
 0x2f6   :  { %v1302_v34 = vsel %vm13483_vm13, %v1298_v63, %v1278_v48 }
 0x2f9   :  { %v1290_v5 = vpop.permute.xlu1 %1289 }
 0x2fa   :  { %v1306_v52 = vsel %vm13482_vm14, %v1302_v34, %v1290_v5  ;;  %v13611_v5 = vshra.s32 %v10663_v59, 5 }
 0x2fb   :  { %v1310_v41 = vmul.f32 %v11161_v21, %v1306_v52  ;;  %v13612_v52 = vshra.s32 %v10649_v31, 5 }
 0x2fc   :  { %vm874_vm4 = vcmp.eq.s32.totalorder %v13611_v5, %v10599_v8  ;;  %v13633_v5 = vshra.s32 %v10781_v58, 5 }
 0x2fd   :  { %v9579_v61 = vpack.c.bf16 %v1310_v41, %v1309_v15  ;;  %vm873_vm5 = vcmp.eq.s32.totalorder %v13612_v52, %v10599_v8  ;;  %v13613_v41 = vmov 0  ;;  %v13634_v52 = vmov 0 }
 0x2fe   :  { %vm11204_vm6 = vmpackc.low %vm874_vm4, %vm873_vm5 }
 0x2ff   :  { %9580 = vmatprep.subr.bf16.mxu0 %v9579_v61  ;;  %v13614_v41 = vsel %vm11204_vm6, 4294967295, %v13613_v41 }
 0x300   :  { %9582 = vmatpush3.bf16.msra.mxu0 %v9579_v61  ;;  %13615 = vst [vmem:[#allocation40_spill] sm:$0xff] %v13614_v41 }
 0x301   :  { %8449 = vmatprep.subr.msk.mxu0 %vm13425_vm11, %v11047_v11 }
 0x303   :  { %8436 = vmatmul.mubr.msk.f32.vlgmr.msra.gmra.mrb[14].mxu0 %vm13484_vm0, %v10907_v50 }
 0x304   :  { %8438 = vmatprep.mubr.msk.f32.mxu0 %vm13484_vm0, %v10924_v62  ;;  %8450 = vmatpush3.msk.msra.mxu0 %vm13425_vm11, %v11047_v11 }
 0x305   :  { %8465 = vmatprep.subr.msk.mxu0 %vm13425_vm11, %v11047_v11 }
 0x307   :  { %8439 = vmatmul.mubr.msk.f32.gmra.mrb[16].mxu0 %vm13484_vm0, %v10918_v42 }
 0x319   :  { %v1602_v47 = vpop.permute.xlu1 %1601 }
 0x31a   :  { %v1709_v60 = vpop.permute.xlu0 %1708 }
 0x31b   :  { %8451 = vmatprep.mubr.msk.f32.mxu0 %vm13486_vm12, %v1709_v60  ;;  %v13616_v60 = vmov 1.0|1.0  }
 0x31d   :  { %v1711_v29 = vpop.permute.xlu1 %1710 }
 0x31e   :  { %v1818_v3 = vpop.permute.xlu0 %1817  ;;  %8452 = vmatmul.mubr.msk.f32.vlgmr.msra.gmra.mrb[18].mxu0 %vm13486_vm12, %v1711_v29 }
 0x31f   :  { %8466 = vmatpush3.msk.msra.mxu0 %vm13425_vm11, %v11047_v11 }
 0x320   :  { %8481 = vmatprep.subr.msk.mxu0 %vm13425_vm11, %v11047_v11 }
 0x321   :  { %v1820_v62 = vpop.permute.xlu1 %1819 }
 0x322   :  { %v1927_v50 = vpop.permute.xlu0 %1926 }
 0x325   :  { %v1600_v38 = vpop.permute.xlu1 %1599 }
 0x326   :  { %v2036_v26 = vpop.permute.xlu0 %2035  ;;  %8443 = vmatprep.mubr.msk.f32.mxu1 %vm13486_vm12, %v1600_v38  ;;  %v13618_v38 = vshra.s32 %v10674_v1, 5 }
 0x327   :  { %8444 = vmatmul.mubr.msk.f32.vlgmr.msra.gmra.mrb[20].mxu1 %vm13486_vm12, %v1602_v47 }
 0x328   :  { %8458 = vmatpush3.msk.msra.mxu1 %vm13425_vm11, %v11047_v11  ;;  %vm875_vm8 = vcmp.eq.s32.totalorder %v13618_v38, %v10599_v8 }
 0x329   :  { %v1606_v42 = vpop.permute.xlu1 %1605  ;;  %8473 = vmatprep.subr.msk.mxu1 %vm13425_vm11, %v11047_v11 }
 0x32a   :  { %v2145_v49 = vpop.permute.xlu0 %2144 }
 0x32d   :  { %v1715_v48 = vpop.permute.xlu1 %1714 }
 0x32e   :  { %v1713_v37 = vpop.permute.xlu0 %1712 }
 0x32f   :  { %8454 = vmatprep.mubr.msk.f32.mxu0 %vm13486_vm12, %v1713_v37  ;;  %v13623_v37 = vshra.s32 %v10778_v57, 5  ;;  %v13627_v57 = vshra.s32 %v10830_v17, 5  ;;  %v13629_v17 = vmov 0 }
 0x330   :  { %8455 = vmatmul.mubr.msk.f32.gmra.mrb[20].mxu0 %vm13486_vm12, %v1715_v48  ;;  %v13622_v48 = vshra.s32 %v10769_v54, 5 }
 0x331   :  { %v1824_v30 = vpop.permute.xlu1 %1823  ;;  %8467 = vmatprep.mubr.msk.f32.mxu0 %vm13486_vm12, %v1927_v50  ;;  %v13617_v50 = vshra.s32 %v10669_v0, 5  ;;  %vm877_vm15 = vcmp.eq.s32.totalorder %v13623_v37, %v10599_v8  ;;  %vm880_vm2 = vcmp.eq.s32.totalorder %v13627_v57, %v10599_v8 }
 0x332   :  { %v1822_v27 = vpop.permute.xlu0 %1821  ;;  %vm878_vm10 = vcmp.eq.s32.totalorder %v13622_v48, %v10599_v8  ;;  %v13649_v48 = vshra.s32 %v10846_v25, 5  ;;  %v497_v25 = vmul.f32 2.0, %v10680_v4 }
 0x333   :  { %vm876_vm7 = vcmp.eq.s32.totalorder %v13617_v50, %v10599_v8  ;;  %vm11256_vm1 = vmpackc.low %vm878_vm10, %vm877_vm15 }
 0x334   :  { %vm11238_vm9 = vmpackc.low %vm876_vm7, %vm875_vm8  ;;  %vm881_vm7 = vcmp.eq.s32.totalorder %v13633_v5, %v10599_v8 }
 0x335   :  { %v1604_v63 = vpop.permute.xlu1 %1603 }
 0x336   :  { %v1931_v34 = vpop.permute.xlu0 %1930  ;;  %8446 = vmatprep.mubr.msk.f32.mxu1 %vm13486_vm12, %v1604_v63 }
 0x337   :  { %8447 = vmatmul.mubr.msk.f32.gmra.mrb[22].mxu1 %vm13486_vm12, %v1606_v42  ;;  %v13619_v42 = vmov 0 }
 0x338   :  { %8459 = vmatprep.mubr.msk.f32.mxu1 %vm13486_vm12, %v1818_v3  ;;  %v13620_v42 = vsel %vm11238_vm9, 4294967295, %v13619_v42 }
 0x339   :  { %v1929_v15 = vpop.permute.xlu1 %1928  ;;  %13621 = vst [vmem:[#allocation41_spill] sm:$0xff] %v13620_v42 }
 0x33a   :  { %8468 = vmatmul.mubr.msk.f32.vlgmr.msra.gmra.mrb[22].mxu0 %vm13486_vm12, %v1929_v15  ;;  %v2040_v61 = vpop.permute.xlu0 %2039  ;;  %v13637_v15 = vsub.s32 0, %v10649_v31 }
 0x33b   :  { %8460 = vmatmul.mubr.msk.f32.vlgmr.msra.gmra.mrb[24].mxu1 %vm13486_vm12, %v1820_v62  ;;  %8470 = vmatprep.mubr.msk.f32.mxu0 %vm13486_vm12, %v1931_v34  ;;  %v13632_v34 = vshra.s32 %v10772_v55, 5 }
 0x33c   :  { %8462 = vmatprep.mubr.msk.f32.mxu1 %vm13486_vm12, %v1822_v27  ;;  %8474 = vmatpush3.msk.msra.mxu1 %vm13425_vm11, %v11047_v11  ;;  %v13628_v27 = vshra.s32 %v10840_v22, 5  ;;  %v491_v58 = vrot.slane %v10922_v12, %v13637_v15  ;;  %v13640_v12 = vmov 0 }
 0x33d   :  { %v2038_v47 = vpop.permute.xlu1 %2037  ;;  %8482 = vmatpush3.msk.msra.mxu0 %vm13425_vm11, %v11047_v11  ;;  %8489 = vmatprep.subr.msk.mxu1 %vm13425_vm11, %v11047_v11  ;;  %vm882_vm5 = vcmp.eq.s32.totalorder %v13632_v34, %v10599_v8  ;;  %v498_v34 = vmul.f32 2.0, %v10700_v24 }
 0x33e   :  { %9584 = vmatprep.subr.msk.bf16.mxu0 %vm11204_vm6, %v13616_v60  ;;  %v2254_v3 = vpop.permute.xlu0 %2253  ;;  %vm879_vm3 = vcmp.eq.s32.totalorder %v13628_v27, %v10599_v8  ;;  %vm11296_vm8 = vmpackc.low %vm882_vm5, %vm881_vm7 }
 0x33f   :  { %8463 = vmatmul.mubr.msk.f32.gmra.mrb[26].mxu1 %vm13486_vm12, %v1824_v30  ;;  %v13624_v30 = vmov 0  ;;  %vm11276_vm4 = vmpackc.low %vm880_vm2, %vm879_vm3  ;;  %v13635_v52 = vsel %vm11296_vm8, 4294967295, %v13634_v52 }
 0x340   :  { %8475 = vmatprep.mubr.msk.f32.mxu1 %vm13486_vm12, %v2036_v26  ;;  %v13625_v30 = vsel %vm11256_vm1, 4294967295, %v13624_v30  ;;  %v13630_v17 = vsel %vm11276_vm4, 4294967295, %v13629_v17  ;;  %13636 = vst [vmem:[#allocation44_spill] sm:$0xff] %v13635_v52 }
 0x341   :  { %v1933_v29 = vpop.permute.xlu1 %1932  ;;  %13626 = vst [vmem:[#allocation42_spill] sm:$0xff] %v13625_v30  ;;  %13631 = vst [vmem:[#allocation43_spill] sm:$0xff] %v13630_v17 }
 0x342   :  { %8471 = vmatmul.mubr.msk.f32.gmra.mrb[24].mxu0 %vm13486_vm12, %v1933_v29  ;;  %v2149_v26 = vpop.permute.xlu0 %2148 }
 0x343   :  { %8476 = vmatmul.mubr.msk.f32.vlgmr.msra.gmra.mrb[28].mxu1 %vm13486_vm12, %v2038_v47  ;;  %8483 = vmatprep.mubr.msk.f32.mxu0 %vm13486_vm12, %v2145_v49  ;;  %v13639_v47 = vshra.s32 %v10843_v23, 5  ;;  %v13644_v23 = vshra.s32 %v10788_v2, 5  ;;  %v13648_v2 = vshra.s32 %v10836_v19, 5 }
 0x344   :  { %8478 = vmatprep.mubr.msk.f32.mxu1 %vm13486_vm12, %v2040_v61  ;;  %8490 = vmatpush3.msk.msra.mxu1 %vm13425_vm11, %v11047_v11  ;;  %v13638_v61 = vshra.s32 %v10833_v18, 5  ;;  %v13643_v18 = vshra.s32 %v10775_v56, 5  ;;  %v13645_v56 = vmov 0 }
 0x345   :  { %v2042_v62 = vpop.permute.xlu1 %2041  ;;  %8535 = vmatprep.subr.msk.mxu1 %vm13425_vm11, %v11047_v11  ;;  %vm883_vm15 = vcmp.eq.s32.totalorder %v13639_v47, %v10599_v8  ;;  %vm885_vm5 = vcmp.eq.s32.totalorder %v13644_v23, %v10599_v8 }
 0x346   :  { %v2258_v63 = vpop.permute.xlu0 %2257  ;;  %vm884_vm10 = vcmp.eq.s32.totalorder %v13638_v61, %v10599_v8  ;;  %vm886_vm3 = vcmp.eq.s32.totalorder %v13643_v18, %v10599_v8 }
 0x347   :  { %8479 = vmatmul.mubr.msk.f32.gmra.mrb[30].mxu1 %vm13486_vm12, %v2042_v62  ;;  %vm11317_vm2 = vmpackc.low %vm884_vm10, %vm883_vm15  ;;  %vm888_vm10 = vcmp.eq.s32.totalorder %v13648_v2, %v10599_v8  ;;  %vm887_vm15 = vcmp.eq.s32.totalorder %v13649_v48, %v10599_v8 }
 0x348   :  { %8491 = vmatprep.mubr.msk.f32.mxu1 %vm13486_vm12, %v2254_v3  ;;  %v496_v3 = vmul.f32 2.0, %v10685_v6  ;;  %v13641_v12 = vsel %vm11317_vm2, 4294967295, %v13640_v12  ;;  %v499_v6 = vmul.f32 2.0, %v10690_v16  ;;  %vm11334_vm7 = vmpackc.low %vm886_vm3, %vm885_vm5 }
 0x349   :  { %v2147_v49 = vpop.permute.xlu1 %2146  ;;  %13642 = vst [vmem:[#allocation45_spill] sm:$0xff] %v13641_v12  ;;  %v13646_v56 = vsel %vm11334_vm7, 4294967295, %v13645_v56  ;;  %vm11350_vm3 = vmpackc.low %vm888_vm10, %vm887_vm15 }
 0x34a   :  { %8484 = vmatmul.mubr.msk.f32.vlgmr.msra.gmra.mrb[26].mxu0 %vm13486_vm12, %v2147_v49  ;;  %13647 = vst [vmem:[#allocation46_spill] sm:$0xff] %v13646_v56 }
 0x34b   :  { %8486 = vmatprep.mubr.msk.f32.mxu0 %vm13486_vm12, %v2149_v26  ;;  %9586 = vmatpush3.bf16.msk.msra.mxu0 %vm11204_vm6, %v13616_v60 }
 0x34c   :  { %9588 = vmatprep.subr.msk.bf16.mxu0 %vm11238_vm9, %v13616_v60 }
 0x34d   :  { %v2256_v54 = vpop.permute.xlu1 %2255 }
 0x34e   :  { %8492 = vmatmul.mubr.msk.f32.vlgmr.msra.gmra.mrb[32].mxu1 %vm13486_vm12, %v2256_v54  ;;  %v13650_v54 = vmov 0 }
 0x34f   :  { %8494 = vmatprep.mubr.msk.f32.mxu1 %vm13486_vm12, %v2258_v63  ;;  %9590 = vmatpush3.bf16.msk.msra.mxu0 %vm11238_vm9, %v13616_v60  ;;  %v13651_v54 = vsel %vm11350_vm3, 4294967295, %v13650_v54 }
 0x350   :  { %9592 = vmatprep.subr.msk.bf16.mxu0 %vm11256_vm1, %v13616_v60  ;;  %8536 = vmatpush3.msk.msra.mxu1 %vm13425_vm11, %v11047_v11  ;;  %13652 = vst [vmem:[#allocation47_spill] sm:$0xff] %v13651_v54 }
 0x351   :  { %v2151_v22 = vpop.permute.xlu1 %2150  ;;  %9616 = vmatprep.subr.msk.bf16.mxu1 %vm11204_vm6, %v13616_v60 }
 0x352   :  { %8487 = vmatmul.mubr.msk.f32.gmra.mrb[28].mxu0 %vm13486_vm12, %v2151_v22 }
 0x353   :  { %9594 = vmatpush3.bf16.msk.msra.mxu0 %vm11256_vm1, %v13616_v60 }
 0x354   :  { %9596 = vmatprep.subr.msk.bf16.mxu0 %vm11276_vm4, %v13616_v60 }
 0x355   :  { %v2260_v55 = vpop.permute.xlu1 %2259 }
 0x356   :  { %8495 = vmatmul.mubr.msk.f32.gmra.mrb[34].mxu1 %vm13486_vm12, %v2260_v55 }
 0x357   :  { %v471_v29 = vpop.permute.xlu0 %470  ;;  %9598 = vmatpush3.bf16.msk.msra.mxu0 %vm11276_vm4, %v13616_v60 }
 0x358   :  { %v492_v62 = vadd.f32 %v491_v58, %v471_v29  ;;  %9600 = vmatprep.subr.msk.bf16.mxu0 %vm11296_vm8, %v13616_v60 }
 0x35a   :  { %v500_v50 = vsub.f32 %v492_v62, %v496_v3 }
 0x35b   :  { %v486_v38 = vpop.permute.xlu0 %485  ;;  %9602 = vmatpush3.bf16.msk.msra.mxu0 %vm11296_vm8, %v13616_v60 }
 0x35c   :  { %v504_v26 = vmax.f32 %v500_v50, 0.0  ;;  %v495_v49 = vadd.f32 %v491_v58, %v486_v38  ;;  %9604 = vmatprep.subr.msk.bf16.mxu0 %vm11317_vm2, %v13616_v60 }
 0x35e   :  { %v508_v37 = vadd.f32 1e-12, %v504_v26  ;;  %v503_v16 = vsub.f32 %v495_v49, %v499_v6 }
 0x35f   :  { %9606 = vmatpush3.bf16.msk.msra.mxu0 %vm11317_vm2, %v13616_v60 }
 0x360   :  { %10373 = vrsqrt.f32 %v508_v37  ;;  %9608 = vmatprep.subr.msk.bf16.mxu0 %vm11334_vm7, %v13616_v60  ;;  %v507_v61 = vmax.f32 %v503_v16, 0.0  ;;  %vm514_vm5 = vcmp.eq.f32.partialorder %v508_v37, inf  ;;  %v517_v4 = vand.u32 2147483648, %v508_v37 }
 0x361   :  { %vm516_vm10 = vcmp.eq.f32.partialorder %v508_v37, 0.0 }
 0x362   :  { %v511_v23 = vadd.f32 1e-12, %v507_v61 }
 0x363   :  { %9610 = vmatpush3.bf16.msk.msra.mxu0 %vm11334_vm7, %v13616_v60 }
 0x364   :  { %9612 = vmatprep.subr.msk.bf16.mxu0 %vm11350_vm3, %v13616_v60 }
 0x366   :  { %v476_v19 = vpop.permute.xlu1 %475 }
 0x367   :  { %v493_v57 = vadd.f32 %v491_v58, %v476_v19  ;;  %9614 = vmatpush3.bf16.msk.msra.mxu0 %vm11350_vm3, %v13616_v60 }
 0x368   :  { %9648 = vmatprep.subr.msk.bf16.mxu0 %vm11204_vm6, %v13616_v60 }
 0x369   :  { %v501_v27 = vsub.f32 %v493_v57, %v497_v25 }
 0x36a   :  { %v10374_v63 = vpop.eup %10373  ;;  %v481_v22 = vpop.permute.xlu1 %480 }
 0x36b   :  { %v505_v5 = vmax.f32 %v501_v27, 0.0  ;;  %v494_v55 = vadd.f32 %v491_v58, %v481_v22  ;;  %v513_v15 = vmul.f32 %v10374_v63, %v508_v37 }
 0x36d   :  { %v509_v47 = vadd.f32 1e-12, %v505_v5  ;;  %v502_v29 = vsub.f32 %v494_v55, %v498_v34  ;;  %v515_v3 = vsel %vm514_vm5, %v508_v37, %v513_v15  ;;  %v538_v5 = vand.u32 2147483648, %v511_v23 }
 0x36e   :  { %v518_v62 = vsel %vm516_vm10, %v517_v4, %v515_v3 }
 0x36f   :  { %v506_v18 = vmax.f32 %v502_v29, 0.0  ;;  %544 = vrot.lane.b32.xlu1 %v518_v62, %s10541_s11  ;;  %10375 = vrsqrt.f32 %v509_v47  ;;  %vm521_vm15 = vcmp.eq.f32.partialorder %v509_v47, inf  ;;  %v524_v38 = vand.u32 2147483648, %v509_v47 }
 0x370   :  { %vm523_vm5 = vcmp.eq.f32.partialorder %v509_v47, 0.0 }
 0x371   :  { %v510_v50 = vadd.f32 1e-12, %v506_v18 }
 0x373   :  { %556 = vrot.lane.b32.xlu1 %v518_v62, %s10543_s13  ;;  %10377 = vrsqrt.f32 %v510_v50  ;;  %vm528_vm10 = vcmp.eq.f32.partialorder %v510_v50, inf  ;;  %v531_v19 = vand.u32 2147483648, %v510_v50  ;;  %vm530_vm11 = vcmp.eq.f32.partialorder %v510_v50, 0.0 }
 0x374   :  { %10379 = vrsqrt.f32 %v511_v23 }
 0x377   :  { %568 = vrot.lane.b32.xlu1 %v518_v62, %s10542_s12 }
 0x379   :  { %v10376_v24 = vpop.eup %10375 }
 0x37a   :  { %v520_v58 = vmul.f32 %v10376_v24, %v509_v47 }
 0x37c   :  { %v11371_v6 = vpop.f32.mrb[16].mxu1  ;;  %v522_v26 = vsel %vm521_vm15, %v509_v47, %v520_v58  ;;  %vm535_vm15 = vcmp.eq.f32.partialorder %v511_v23, inf }
 0x37d   :  { %v10378_v49 = vpop.eup %10377  ;;  %v11373_v2 = vpop.f32.mrb[17].mxu1  ;;  %v11375_v48 = vsel %vm523_vm5, %v524_v38, %v522_v26  ;;  %vm537_vm5 = vcmp.eq.f32.partialorder %v511_v23, 0.0 }
 0x37e   :  { %546 = vrot.lane.b32.xlu0 %v11375_v48, %s10541_s11  ;;  %v527_v37 = vmul.f32 %v10378_v49, %v510_v50  ;;  %v10380_v16 = vpop.eup %10379 }
 0x37f   :  { %v534_v22 = vmul.f32 %v10380_v16, %v511_v23 }
 0x380   :  { %v11379_v25 = vpop.f32.mrb[18].mxu1  ;;  %v529_v57 = vsel %vm528_vm10, %v510_v50, %v527_v37 }
 0x381   :  { %v11381_v27 = vpop.f32.mrb[19].mxu1  ;;  %v11383_v63 = vsel %vm530_vm11, %v531_v19, %v529_v57  ;;  %v536_v34 = vsel %vm535_vm15, %v511_v23, %v534_v22 }
 0x382   :  { %558 = vrot.lane.b32.xlu0 %v11375_v48, %s10543_s13  ;;  %548 = vrot.lane.b32.xlu1 %v11383_v63, %s10541_s11  ;;  %v11393_v55 = vsel %vm537_vm5, %v538_v5, %v536_v34 }
 0x386   :  { %570 = vrot.lane.b32.xlu0 %v11375_v48, %s10542_s12  ;;  %560 = vrot.lane.b32.xlu1 %v11383_v63, %s10543_s13 }
 0x38a   :  { %550 = vrot.lane.b32.xlu0 %v11393_v55, %s10541_s11  ;;  %572 = vrot.lane.b32.xlu1 %v11383_v63, %s10542_s12 }
 0x38e   :  { %562 = vrot.lane.b32.xlu0 %v11393_v55, %s10543_s13 }
 0x392   :  { %574 = vrot.lane.b32.xlu0 %v11393_v55, %s10542_s12 }
 0x3d6   :  { %v11403_v15 = vpop.f32.mrb[14].mxu0 }
 0x3d7   :  { %v11405_v61 = vpop.f32.mrb[15].mxu0 }
 0x3da   :  { %v11407_v4 = vpop.f32.mrb[16].mxu0 }
 0x3db   :  { %v11409_v47 = vpop.f32.mrb[17].mxu0 }
 0x3e1   :  { %v545_v29 = vpop.permute.xlu1 %544 }
 0x3e2   :  { %v580_v18 = vsel %vm13484_vm0, %v518_v62, %v545_v29 }
 0x3e5   :  { %v557_v3 = vpop.permute.xlu1 %556 }
 0x3e6   :  { %v585_v23 = vsel %vm13483_vm13, %v580_v18, %v557_v3 }
 0x3e9   :  { %v569_v50 = vpop.permute.xlu1 %568 }
 0x3ea   :  { %v11414_v24 = vsel %vm13482_vm14, %v585_v23, %v569_v50 }
 0x3eb   :  { %v620_v58 = vmul.f32 %v11414_v24, %v11414_v24  ;;  %v7087_v38 = vadd.f32 -0.2857143, %v11414_v24  ;;  %v7091_v26 = vadd.f32 -0.5714286, %v11414_v24  ;;  %v7095_v49 = vadd.f32 -0.85714287, %v11414_v24 }
 0x3ec   :  { %v7099_v37 = vadd.f32 -1.1428572, %v11414_v24  ;;  %v7103_v16 = vadd.f32 -1.4285715, %v11414_v24  ;;  %v7107_v62 = vadd.f32 -1.7142857, %v11414_v24 }
 0x3ed   :  { %v624_v19 = vmul.f32 -8.0, %v620_v58  ;;  %v640_v57 = vmul.f32 %v7087_v38, %v7087_v38  ;;  %v660_v22 = vmul.f32 %v7091_v26, %v7091_v26  ;;  %v680_v34 = vmul.f32 %v7095_v49, %v7095_v49 }
 0x3ee   :  { %v700_v5 = vmul.f32 %v7099_v37, %v7099_v37  ;;  %v720_v29 = vmul.f32 %v7103_v16, %v7103_v16  ;;  %v7111_v3 = vadd.f32 -2.0, %v11414_v24  ;;  %v740_v10 = vmul.f32 %v7107_v62, %v7107_v62 }
 0x3ef   :  { %v644_v18 = vmul.f32 -8.0, %v640_v57  ;;  %v664_v23 = vmul.f32 -8.0, %v660_v22  ;;  %v684_v50 = vmul.f32 -8.0, %v680_v34  ;;  %v628_v21 = vmul.f32 1.442695, %v624_v19 }
 0x3f0   :  { %v704_v13 = vmul.f32 -8.0, %v700_v5  ;;  %v547_v51 = vpop.permute.xlu0 %546  ;;  %v724_v53 = vmul.f32 -8.0, %v720_v29  ;;  %v760_v32 = vmul.f32 %v7111_v3, %v7111_v3  ;;  %v744_v58 = vmul.f32 -8.0, %v740_v10 }
 0x3f1   :  { %v648_v20 = vmul.f32 1.442695, %v644_v18  ;;  %v668_v28 = vmul.f32 1.442695, %v664_v23  ;;  %v688_v11 = vmul.f32 1.442695, %v684_v50  ;;  %10381 = vpow2.f32 %v628_v21 }
 0x3f2   :  { %v11425_v38 = vpop.f32.mrb[18].mxu0  ;;  %v11428_v26 = vand.u32 31, %v10599_v8  ;;  %v708_v49 = vmul.f32 1.442695, %v704_v13  ;;  %v728_v62 = vmul.f32 1.442695, %v724_v53  ;;  %v581_v10 = vsel %vm13484_vm0, %v11375_v48, %v547_v51 }
 0x3f3   :  { %v11430_v37 = vpop.f32.mrb[19].mxu0  ;;  %10383 = vpow2.f32 %v648_v20  ;;  %v764_v19 = vmul.f32 -8.0, %v760_v32  ;;  %v748_v22 = vmul.f32 1.442695, %v744_v58  ;;  %vm595_vm5 = vcmp.lt.f32.partialorder %v11414_v24, 2.0 }
 0x3f4   :  { %v559_v16 = vpop.permute.xlu0 %558  ;;  %v549_v57 = vpop.permute.xlu1 %548  ;;  %10385 = vpow2.f32 %v668_v28  ;;  %v11435_v34 = vshra.s32 %v11428_v26, 4  ;;  %vm600_vm11 = vcmp.ne.s32.totalorder %v10663_v59, %v11428_v26  ;;  %vm599_vm10 = vcmp.ne.s32.totalorder %v10649_v31, %v11428_v26 }
 0x3f5   :  { %10387 = vpow2.f32 %v688_v11  ;;  %v586_v21 = vsel %vm13483_vm13, %v581_v10, %v559_v16  ;;  %v768_v32 = vmul.f32 1.442695, %v764_v19  ;;  %v582_v28 = vsel %vm13484_vm0, %v11383_v63, %v549_v57 }
 0x3f6   :  { %10389 = vpow2.f32 %v708_v49 }
 0x3f7   :  { %10391 = vpow2.f32 %v728_v62 }
 0x3f8   :  { %v571_v13 = vpop.permute.xlu0 %570  ;;  %v561_v3 = vpop.permute.xlu1 %560  ;;  %10393 = vpow2.f32 %v748_v22 }
 0x3f9   :  { %v11443_v53 = vsel %vm13482_vm14, %v586_v21, %v571_v13  ;;  %10395 = vpow2.f32 %v768_v32 }
 0x3fa   :  { %v621_v11 = vmul.f32 %v11443_v53, %v11443_v53  ;;  %v7088_v51 = vadd.f32 -0.2857143, %v11443_v53  ;;  %v7092_v48 = vadd.f32 -0.5714286, %v11443_v53  ;;  %v7096_v29 = vadd.f32 -0.85714287, %v11443_v53 }
 0x3fb   :  { %v7100_v18 = vadd.f32 -1.1428572, %v11443_v53  ;;  %v7104_v23 = vadd.f32 -1.4285715, %v11443_v53  ;;  %v7108_v63 = vadd.f32 -1.7142857, %v11443_v53  ;;  %v11456_v22 = vpop.eup %10381 }
 0x3fc   :  { %v625_v50 = vmul.f32 -8.0, %v621_v11  ;;  %v641_v58 = vmul.f32 %v7088_v51, %v7088_v51  ;;  %v661_v49 = vmul.f32 %v7092_v48, %v7092_v48  ;;  %v681_v16 = vmul.f32 %v7096_v29, %v7096_v29  ;;  %v11453_v62 = vpop.f32.mrb[20].mxu1  ;;  %v551_v19 = vpop.permute.xlu0 %550  ;;  %13653 = vst [vmem:[#allocation48_spill] sm:$0xff] %v11456_v22 }
 0x3fd   :  { %v701_v57 = vmul.f32 %v7100_v18, %v7100_v18  ;;  %v721_v10 = vmul.f32 %v7104_v23, %v7104_v23  ;;  %v741_v21 = vmul.f32 %v7108_v63, %v7108_v63  ;;  %v7112_v13 = vadd.f32 -2.0, %v11443_v53  ;;  %v1681_v20 = vpop.f32.mrb[21].mxu1  ;;  %v11458_v35 = vpop.eup %10383 }
 0x3fe   :  { %v630_v5 = vmul.f32 1.442695, %v625_v50  ;;  %v645_v8 = vmul.f32 -8.0, %v641_v58  ;;  %v665_v43 = vmul.f32 -8.0, %v661_v49  ;;  %v685_v46 = vmul.f32 -8.0, %v681_v16  ;;  %13654 = vst [vmem:[#allocation49_spill] sm:$0xff] %v11458_v35  ;;  %v11460_v29 = vpop.eup %10385  ;;  %v573_v33 = vpop.permute.xlu1 %572 }
 0x3ff   :  { %v705_v11 = vmul.f32 -8.0, %v701_v57  ;;  %v725_v51 = vmul.f32 -8.0, %v721_v10  ;;  %v745_v48 = vmul.f32 -8.0, %v741_v21  ;;  %13655 = vst [vmem:[#allocation50_spill] sm:$0xff] %v11460_v29  ;;  %v11462_v14 = vpop.eup %10387  ;;  %v761_v58 = vmul.f32 %v7112_v13, %v7112_v13 }
 0x400   :  { %10397 = vpow2.f32 %v630_v5  ;;  %v650_v18 = vmul.f32 1.442695, %v645_v8  ;;  %v670_v23 = vmul.f32 1.442695, %v665_v43  ;;  %v690_v63 = vmul.f32 1.442695, %v685_v46  ;;  %v11465_v16 = vpop.eup %10389  ;;  %v563_v8 = vpop.permute.xlu0 %562 }
 0x401   :  { %v710_v45 = vmul.f32 1.442695, %v705_v11  ;;  %v730_v50 = vmul.f32 1.442695, %v725_v51  ;;  %v587_v49 = vsel %vm13483_vm13, %v582_v28, %v561_v3  ;;  %v750_v32 = vmul.f32 1.442695, %v745_v48  ;;  %v11470_v43 = vpop.eup %10391 }
 0x402   :  { %10399 = vpow2.f32 %v650_v18  ;;  %v1510_v57 = vmul.f32 %v11456_v22, %v11373_v2  ;;  %v1700_v5 = vmul.f32 %v11458_v35, %v1681_v20  ;;  %v765_v46 = vmul.f32 -8.0, %v761_v58  ;;  %v11485_v11 = vpop.eup %10393 }
 0x403   :  { %10401 = vpow2.f32 %v670_v23  ;;  %v583_v10 = vsel %vm13484_vm0, %v11393_v55, %v551_v19  ;;  %v11475_v21 = vsel %vm13482_vm14, %v587_v49, %v573_v33  ;;  %v11477_v28 = vpop.f32.mrb[20].mxu0  ;;  %13656 = vst [vmem:[#allocation51_spill] sm:$0xff] %v11485_v11  ;;  %v11494_v40 = vpop.eup %10395  ;;  %vm596_vm15 = vcmp.lt.f32.partialorder %v11443_v53, 2.0 }
 0x404   :  { %10403 = vpow2.f32 %v690_v63  ;;  %v1581_v3 = vadd.f32 %v11405_v61, %v1510_v57  ;;  %v622_v2 = vmul.f32 %v11475_v21, %v11475_v21  ;;  %v7089_v20 = vadd.f32 -0.2857143, %v11475_v21  ;;  %v11483_v13 = vpop.f32.mrb[21].mxu0  ;;  %13657 = vst [vmem:[#allocation52_spill] sm:$0xff] %v11494_v40 }
 0x405   :  { %10405 = vpow2.f32 %v710_v45  ;;  %v7093_v55 = vadd.f32 -0.5714286, %v11475_v21  ;;  %v7097_v33 = vadd.f32 -0.85714287, %v11475_v21  ;;  %v588_v19 = vsel %vm13483_vm13, %v583_v10, %v563_v8 }
 0x406   :  { %v770_v51 = vmul.f32 1.442695, %v765_v46  ;;  %v11490_v48 = vadd.f32 %v1700_v5, %v1581_v3  ;;  %v626_v61 = vmul.f32 -8.0, %v622_v2  ;;  %v642_v18 = vmul.f32 %v7089_v20, %v7089_v20 }
 0x407   :  { %10407 = vpow2.f32 %v730_v50  ;;  %v662_v23 = vmul.f32 %v7093_v55, %v7093_v55  ;;  %v682_v63 = vmul.f32 %v7097_v33, %v7097_v33  ;;  %v7101_v58 = vadd.f32 -1.1428572, %v11475_v21 }
 0x408   :  { %10409 = vpow2.f32 %v750_v32  ;;  %v632_v49 = vmul.f32 1.442695, %v626_v61  ;;  %v646_v57 = vmul.f32 -8.0, %v642_v18  ;;  %v7105_v45 = vadd.f32 -1.4285715, %v11475_v21 }
 0x409   :  { %v666_v7 = vmul.f32 -8.0, %v662_v23  ;;  %v686_v39 = vmul.f32 -8.0, %v682_v63  ;;  %v702_v8 = vmul.f32 %v7101_v58, %v7101_v58  ;;  %v7109_v5 = vadd.f32 -1.7142857, %v11475_v21 }
 0x40a   :  { %v11497_v46 = vpop.eup %10397  ;;  %10411 = vpow2.f32 %v632_v49  ;;  %v652_v50 = vmul.f32 1.442695, %v646_v57  ;;  %v722_v10 = vmul.f32 %v7105_v45, %v7105_v45  ;;  %v7113_v3 = vadd.f32 -2.0, %v11475_v21  ;;  %v11500_v2 = vpop.f32.mrb[22].mxu1 }
 0x40b   :  { %13658 = vst [vmem:[#allocation53_spill] sm:$0xff] %v11497_v46  ;;  %v1511_v32 = vmul.f32 %v11497_v46, %v11371_v6  ;;  %v672_v20 = vmul.f32 1.442695, %v666_v7  ;;  %v692_v55 = vmul.f32 1.442695, %v686_v39  ;;  %v706_v33 = vmul.f32 -8.0, %v702_v8  ;;  %v575_v49 = vpop.permute.xlu0 %574 }
 0x40c   :  { %v11504_v61 = vpop.f32.mrb[23].mxu1  ;;  %v11506_v18 = vpop.eup %10399  ;;  %10413 = vpow2.f32 %v652_v50  ;;  %v726_v23 = vmul.f32 -8.0, %v722_v10  ;;  %v742_v63 = vmul.f32 %v7109_v5, %v7109_v5  ;;  %v762_v58 = vmul.f32 %v7113_v3, %v7113_v3 }
 0x40d   :  { %13659 = vst [vmem:[#allocation54_spill] sm:$0xff] %v11506_v18  ;;  %v11508_v57 = vpop.eup %10401  ;;  %10415 = vpow2.f32 %v770_v51  ;;  %v1586_v45 = vadd.f32 %v11403_v15, %v1511_v32  ;;  %v1701_v6 = vmul.f32 %v11506_v18, %v11453_v62  ;;  %v712_v7 = vmul.f32 1.442695, %v706_v33  ;;  %v8469_v39 = vpop.f32.mrb[22].mxu0 }
 0x40e   :  { %13660 = vst [vmem:[#allocation55_spill] sm:$0xff] %v11508_v57  ;;  %v11513_v8 = vpop.eup %10403  ;;  %10417 = vpow2.f32 %v672_v20  ;;  %v732_v9 = vmul.f32 1.442695, %v726_v23  ;;  %v746_v36 = vmul.f32 -8.0, %v742_v63  ;;  %v766_v50 = vmul.f32 -8.0, %v762_v58  ;;  %v11515_v10 = vpop.f32.mrb[24].mxu1 }
 0x40f   :  { %v11517_v5 = vpop.f32.mrb[23].mxu0  ;;  %v11519_v3 = vpop.eup %10405  ;;  %v11523_v15 = vmul.f32 %v11460_v29, %v11430_v37  ;;  %v1705_v51 = vadd.f32 %v1701_v6, %v1586_v45  ;;  %10419 = vpow2.f32 %v692_v55  ;;  %v11526_v62 = vsel %vm13482_vm14, %v588_v19, %v575_v49  ;;  %vm11616_vm14 = vmand %vm596_vm15, %vm600_vm11 }
 0x410   :  { %v11528_v32 = vpop.f32.mrb[25].mxu1  ;;  %10421 = vpow2.f32 %v712_v7  ;;  %v752_v20 = vmul.f32 1.442695, %v746_v36  ;;  %v772_v33 = vmul.f32 1.442695, %v766_v50  ;;  %v623_v23 = vmul.f32 %v11526_v62, %v11526_v62  ;;  %vm11643_vm11 = vmand %vm595_vm5, %vm599_vm10 }
 0x411   :  { %v11532_v63 = vpop.eup %10407  ;;  %v7090_v58 = vadd.f32 -0.2857143, %v11526_v62  ;;  %v7094_v37 = vadd.f32 -0.5714286, %v11526_v62  ;;  %v7098_v45 = vadd.f32 -0.85714287, %v11526_v62  ;;  %v1810_v19 = vmul.f32 %v11508_v57, %v11425_v38 }
 0x412   :  { %v11539_v55 = vpop.eup %10409  ;;  %10423 = vpow2.f32 %v732_v9  ;;  %v627_v49 = vmul.f32 -8.0, %v623_v23  ;;  %v7102_v36 = vadd.f32 -1.1428572, %v11526_v62  ;;  %v7106_v6 = vadd.f32 -1.4285715, %v11526_v62  ;;  %v11543_v7 = vpop.f32.mrb[26].mxu1 }
 0x413   :  { %13661 = vst [vmem:[#allocation56_spill] sm:$0xff] %v11539_v55  ;;  %10425 = vpow2.f32 %v752_v20  ;;  %v643_v50 = vmul.f32 %v7090_v58, %v7090_v58  ;;  %v663_v44 = vmul.f32 %v7094_v37, %v7094_v37  ;;  %v683_v29 = vmul.f32 %v7098_v45, %v7098_v45  ;;  %v1909_v18 = vpop.f32.mrb[27].mxu1 }
 0x414   :  { %v11545_v46 = vpop.eup %10411  ;;  %v634_v35 = vmul.f32 1.442695, %v627_v49  ;;  %v703_v22 = vmul.f32 %v7102_v36, %v7102_v36  ;;  %v723_v38 = vmul.f32 %v7106_v6, %v7106_v6  ;;  %v7110_v57 = vadd.f32 -1.7142857, %v11526_v62 }
 0x415   :  { %v647_v9 = vmul.f32 -8.0, %v643_v50  ;;  %v667_v23 = vmul.f32 -8.0, %v663_v44  ;;  %v687_v54 = vmul.f32 -8.0, %v683_v29  ;;  %v7114_v56 = vadd.f32 -2.0, %v11526_v62  ;;  %v11549_v12 = vpop.f32.mrb[24].mxu0 }
 0x416   :  { %v11551_v52 = vpop.eup %10413  ;;  %10427 = vpow2.f32 %v634_v35  ;;  %v707_v20 = vmul.f32 -8.0, %v703_v22  ;;  %v727_v58 = vmul.f32 -8.0, %v723_v38  ;;  %v743_v37 = vmul.f32 %v7110_v57, %v7110_v57  ;;  %v2018_v45 = vpop.f32.mrb[25].mxu0 }
 0x417   :  { %v8477_v17 = vpop.f32.mrb[28].mxu1  ;;  %v11553_v49 = vpop.eup %10415  ;;  %v654_v36 = vmul.f32 1.442695, %v647_v9  ;;  %v674_v6 = vmul.f32 1.442695, %v667_v23  ;;  %v763_v50 = vmul.f32 %v7114_v56, %v7114_v56  ;;  %10429 = vpow2.f32 %v772_v33 }
 0x418   :  { %13662 = vst [vmem:[#allocation57_spill] sm:$0xff] %v11553_v49  ;;  %v694_v30 = vmul.f32 1.442695, %v687_v54  ;;  %v11555_v44 = vpop.eup %10417  ;;  %v714_v29 = vmul.f32 1.442695, %v707_v20  ;;  %v747_v42 = vmul.f32 -8.0, %v743_v37  ;;  %v2028_v41 = vmul.f32 %v11519_v3, %v8469_v39 }
 0x419   :  { %v2117_v60 = vpop.f32.mrb[29].mxu1  ;;  %v11558_v35 = vpop.eup %10419  ;;  %10431 = vpow2.f32 %v654_v36  ;;  %v767_v22 = vmul.f32 -8.0, %v763_v50  ;;  %v1512_v57 = vmul.f32 %v11545_v46, %v11381_v27  ;;  %v1702_v38 = vmul.f32 %v11551_v52, %v11504_v61 }
 0x41a   :  { %v11566_v56 = vpop.eup %10421  ;;  %10433 = vpow2.f32 %v674_v6  ;;  %v734_v54 = vmul.f32 1.442695, %v727_v58  ;;  %v1814_v33 = vadd.f32 %v1810_v19, %v1705_v51  ;;  %v1919_v39 = vmul.f32 %v11513_v8, %v11515_v10  ;;  %v11570_v9 = vpop.f32.mrb[30].mxu1 }
 0x41b   :  { %10435 = vpow2.f32 %v694_v30  ;;  %v754_v23 = vmul.f32 1.442695, %v747_v42  ;;  %v1811_v27 = vmul.f32 %v11555_v44, %v11483_v13  ;;  %v1591_v61 = vadd.f32 %v11409_v47, %v1512_v57  ;;  %v2127_v20 = vpop.f32.mrb[31].mxu1 }
 0x41c   :  { %v11577_v37 = vpop.eup %10423  ;;  %v774_v58 = vmul.f32 1.442695, %v767_v22  ;;  %v1923_v51 = vadd.f32 %v1919_v39, %v1814_v33  ;;  %v1813_v10 = vadd.f32 %v11523_v15, %v11490_v48  ;;  %v1918_v30 = vmul.f32 %v11462_v14, %v11528_v32 }
 0x41d   :  { %v11583_v42 = vpop.eup %10425  ;;  %10437 = vpow2.f32 %v714_v29  ;;  %v1706_v13 = vadd.f32 %v1702_v38, %v1591_v61  ;;  %v2027_v47 = vmul.f32 %v11465_v16, %v11517_v5  ;;  %v1920_v19 = vmul.f32 %v11558_v35, %v1909_v18  ;;  %v8485_v36 = vpop.f32.mrb[26].mxu0 }
 0x41e   :  { %13663 = vst [vmem:[#allocation58_spill] sm:$0xff] %v11583_v42  ;;  %10439 = vpow2.f32 %v734_v54  ;;  %v1922_v6 = vadd.f32 %v1918_v30, %v1813_v10  ;;  %v2032_v50 = vadd.f32 %v2028_v41, %v1923_v51  ;;  %v2137_v22 = vmul.f32 %v11532_v63, %v8477_v17  ;;  %v2226_v57 = vpop.f32.mrb[27].mxu0 }
 0x41f   :  { %10441 = vpow2.f32 %v754_v23  ;;  %v1815_v48 = vadd.f32 %v1811_v27, %v1706_v13  ;;  %v2029_v15 = vmul.f32 %v11566_v56, %v2018_v45  ;;  %v2136_v32 = vmul.f32 %v11470_v43, %v2117_v60 }
 0x420   :  { %v11591_v29 = vpop.eup %10427  ;;  %v2141_v38 = vadd.f32 %v2137_v22, %v2032_v50  ;;  %v2031_v33 = vadd.f32 %v2027_v47, %v1922_v6  ;;  %v2246_v5 = vmul.f32 %v11539_v55, %v8485_v36  ;;  %v2245_v18 = vmul.f32 %v11485_v11, %v2226_v57 }
 0x421   :  { %v1513_v41 = vmul.f32 %v11591_v29, %v11379_v25  ;;  %v1924_v54 = vadd.f32 %v1920_v19, %v1815_v48  ;;  %v2138_v17 = vmul.f32 %v11577_v37, %v2127_v20  ;;  %v8493_v39 = vpop.f32.mrb[32].mxu1  ;;  %v11599_v45 = vpop.eup %10429  ;;  %10443 = vpow2.f32 %v774_v58 }
 0x422   :  { %13664 = vst [vmem:[#allocation59_spill] sm:$0xff] %v11599_v45  ;;  %v2140_v60 = vadd.f32 %v2136_v32, %v2031_v33  ;;  %v2250_v23 = vadd.f32 %v2246_v5, %v2141_v38  ;;  %v2355_v27 = vmul.f32 %v11553_v49, %v8493_v39  ;;  %v2335_v61 = vpop.f32.mrb[33].mxu1  ;;  %v13665_v36 = vmov 0 }
 0x423   :  { %v11603_v51 = vpop.eup %10431  ;;  %v1596_v25 = vadd.f32 %v11407_v4, %v1513_v41  ;;  %v2033_v10 = vadd.f32 %v2029_v15, %v1924_v54  ;;  %v2354_v20 = vmul.f32 %v11494_v40, %v2335_v61  ;;  %v13666_v36 = vsel %vm11616_vm14, 4294967295, %v13665_v36 }
 0x424   :  { %v11607_v30 = vpop.eup %10433  ;;  %v1703_v13 = vmul.f32 %v11603_v51, %v11500_v2  ;;  %v2249_v47 = vadd.f32 %v2245_v18, %v2140_v60  ;;  %v2359_v19 = vadd.f32 %v2355_v27, %v2250_v23  ;;  %13667 = vst [vmem:[#allocation60_spill] sm:$0xff] %v13666_v36  ;;  %v13668_v4 = vshra.s32 %v10663_v59, 4 }
 0x425   :  { %v13669_v58 = vmov 0  ;;  %v11627_v6 = vpop.eup %10435  ;;  %v2142_v2 = vadd.f32 %v2138_v17, %v2033_v10  ;;  %v8488_v50 = vpop.f32.mrb[28].mxu0  ;;  %v13672_v22 = vshra.s32 %v10649_v31, 4  ;;  %v13673_v53 = vmov 0 }
 0x426   :  { %vm11623_vm13 = vcmp.eq.s32.totalorder %v13668_v4, %v11435_v34  ;;  %v1707_v57 = vadd.f32 %v1703_v13, %v1596_v25  ;;  %v1812_v48 = vmul.f32 %v11607_v30, %v11477_v28  ;;  %v2358_v59 = vadd.f32 %v2354_v20, %v2249_v47  ;;  %v2236_v15 = vpop.f32.mrb[29].mxu0 }
 0x427   :  { %v13670_v58 = vsel %vm11623_vm13, 4294967295, %v13669_v58  ;;  %vm11632_vm0 = vcmp.eq.s32.totalorder %v13672_v22, %v11435_v34  ;;  %v2363_v32 = vmul.f32 0.35355338, %v2359_v19  ;;  %v13676_v38 = vmov 0  ;;  %v11647_v33 = vpop.eup %10437  ;;  %vm13485_vm15 = vmand %vm11616_vm14, %vm11623_vm13 }
 0x428   :  { %13671 = vst [vmem:[#allocation61_spill] sm:$0xff] %v13670_v58  ;;  %v13674_v53 = vsel %vm11632_vm0, 4294967295, %v13673_v53  ;;  %v13677_v38 = vsel %vm11643_vm11, 4294967295, %v13676_v38  ;;  %v2247_v5 = vmul.f32 %v11583_v42, %v2236_v15  ;;  %v11654_v28 = vpop.eup %10439  ;;  %v1816_v18 = vadd.f32 %v1812_v48, %v1707_v57  ;;  %vm13487_vm10 = vmand %vm11643_vm11, %vm11632_vm0 }
 0x429   :  { %13675 = vst [vmem:[#allocation62_spill] sm:$0xff] %v13674_v53  ;;  %13678 = vst [vmem:[#allocation63_spill] sm:$0xff] %v13677_v38  ;;  %v1921_v41 = vmul.f32 %v11627_v6, %v11543_v7  ;;  %v2367_v24 = vsel %vm13485_vm15, %v2363_v32, -1e+09  ;;  %v2362_v54 = vmul.f32 0.35355338, %v2358_v59  ;;  %v11663_v17 = vpop.eup %10441  ;;  %vm601_vm5 = vcmp.ne.s32.totalorder %v10674_v1, %v11428_v26 }
 0x42a   :  { %13679 = vst [vmem:[#allocation64_spill] sm:$0xff] %v11663_v17  ;;  %v2251_v39 = vadd.f32 %v2247_v5, %v2142_v2  ;;  %2372 = vmax.xlane.f32.xlu0 %v2367_v24  ;;  %v8496_v60 = vpop.f32.mrb[34].mxu1  ;;  %v609_v7 = vshra.s32 %v10674_v1, 4  ;;  %v2030_v27 = vmul.f32 %v11647_v33, %v11549_v12  ;;  %vm597_vm15 = vcmp.lt.f32.partialorder %v11475_v21, 2.0 }
 0x42b   :  { %v1925_v23 = vadd.f32 %v1921_v41, %v1816_v18  ;;  %v2366_v61 = vsel %vm13487_vm10, %v2362_v54, -1e+09  ;;  %v2345_v25 = vpop.f32.mrb[35].mxu1  ;;  %v2139_v1 = vmul.f32 %v11654_v28, %v11570_v9  ;;  %v2248_v13 = vmul.f32 %v11663_v17, %v8488_v50  ;;  %v11684_v47 = vpop.eup %10443  ;;  %vm11686_vm12 = vmand %vm597_vm15, %vm601_vm5 }
 0x42c   :  { %2370 = vmax.xlane.f32.xlu1 %v2366_v61  ;;  %v2356_v10 = vmul.f32 %v11599_v45, %v2345_v25  ;;  %13680 = vst [vmem:[#allocation65_spill] sm:$0xff] %v11684_v47  ;;  %v13681_v19 = vmov 0  ;;  %vm11691_vm10 = vcmp.eq.s32.totalorder %v609_v7, %v11435_v34  ;;  %v13684_v4 = vmov 0 }
 0x42d   :  { %v2034_v20 = vadd.f32 %v2030_v27, %v1925_v23  ;;  %v13682_v19 = vsel %vm11686_vm12, 4294967295, %v13681_v19  ;;  %v13685_v4 = vsel %vm11691_vm10, 4294967295, %v13684_v4  ;;  %v2357_v2 = vmul.f32 %v11684_v47, %v8496_v60  ;;  %vm13512_vm15 = vmand %vm11686_vm12, %vm11691_vm10 }
 0x42e   :  { %v2360_v12 = vadd.f32 %v2356_v10, %v2251_v39  ;;  %13683 = vst [vmem:[#allocation66_spill] sm:$0xff] %v13682_v19  ;;  %13686 = vst [vmem:[#allocation67_spill] sm:$0xff] %v13685_v4  ;;  %v610_v22 = vshra.s32 %v10669_v0, 4  ;;  %vm598_vm0 = vcmp.lt.f32.partialorder %v11526_v62, 2.0  ;;  %vm602_vm11 = vcmp.ne.s32.totalorder %v10669_v0, %v11428_v26  ;;  %v13711_v4 = vld [vmem:[#allocation27_spill] sm:$0xff] }
 0x42f   :  { %v2143_v21 = vadd.f32 %v2139_v1, %v2034_v20  ;;  %vm11709_vm5 = vmand %vm598_vm0, %vm602_vm11  ;;  %v13687_v59 = vmov 0  ;;  %v13690_v0 = vmov 0  ;;  %v13693_v20 = vmov 1.0|1.0  }
 0x430   :  { %v2364_v9 = vmul.f32 0.35355338, %v2360_v12  ;;  %v13688_v59 = vsel %vm11709_vm5, 4294967295, %v13687_v59  ;;  %vm11714_vm13 = vcmp.eq.s32.totalorder %v610_v22, %v11435_v34  ;;  %vm13702_vm0 = vcmask 31744  }
 0x431   :  { %v2252_v50 = vadd.f32 %v2248_v13, %v2143_v21  ;;  %13689 = vst [vmem:[#allocation68_spill] sm:$0xff] %v13688_v59  ;;  %v13691_v0 = vsel %vm11714_vm13, 4294967295, %v13690_v0  ;;  %vm13513_vm14 = vmand %vm11709_vm5, %vm11714_vm13  ;;  %vm13520_vm10 = vcmask 130048   ;;  %vm13525_vm12 = vcmask 162816   ;;  %v7420_v13 = vld [vmem:[%s13383_s1 + $0x198] sm:$0xff] }
 0x432   :  { %v2368_v57 = vsel %vm13512_vm15, %v2364_v9, -1e+09  ;;  %13692 = vst [vmem:[#allocation69_spill] sm:$0xff] %v13691_v0  ;;  %vm13703_vm11 = vmmov %vm13702_vm0  ;;  %vm13519_vm13 = vcmask 195584  }
 0x433   :  { %v2361_v48 = vadd.f32 %v2357_v2, %v2252_v50  ;;  %2374 = vmax.xlane.f32.xlu0 %v2368_v57  ;;  %v13701_v50 = vld [vmem:[#allocation47_spill] sm:$0xff] }
 0x435   :  { %v2365_v26 = vmul.f32 0.35355338, %v2361_v48 }
 0x437   :  { %v2369_v62 = vsel %vm13513_vm14, %v2365_v26, -1e+09  ;;  %vm13517_vm14 = vcmask 97280  }
 0x438   :  { %2376 = vmax.xlane.f32.xlu0 %v2369_v62 }
 0x4b7   :  { %v2373_v15 = vpop.xlane.xlu0 %2372 }
 0x4b8   :  { %v2379_v32 = vsub.f32 %v2367_v24, %v2373_v15 }
 0x4b9   :  { %v2371_v5 = vpop.xlane.xlu1 %2370 }
 0x4ba   :  { %v2378_v34 = vsub.f32 %v2366_v61, %v2371_v5  ;;  %v2384_v18 = vmul.f32 1.442695, %v2379_v32  ;;  %v7419_v61 = vld [vmem:[%s13383_s1 + $0x190] sm:$0xff] }
 0x4bc   :  { %v2382_v41 = vmul.f32 1.442695, %v2378_v34 }
 0x4be   :  { %10445 = vpow2.f32 %v2382_v41 }
 0x4bf   :  { %10447 = vpow2.f32 %v2384_v18 }
 0x4c0   :  { %v2375_v54 = vpop.xlane.xlu0 %2374 }
 0x4c1   :  { %v2380_v39 = vsub.f32 %v2368_v57, %v2375_v54 }
 0x4c3   :  { %v2386_v60 = vmul.f32 1.442695, %v2380_v39 }
 0x4c5   :  { %10449 = vpow2.f32 %v2386_v60  ;;  %v2377_v7 = vpop.xlane.xlu0 %2376  ;;  %v13705_v60 = vld [vmem:[#allocation48_spill] sm:$0xff] }
 0x4c6   :  { %v2381_v23 = vsub.f32 %v2369_v62, %v2377_v7 }
 0x4c8   :  { %v10446_v27 = vpop.eup %10445  ;;  %v2388_v25 = vmul.f32 1.442695, %v2381_v23  ;;  %v13706_v23 = vld [vmem:[#allocation49_spill] sm:$0xff] }
 0x4c9   :  { %v10448_v10 = vpop.eup %10447  ;;  %8529 = vmatprep.mubr.f32.mxu0 %v10446_v27 }
 0x4ca   :  { %10451 = vpow2.f32 %v2388_v25  ;;  %8530 = vmatmul.mubr.f32.vlgmr.msra.gmra.mrb[30].mxu0 %v10448_v10 }
 0x4cb   :  { %9650 = vmatpush3.bf16.msk.msra.mxu0 %vm11204_vm6, %v13693_v20 }
 0x4cc   :  { %9652 = vmatprep.subr.msk.bf16.mxu0 %vm11238_vm9, %v13693_v20 }
 0x4cf   :  { %v11733_v1 = vpop.eup %10449  ;;  %9654 = vmatpush3.bf16.msk.msra.mxu0 %vm11238_vm9, %v13693_v20 }
 0x4d0   :  { %8532 = vmatprep.mubr.f32.mxu0 %v11733_v1  ;;  %9656 = vmatprep.subr.msk.bf16.mxu0 %vm11256_vm1, %v13693_v20 }
 0x4d3   :  { %9658 = vmatpush3.bf16.msk.msra.mxu0 %vm11256_vm1, %v13693_v20 }
 0x4d4   :  { %v10452_v12 = vpop.eup %10451  ;;  %9660 = vmatprep.subr.msk.bf16.mxu0 %vm11276_vm4, %v13693_v20 }
 0x4d5   :  { %8533 = vmatmul.mubr.f32.gmra.mrb[32].mxu0 %v10452_v12 }
 0x4d7   :  { %9662 = vmatpush3.bf16.msk.msra.mxu0 %vm11276_vm4, %v13693_v20 }
 0x4d8   :  { %9664 = vmatprep.subr.msk.bf16.mxu0 %vm11296_vm8, %v13693_v20 }
 0x4db   :  { %9666 = vmatpush3.bf16.msk.msra.mxu0 %vm11296_vm8, %v13693_v20 }
 0x4dc   :  { %9668 = vmatprep.subr.msk.bf16.mxu0 %vm11317_vm2, %v13693_v20 }
 0x4df   :  { %9670 = vmatpush3.bf16.msk.msra.mxu0 %vm11317_vm2, %v13693_v20 }
 0x4e0   :  { %9672 = vmatprep.subr.msk.bf16.mxu0 %vm11334_vm7, %v13693_v20 }
 0x4e3   :  { %9674 = vmatpush3.bf16.msk.msra.mxu0 %vm11334_vm7, %v13693_v20 }
 0x4e4   :  { %9676 = vmatprep.subr.msk.bf16.mxu0 %vm11350_vm3, %v13693_v20 }
 0x4e7   :  { %9678 = vmatpush3.bf16.msk.msra.mxu0 %vm11350_vm3, %v13693_v20 }
 0x4e8   :  { %9712 = vmatprep.subr.msk.bf16.mxu0 %vm11204_vm6, %v13693_v20 }
 0x59d   :  { %v8531_v57 = vpop.f32.mrb[30].mxu0 }
 0x59e   :  { %v2456_v48 = vpop.f32.mrb[31].mxu0 }
 0x59f   :  { %10453 = vrcp.f32 %v2456_v48 }
 0x5a0   :  { %10455 = vrcp.f32 %v8531_v57  ;;  %v13707_v57 = vld [vmem:[#allocation53_spill] sm:$0xff] }
 0x5a8   :  { %v8534_v26 = vpop.f32.mrb[32].mxu0 }
 0x5a9   :  { %v10454_v62 = vpop.eup %10453  ;;  %v2466_v15 = vpop.f32.mrb[33].mxu0 }
 0x5aa   :  { %v10456_v32 = vpop.eup %10455  ;;  %10457 = vrcp.f32 %v2466_v15  ;;  %8537 = vmatprep.mubr.msk.f32.mxu1 %vm13702_vm0, %v10454_v62 }
 0x5ab   :  { %10459 = vrcp.f32 %v8534_v26  ;;  %8538 = vmatmul.mubr.msk.f32.vlgmr.msra.gmra.mrb[36].mxu1 %vm13703_vm11, %v10456_v32  ;;  %vm13704_vm11 = vmmov %vm13702_vm0  ;;  %v13708_v26 = vld [vmem:[#allocation54_spill] sm:$0xff] }
 0x5ac   :  { %9618 = vmatpush3.bf16.msk.msra.mxu1 %vm11204_vm6, %v13693_v20  ;;  %vm13712_vm15 = vmmov %vm13704_vm11 }
 0x5ad   :  { %9620 = vmatprep.subr.msk.bf16.mxu1 %vm11238_vm9, %v13693_v20 }
 0x5b0   :  { %9622 = vmatpush3.bf16.msk.msra.mxu1 %vm11238_vm9, %v13693_v20 }
 0x5b1   :  { %9624 = vmatprep.subr.msk.bf16.mxu1 %vm11256_vm1, %v13693_v20 }
 0x5b4   :  { %v10458_v5 = vpop.eup %10457  ;;  %9626 = vmatpush3.bf16.msk.msra.mxu1 %vm11256_vm1, %v13693_v20 }
 0x5b5   :  { %v10460_v34 = vpop.eup %10459  ;;  %8540 = vmatprep.mubr.msk.f32.mxu1 %vm13702_vm0, %v10458_v5  ;;  %9628 = vmatprep.subr.msk.bf16.mxu1 %vm11276_vm4, %v13693_v20  ;;  %vm13526_vm0 = vcmask 64512  }
 0x5b6   :  { %8541 = vmatmul.mubr.msk.f32.gmra.mrb[38].mxu1 %vm13704_vm11, %v10460_v34 }
 0x5b8   :  { %9630 = vmatpush3.bf16.msk.msra.mxu1 %vm11276_vm4, %v13693_v20 }
 0x5b9   :  { %9632 = vmatprep.subr.msk.bf16.mxu1 %vm11296_vm8, %v13693_v20 }
 0x5bc   :  { %9634 = vmatpush3.bf16.msk.msra.mxu1 %vm11296_vm8, %v13693_v20 }
 0x5bd   :  { %9636 = vmatprep.subr.msk.bf16.mxu1 %vm11317_vm2, %v13693_v20 }
 0x5c0   :  { %9638 = vmatpush3.bf16.msk.msra.mxu1 %vm11317_vm2, %v13693_v20 }
 0x5c1   :  { %9640 = vmatprep.subr.msk.bf16.mxu1 %vm11334_vm7, %v13693_v20 }
 0x5c4   :  { %9642 = vmatpush3.bf16.msk.msra.mxu1 %vm11334_vm7, %v13693_v20 }
 0x5c5   :  { %9644 = vmatprep.subr.msk.bf16.mxu1 %vm11350_vm3, %v13693_v20 }
 0x5c8   :  { %9646 = vmatpush3.bf16.msk.msra.mxu1 %vm11350_vm3, %v13693_v20 }
 0x5c9   :  { %9680 = vmatprep.subr.msk.bf16.mxu1 %vm11204_vm6, %v13693_v20 }
 0x67e   :  { %v8539_v18 = vpop.f32.mrb[36].mxu1 }
 0x67f   :  { %v11830_v41 = vmul.f32 %v10448_v10, %v8539_v18  ;;  %v2557_v54 = vpop.f32.mrb[37].mxu1  ;;  %v13709_v18 = vld [vmem:[#allocation50_spill] sm:$0xff] }
 0x680   :  { %v11832_v39 = vmul.f32 %v10446_v27, %v2557_v54 }
 0x681   :  { %v2597_v48 = vmul.f32 %v13707_v57, %v11830_v41  ;;  %v2686_v62 = vmul.f32 %v13708_v26, %v11830_v41 }
 0x682   :  { %v2596_v7 = vmul.f32 %v13705_v60, %v11832_v39  ;;  %v2685_v25 = vmul.f32 %v13706_v23, %v11832_v39  ;;  %v2774_v54 = vmul.f32 %v13709_v18, %v11832_v39 }
 0x684   :  { %8575 = vmatprep.mubr.f32.mxu1 %v2596_v7  ;;  %8613 = vmatprep.mubr.f32.mxu0 %v2685_v25  ;;  %v2863_v7 = vmul.f32 %v11462_v14, %v11832_v39  ;;  %v13710_v25 = vld [vmem:[#allocation55_spill] sm:$0xff] }
 0x685   :  { %8576 = vmatmul.mubr.f32.vlgmr.msra.gmra.mrb[40].mxu1 %v2597_v48  ;;  %8614 = vmatmul.mubr.f32.vlgmr.msra.gmra.mrb[34].mxu0 %v2686_v62  ;;  %v2775_v48 = vmul.f32 %v13710_v25, %v11830_v41  ;;  %v2864_v62 = vmul.f32 %v11513_v8, %v11830_v41 }
 0x686   :  { %9682 = vmatpush3.bf16.msk.msra.mxu1 %vm11204_vm6, %v13693_v20  ;;  %9714 = vmatpush3.bf16.msk.msra.mxu0 %vm11204_vm6, %v13693_v20 }
 0x687   :  { %9684 = vmatprep.subr.msk.bf16.mxu1 %vm11238_vm9, %v13693_v20  ;;  %9716 = vmatprep.subr.msk.bf16.mxu0 %vm11238_vm9, %v13693_v20 }
 0x689   :  { %v8542_v27 = vpop.f32.mrb[38].mxu1 }
 0x68a   :  { %v11854_v10 = vmul.f32 %v10452_v12, %v8542_v27  ;;  %9686 = vmatpush3.bf16.msk.msra.mxu1 %vm11238_vm9, %v13693_v20  ;;  %9718 = vmatpush3.bf16.msk.msra.mxu0 %vm11238_vm9, %v13693_v20  ;;  %v2567_v15 = vpop.f32.mrb[39].mxu1 }
 0x68b   :  { %v11863_v32 = vmul.f32 %v11733_v1, %v2567_v15  ;;  %9688 = vmatprep.subr.msk.bf16.mxu1 %vm11256_vm1, %v13693_v20  ;;  %9720 = vmatprep.subr.msk.bf16.mxu0 %vm11256_vm1, %v13693_v20 }
 0x68c   :  { %v2599_v1 = vmul.f32 %v11591_v29, %v11854_v10  ;;  %v2688_v34 = vmul.f32 %v11603_v51, %v11854_v10 }
 0x68d   :  { %v2598_v12 = vmul.f32 %v11545_v46, %v11863_v32  ;;  %v2687_v5 = vmul.f32 %v11551_v52, %v11863_v32  ;;  %v2776_v27 = vmul.f32 %v11555_v44, %v11863_v32  ;;  %v2865_v15 = vmul.f32 %v11558_v35, %v11863_v32 }
 0x68e   :  { %9690 = vmatpush3.bf16.msk.msra.mxu1 %vm11256_vm1, %v13693_v20  ;;  %9722 = vmatpush3.bf16.msk.msra.mxu0 %vm11256_vm1, %v13693_v20 }
 0x68f   :  { %8578 = vmatprep.mubr.f32.mxu1 %v2598_v12  ;;  %8616 = vmatprep.mubr.f32.mxu0 %v2687_v5  ;;  %v2777_v12 = vmul.f32 %v11607_v30, %v11854_v10  ;;  %v2866_v5 = vmul.f32 %v11627_v6, %v11854_v10 }
 0x690   :  { %8579 = vmatmul.mubr.f32.gmra.mrb[42].mxu1 %v2599_v1  ;;  %8617 = vmatmul.mubr.f32.gmra.mrb[36].mxu0 %v2688_v34  ;;  %v2952_v1 = vmul.f32 %v11465_v16, %v11832_v39  ;;  %v3041_v34 = vmul.f32 %v11470_v43, %v11832_v39 }
 0x691   :  { %9692 = vmatprep.subr.msk.bf16.mxu1 %vm11276_vm4, %v13693_v20  ;;  %9724 = vmatprep.subr.msk.bf16.mxu0 %vm11276_vm4, %v13693_v20 }
 0x692   :  { %9694 = vmatpush3.bf16.msk.msra.mxu1 %vm11276_vm4, %v13693_v20  ;;  %8651 = vmatprep.mubr.f32.mxu1 %v2774_v54  ;;  %v2953_v54 = vmul.f32 %v11519_v3, %v11830_v41 }
 0x693   :  { %9726 = vmatpush3.bf16.msk.msra.mxu0 %vm11276_vm4, %v13693_v20  ;;  %8689 = vmatprep.mubr.f32.mxu0 %v2863_v7  ;;  %v3042_v7 = vmul.f32 %v11532_v63, %v11830_v41 }
 0x694   :  { %9696 = vmatprep.subr.msk.bf16.mxu1 %vm11296_vm8, %v13693_v20  ;;  %9728 = vmatprep.subr.msk.bf16.mxu0 %vm11296_vm8, %v13693_v20 }
 0x696   :  { %9698 = vmatpush3.bf16.msk.msra.mxu1 %vm11296_vm8, %v13693_v20 }
 0x697   :  { %9730 = vmatpush3.bf16.msk.msra.mxu0 %vm11296_vm8, %v13693_v20  ;;  %9700 = vmatprep.subr.msk.bf16.mxu1 %vm11317_vm2, %v13693_v20 }
 0x698   :  { %9732 = vmatprep.subr.msk.bf16.mxu0 %vm11317_vm2, %v13693_v20 }
 0x69a   :  { %9702 = vmatpush3.bf16.msk.msra.mxu1 %vm11317_vm2, %v13693_v20 }
 0x69b   :  { %9734 = vmatpush3.bf16.msk.msra.mxu0 %vm11317_vm2, %v13693_v20  ;;  %9704 = vmatprep.subr.msk.bf16.mxu1 %vm11334_vm7, %v13693_v20 }
 0x69c   :  { %9736 = vmatprep.subr.msk.bf16.mxu0 %vm11334_vm7, %v13693_v20 }
 0x69e   :  { %9706 = vmatpush3.bf16.msk.msra.mxu1 %vm11334_vm7, %v13693_v20 }
 0x69f   :  { %9738 = vmatpush3.bf16.msk.msra.mxu0 %vm11334_vm7, %v13693_v20  ;;  %9708 = vmatprep.subr.msk.bf16.mxu1 %vm11350_vm3, %v13693_v20 }
 0x6a0   :  { %9740 = vmatprep.subr.msk.bf16.mxu0 %vm11350_vm3, %v13693_v20 }
 0x6a2   :  { %9710 = vmatpush3.bf16.msk.msra.mxu1 %vm11350_vm3, %v13693_v20 }
 0x6a3   :  { %9742 = vmatpush3.bf16.msk.msra.mxu0 %vm11350_vm3, %v13693_v20  ;;  %9744 = vmatprep.subr.msk.bf16.mxu1 %vm11204_vm6, %v13693_v20 }
 0x6a4   :  { %9776 = vmatprep.subr.msk.bf16.mxu0 %vm11204_vm6, %v13693_v20 }
 0x6a5   :  { %8652 = vmatmul.mubr.f32.vlgmr.msra.gmra.mrb[44].mxu1 %v2775_v48  ;;  %v2954_v48 = vmul.f32 %v11566_v56, %v11863_v32 }
 0x6a6   :  { %8690 = vmatmul.mubr.f32.vlgmr.msra.gmra.mrb[38].mxu0 %v2864_v62  ;;  %8654 = vmatprep.mubr.f32.mxu1 %v2776_v27  ;;  %v3043_v62 = vmul.f32 %v11577_v37, %v11863_v32  ;;  %v2955_v27 = vmul.f32 %v11647_v33, %v11854_v10 }
 0x6a7   :  { %8692 = vmatprep.mubr.f32.mxu0 %v2865_v15  ;;  %9746 = vmatpush3.bf16.msk.msra.mxu1 %vm11204_vm6, %v13693_v20  ;;  %v3044_v15 = vmul.f32 %v11654_v28, %v11854_v10 }
 0x6a8   :  { %9778 = vmatpush3.bf16.msk.msra.mxu0 %vm11204_vm6, %v13693_v20  ;;  %9748 = vmatprep.subr.msk.bf16.mxu1 %vm11238_vm9, %v13693_v20 }
 0x6a9   :  { %8655 = vmatmul.mubr.f32.gmra.mrb[46].mxu1 %v2777_v12  ;;  %9780 = vmatprep.subr.msk.bf16.mxu0 %vm11238_vm9, %v13693_v20  ;;  %v3130_v12 = vmul.f32 %v11485_v11, %v11832_v39 }
 0x6aa   :  { %8693 = vmatmul.mubr.f32.gmra.mrb[40].mxu0 %v2866_v5  ;;  %8727 = vmatprep.mubr.f32.mxu1 %v2952_v1  ;;  %v3219_v5 = vmul.f32 %v11494_v40, %v11832_v39  ;;  %v7168_v1 = vld [vmem:[%s13383_s1 + $0xa0] sm:$0xff] }
 0x6ab   :  { %9750 = vmatpush3.bf16.msk.msra.mxu1 %vm11238_vm9, %v13693_v20  ;;  %8765 = vmatprep.mubr.f32.mxu0 %v3041_v34  ;;  %v7169_v34 = vld [vmem:[%s13383_s1 + $0xa8] sm:$0xff] }
 0x6ac   :  { %9782 = vmatpush3.bf16.msk.msra.mxu0 %vm11238_vm9, %v13693_v20  ;;  %9752 = vmatprep.subr.msk.bf16.mxu1 %vm11256_vm1, %v13693_v20 }
 0x6ad   :  { %9784 = vmatprep.subr.msk.bf16.mxu0 %vm11256_vm1, %v13693_v20 }
 0x6af   :  { %9754 = vmatpush3.bf16.msk.msra.mxu1 %vm11256_vm1, %v13693_v20 }
 0x6b0   :  { %9786 = vmatpush3.bf16.msk.msra.mxu0 %vm11256_vm1, %v13693_v20  ;;  %9756 = vmatprep.subr.msk.bf16.mxu1 %vm11276_vm4, %v13693_v20 }
 0x6b1   :  { %9788 = vmatprep.subr.msk.bf16.mxu0 %vm11276_vm4, %v13693_v20 }
 0x6b3   :  { %9758 = vmatpush3.bf16.msk.msra.mxu1 %vm11276_vm4, %v13693_v20 }
 0x6b4   :  { %9790 = vmatpush3.bf16.msk.msra.mxu0 %vm11276_vm4, %v13693_v20  ;;  %9760 = vmatprep.subr.msk.bf16.mxu1 %vm11296_vm8, %v13693_v20 }
 0x6b5   :  { %9792 = vmatprep.subr.msk.bf16.mxu0 %vm11296_vm8, %v13693_v20 }
 0x6b7   :  { %9762 = vmatpush3.bf16.msk.msra.mxu1 %vm11296_vm8, %v13693_v20 }
 0x6b8   :  { %9794 = vmatpush3.bf16.msk.msra.mxu0 %vm11296_vm8, %v13693_v20  ;;  %9764 = vmatprep.subr.msk.bf16.mxu1 %vm11317_vm2, %v13693_v20 }
 0x6b9   :  { %9796 = vmatprep.subr.msk.bf16.mxu0 %vm11317_vm2, %v13693_v20 }
 0x6bb   :  { %9766 = vmatpush3.bf16.msk.msra.mxu1 %vm11317_vm2, %v13693_v20 }
 0x6bc   :  { %9798 = vmatpush3.bf16.msk.msra.mxu0 %vm11317_vm2, %v13693_v20  ;;  %9768 = vmatprep.subr.msk.bf16.mxu1 %vm11334_vm7, %v13693_v20 }
 0x6bd   :  { %9800 = vmatprep.subr.msk.bf16.mxu0 %vm11334_vm7, %v13693_v20 }
 0x6bf   :  { %9770 = vmatpush3.bf16.msk.msra.mxu1 %vm11334_vm7, %v13693_v20 }
 0x6c0   :  { %9802 = vmatpush3.bf16.msk.msra.mxu0 %vm11334_vm7, %v13693_v20  ;;  %9772 = vmatprep.subr.msk.bf16.mxu1 %vm11350_vm3, %v13693_v20 }
 0x6c1   :  { %9804 = vmatprep.subr.msk.bf16.mxu0 %vm11350_vm3, %v13693_v20 }
 0x6c3   :  { %9774 = vmatpush3.bf16.msk.msra.mxu1 %vm11350_vm3, %v13693_v20 }
 0x6c4   :  { %9806 = vmatpush3.bf16.msk.msra.mxu0 %vm11350_vm3, %v13693_v20  ;;  %9808 = vmatprep.subr.msk.bf16.mxu1 %vm11204_vm6, %v13693_v20 }
 0x6c5   :  { %9840 = vmatprep.subr.msk.bf16.mxu0 %vm11204_vm6, %v13693_v20 }
 0x6c6   :  { %8728 = vmatmul.mubr.f32.vlgmr.msra.gmra.mrb[48].mxu1 %v2953_v54  ;;  %v9871_v54 = vpack.c.bf16 %v7169_v34, %v7168_v1  ;;  %v3133_v1 = vmul.f32 %v11663_v17, %v11854_v10  ;;  %v3222_v34 = vmul.f32 %v11684_v47, %v11854_v10 }
 0x6c7   :  { %8766 = vmatmul.mubr.f32.vlgmr.msra.gmra.mrb[42].mxu0 %v3042_v7  ;;  %8730 = vmatprep.mubr.f32.mxu1 %v2954_v48  ;;  %v7170_v7 = vld [vmem:[%s13383_s1 + $0xb0] sm:$0xff]  ;;  %v7171_v48 = vld [vmem:[%s13383_s1 + $0xb8] sm:$0xff] }
 0x6c8   :  { %8768 = vmatprep.mubr.f32.mxu0 %v3043_v62  ;;  %9810 = vmatpush3.bf16.msk.msra.mxu1 %vm11204_vm6, %v13693_v20  ;;  %v3131_v62 = vmul.f32 %v11539_v55, %v11830_v41 }
 0x6c9   :  { %9842 = vmatpush3.bf16.msk.msra.mxu0 %vm11204_vm6, %v13693_v20  ;;  %9812 = vmatprep.subr.msk.bf16.mxu1 %vm11238_vm9, %v13693_v20 }
 0x6ca   :  { %8731 = vmatmul.mubr.f32.gmra.mrb[50].mxu1 %v2955_v27  ;;  %9844 = vmatprep.subr.msk.bf16.mxu0 %vm11238_vm9, %v13693_v20  ;;  %v3220_v27 = vmul.f32 %v11553_v49, %v11830_v41 }
 0x6cb   :  { %8769 = vmatmul.mubr.f32.gmra.mrb[44].mxu0 %v3044_v15  ;;  %8803 = vmatprep.mubr.f32.mxu1 %v3130_v12  ;;  %v3132_v15 = vmul.f32 %v11583_v42, %v11863_v32  ;;  %v9875_v12 = vpack.c.bf16 %v7171_v48, %v7170_v7 }
 0x6cc   :  { %9814 = vmatpush3.bf16.msk.msra.mxu1 %vm11238_vm9, %v13693_v20  ;;  %8841 = vmatprep.mubr.f32.mxu0 %v3219_v5  ;;  %v3221_v5 = vmul.f32 %v11599_v45, %v11863_v32 }
 0x6cd   :  { %9846 = vmatpush3.bf16.msk.msra.mxu0 %vm11238_vm9, %v13693_v20  ;;  %9816 = vmatprep.subr.msk.bf16.mxu1 %vm11256_vm1, %v13693_v20 }
 0x6ce   :  { %9848 = vmatprep.subr.msk.bf16.mxu0 %vm11256_vm1, %v13693_v20 }
 0x6d0   :  { %9818 = vmatpush3.bf16.msk.msra.mxu1 %vm11256_vm1, %v13693_v20 }
 0x6d1   :  { %9850 = vmatpush3.bf16.msk.msra.mxu0 %vm11256_vm1, %v13693_v20  ;;  %9820 = vmatprep.subr.msk.bf16.mxu1 %vm11276_vm4, %v13693_v20 }
 0x6d2   :  { %9852 = vmatprep.subr.msk.bf16.mxu0 %vm11276_vm4, %v13693_v20 }
 0x6d4   :  { %9822 = vmatpush3.bf16.msk.msra.mxu1 %vm11276_vm4, %v13693_v20 }
 0x6d5   :  { %9854 = vmatpush3.bf16.msk.msra.mxu0 %vm11276_vm4, %v13693_v20  ;;  %9824 = vmatprep.subr.msk.bf16.mxu1 %vm11296_vm8, %v13693_v20 }
 0x6d6   :  { %9856 = vmatprep.subr.msk.bf16.mxu0 %vm11296_vm8, %v13693_v20 }
 0x6d8   :  { %9826 = vmatpush3.bf16.msk.msra.mxu1 %vm11296_vm8, %v13693_v20 }
 0x6d9   :  { %9858 = vmatpush3.bf16.msk.msra.mxu0 %vm11296_vm8, %v13693_v20  ;;  %9828 = vmatprep.subr.msk.bf16.mxu1 %vm11317_vm2, %v13693_v20 }
 0x6da   :  { %9860 = vmatprep.subr.msk.bf16.mxu0 %vm11317_vm2, %v13693_v20 }
 0x6dc   :  { %9830 = vmatpush3.bf16.msk.msra.mxu1 %vm11317_vm2, %v13693_v20 }
 0x6dd   :  { %9862 = vmatpush3.bf16.msk.msra.mxu0 %vm11317_vm2, %v13693_v20  ;;  %9832 = vmatprep.subr.msk.bf16.mxu1 %vm11334_vm7, %v13693_v20 }
 0x6de   :  { %9864 = vmatprep.subr.msk.bf16.mxu0 %vm11334_vm7, %v13693_v20 }
 0x6e0   :  { %9834 = vmatpush3.bf16.msk.msra.mxu1 %vm11334_vm7, %v13693_v20 }
 0x6e1   :  { %9866 = vmatpush3.bf16.msk.msra.mxu0 %vm11334_vm7, %v13693_v20  ;;  %9836 = vmatprep.subr.msk.bf16.mxu1 %vm11350_vm3, %v13693_v20 }
 0x6e2   :  { %9868 = vmatprep.subr.msk.bf16.mxu0 %vm11350_vm3, %v13693_v20 }
 0x6e4   :  { %9838 = vmatpush3.bf16.msk.msra.mxu1 %vm11350_vm3, %v13693_v20 }
 0x6e5   :  { %9870 = vmatpush3.bf16.msk.msra.mxu0 %vm11350_vm3, %v13693_v20  ;;  %9872 = vmatprep.subr.bf16.mxu1 %v9871_v54 }
 0x6e7   :  { %8804 = vmatmul.mubr.f32.vlgmr.msra.gmra.mrb[52].mxu1 %v3131_v62 }
 0x6e8   :  { %8842 = vmatmul.mubr.f32.vlgmr.msra.gmra.mrb[46].mxu0 %v3220_v27  ;;  %8806 = vmatprep.mubr.f32.mxu1 %v3132_v15 }
 0x6e9   :  { %8844 = vmatprep.mubr.f32.mxu0 %v3221_v5  ;;  %9874 = vmatpush3.bf16.msra.mxu1 %v9871_v54 }
 0x6ea   :  { %9876 = vmatprep.subr.bf16.mxu1 %v9875_v12 }
 0x6eb   :  { %8807 = vmatmul.mubr.f32.gmra.mrb[54].mxu1 %v3133_v1 }
 0x6ec   :  { %8845 = vmatmul.mubr.f32.gmra.mrb[48].mxu0 %v3222_v34 }
 0x6ed   :  { %9878 = vmatpush3.bf16.msra.mxu1 %v9875_v12 }
 0x6ee   :  { %9880 = vmatprep.subr.bf16.mxu1 %v13711_v4 }
 0x758   :  { %v12198_v7 = vpop.f32.mrb[40].mxu1  ;;  %v8615_v48 = vpop.f32.mrb[34].mxu0 }
 0x759   :  { %3314 = vrot.lane.b32.xlu0 %v8615_v48, %s10551_s29  ;;  %v12201_v62 = vpop.f32.mrb[41].mxu1  ;;  %v2755_v54 = vpop.f32.mrb[35].mxu0 }
 0x75a   :  { %3312 = vrot.lane.b32.xlu1 %v2755_v54, %s10551_s29 }
 0x763   :  { %v12204_v27 = vpop.f32.mrb[42].mxu1  ;;  %v8618_v15 = vpop.f32.mrb[36].mxu0 }
 0x764   :  { %v12206_v5 = vpop.f32.mrb[43].mxu1  ;;  %v2765_v1 = vpop.f32.mrb[37].mxu0 }
 0x778   :  { %v8653_v12 = vpop.f32.mrb[44].mxu1 }
 0x779   :  { %v8691_v34 = vpop.f32.mrb[38].mxu0  ;;  %3330 = vrot.lane.b32.xlu1 %v8653_v12, %s10552_s30  ;;  %v2844_v19 = vpop.f32.mrb[45].mxu1 }
 0x77a   :  { %3346 = vrot.lane.b32.xlu0 %v8691_v34, %s10553_s0  ;;  %v2933_v48 = vpop.f32.mrb[39].mxu0 }
 0x77c   :  { %v8656_v0 = vpop.f32.mrb[46].mxu1 }
 0x77d   :  { %v8694_v59 = vpop.f32.mrb[40].mxu0  ;;  %3328 = vrot.lane.b32.xlu1 %v2844_v19, %s10552_s30  ;;  %v2854_v54 = vpop.f32.mrb[47].mxu1 }
 0x77e   :  { %v2943_v45 = vpop.f32.mrb[41].mxu0 }
 0x781   :  { %3344 = vrot.lane.b32.xlu1 %v2933_v48, %s10553_s0 }
 0x799   :  { %v8729_v47 = vpop.f32.mrb[48].mxu1 }
 0x79a   :  { %v8767_v53 = vpop.f32.mrb[42].mxu0  ;;  %3362 = vrot.lane.b32.xlu0 %v8729_v47, %s10554_s5  ;;  %v3022_v38 = vpop.f32.mrb[49].mxu1 }
 0x79b   :  { %v3111_v12 = vpop.f32.mrb[43].mxu0  ;;  %3360 = vrot.lane.b32.xlu1 %v3022_v38, %s10554_s5 }
 0x79d   :  { %v8732_v58 = vpop.f32.mrb[50].mxu1 }
 0x79e   :  { %v8770_v34 = vpop.f32.mrb[44].mxu0  ;;  %3378 = vrot.lane.b32.xlu0 %v8767_v53, %s10555_s6  ;;  %v3032_v36 = vpop.f32.mrb[51].mxu1 }
 0x79f   :  { %v3121_v19 = vpop.f32.mrb[45].mxu0  ;;  %3376 = vrot.lane.b32.xlu1 %v3111_v12, %s10555_s6 }
 0x7ba   :  { %v8805_v42 = vpop.f32.mrb[52].mxu1 }
 0x7bb   :  { %v8843_v48 = vpop.f32.mrb[46].mxu0  ;;  %3394 = vrot.lane.b32.xlu0 %v8805_v42, %s10556_s7  ;;  %v3200_v17 = vpop.f32.mrb[53].mxu1 }
 0x7bc   :  { %v3289_v47 = vpop.f32.mrb[47].mxu0  ;;  %3392 = vrot.lane.b32.xlu1 %v3200_v17, %s10556_s7 }
 0x7be   :  { %v8808_v40 = vpop.f32.mrb[54].mxu1 }
 0x7bf   :  { %v8846_v38 = vpop.f32.mrb[48].mxu0  ;;  %3410 = vrot.lane.b32.xlu0 %v8843_v48, %s10557_s8  ;;  %v3210_v49 = vpop.f32.mrb[55].mxu1 }
 0x7c0   :  { %v3299_v53 = vpop.f32.mrb[49].mxu0  ;;  %3408 = vrot.lane.b32.xlu1 %v3289_v47, %s10557_s8 }
 0x7c3   :  { %3318 = vrot.lane.b32.xlu0 %v8618_v15, %s10551_s29 }
 0x7c4   :  { %3316 = vrot.lane.b32.xlu1 %v2765_v1, %s10551_s29 }
 0x7c7   :  { %3334 = vrot.lane.b32.xlu0 %v8656_v0, %s10552_s30 }
 0x7c8   :  { %3332 = vrot.lane.b32.xlu1 %v2854_v54, %s10552_s30 }
 0x7cb   :  { %3350 = vrot.lane.b32.xlu0 %v8694_v59, %s10553_s0 }
 0x7cc   :  { %3348 = vrot.lane.b32.xlu1 %v2943_v45, %s10553_s0  ;;  %v3313_v42 = vpop.permute.xlu1 %3312  ;;  %v3315_v45 = vpop.permute.xlu0 %3314 }
 0x7cf   :  { %3366 = vrot.lane.b32.xlu0 %v8732_v58, %s10554_s5 }
 0x7d0   :  { %3364 = vrot.lane.b32.xlu1 %v3032_v36, %s10554_s5 }
 0x7d3   :  { %3382 = vrot.lane.b32.xlu0 %v8770_v34, %s10555_s6 }
 0x7d4   :  { %3380 = vrot.lane.b32.xlu1 %v3121_v19, %s10555_s6 }
 0x7d7   :  { %3398 = vrot.lane.b32.xlu0 %v8808_v40, %s10556_s7  ;;  %v3421_v40 = vsel %vm13704_vm11, %v12198_v7, %v3315_v45  ;;  %vm13518_vm11 = vcmask 228352  }
 0x7d8   :  { %3396 = vrot.lane.b32.xlu1 %v3210_v49, %s10556_s7  ;;  %v3420_v49 = vsel %vm13712_vm15, %v12201_v62, %v3313_v42  ;;  %vm13713_vm15 = vcmask 261120  }
 0x7db   :  { %3414 = vrot.lane.b32.xlu0 %v8846_v38, %s10557_s8 }
 0x7dc   :  { %3412 = vrot.lane.b32.xlu1 %v3299_v53, %s10557_s8 }
 0x7eb   :  { %v3331_v17 = vpop.permute.xlu1 %3330 }
 0x7ec   :  { %v3347_v0 = vpop.permute.xlu0 %3346  ;;  %v3426_v12 = vsel %vm13526_vm0, %v3421_v40, %v3331_v17 }
 0x7ed   :  { %v3431_v38 = vsel %vm13517_vm14, %v3426_v12, %v3347_v0  ;;  %v13716_v12 = vld [vmem:[#allocation28_spill] sm:$0xff] }
 0x7ef   :  { %v3329_v59 = vpop.permute.xlu1 %3328 }
 0x7f0   :  { %v3425_v19 = vsel %vm13526_vm0, %v3420_v49, %v3329_v59 }
 0x7f3   :  { %v3345_v58 = vpop.permute.xlu1 %3344 }
 0x7f4   :  { %v3430_v47 = vsel %vm13517_vm14, %v3425_v19, %v3345_v58  ;;  %vm13714_vm14 = vmmov %vm13713_vm15 }
 0x80c   :  { %v3363_v15 = vpop.permute.xlu0 %3362 }
 0x80d   :  { %v3361_v36 = vpop.permute.xlu1 %3360  ;;  %v3436_v7 = vsel %vm13520_vm10, %v3431_v38, %v3363_v15 }
 0x80e   :  { %v3435_v53 = vsel %vm13520_vm10, %v3430_v47, %v3361_v36  ;;  %v13715_v36 = vld [vmem:[#allocation31_spill] sm:$0xff] }
 0x810   :  { %v3379_v1 = vpop.permute.xlu0 %3378 }
 0x811   :  { %v3377_v54 = vpop.permute.xlu1 %3376  ;;  %v3441_v17 = vsel %vm13525_vm12, %v3436_v7, %v3379_v1 }
 0x812   :  { %v3440_v62 = vsel %vm13525_vm12, %v3435_v53, %v3377_v54 }
 0x82d   :  { %v3395_v34 = vpop.permute.xlu0 %3394 }
 0x82e   :  { %v3393_v48 = vpop.permute.xlu1 %3392  ;;  %v3446_v40 = vsel %vm13519_vm13, %v3441_v17, %v3395_v34 }
 0x82f   :  { %v3445_v45 = vsel %vm13519_vm13, %v3440_v62, %v3393_v48  ;;  %v13717_v48 = vld [vmem:[#allocation32_spill] sm:$0xff]  ;;  %v13719_v62 = vld [vmem:[#allocation33_spill] sm:$0xff] }
 0x831   :  { %v3411_v42 = vpop.permute.xlu0 %3410 }
 0x832   :  { %v3409_v59 = vpop.permute.xlu1 %3408  ;;  %v3451_v49 = vsel %vm13518_vm11, %v3446_v40, %v3411_v42 }
 0x833   :  { %v3450_v58 = vsel %vm13518_vm11, %v3445_v45, %v3409_v59  ;;  %vm13722_vm11 = vcmask 97280  }
 0x834   :  { %8855 = vmatprep.mubr.msk.f32.mxu1 %vm13713_vm15, %v3450_v58  ;;  %vm13724_vm13 = vmmov %vm13722_vm11 }
 0x835   :  { %v3319_v0 = vpop.permute.xlu0 %3318  ;;  %8856 = vmatmul.mubr.msk.f32.vlgmr.msra.gmra.mrb[56].mxu1 %vm13714_vm14, %v3451_v49  ;;  %vm13720_vm14 = vcmask 31744  }
 0x836   :  { %9882 = vmatpush3.bf16.msra.mxu1 %v13711_v4  ;;  %v3317_v15 = vpop.permute.xlu1 %3316  ;;  %v13718_v4 = vld [vmem:[#allocation29_spill] sm:$0xff]  ;;  %vm13721_vm15 = vmmov %vm13720_vm14 }
 0x837   :  { %9884 = vmatprep.subr.bf16.mxu1 %v13715_v36  ;;  %v3422_v42 = vsel %vm13720_vm14, %v12206_v5, %v3317_v15  ;;  %v3423_v45 = vsel %vm13721_vm15, %v12204_v27, %v3319_v0  ;;  %v7172_v5 = vld [vmem:[%s13383_s1 + $0xc0] sm:$0xff]  ;;  %v7173_v27 = vld [vmem:[%s13383_s1 + $0xc8] sm:$0xff]  ;;  %vm13728_vm14 = vcmask 228352  }
 0x838   :  { %vm13729_vm15 = vmmov %vm13728_vm14 }
 0x839   :  { %v3335_v1 = vpop.permute.xlu0 %3334 }
 0x83a   :  { %9886 = vmatpush3.bf16.msra.mxu1 %v13715_v36  ;;  %v3333_v54 = vpop.permute.xlu1 %3332  ;;  %v3428_v58 = vsel %vm13526_vm0, %v3423_v45, %v3335_v1  ;;  %v13723_v36 = vld [vmem:[#allocation30_spill] sm:$0xff] }
 0x83b   :  { %9888 = vmatprep.subr.bf16.mxu1 %v13716_v12  ;;  %v3427_v59 = vsel %vm13526_vm0, %v3422_v42, %v3333_v54  ;;  %v9911_v42 = vpack.c.bf16 %v7173_v27, %v7172_v5 }
 0x83d   :  { %v3351_v34 = vpop.permute.xlu0 %3350 }
 0x83e   :  { %9890 = vmatpush3.bf16.msra.mxu1 %v13716_v12  ;;  %v3349_v19 = vpop.permute.xlu1 %3348  ;;  %v3433_v12 = vsel %vm13724_vm13, %v3428_v58, %v3351_v34 }
 0x83f   :  { %9892 = vmatprep.subr.bf16.mxu1 %v13717_v48  ;;  %v3432_v49 = vsel %vm13722_vm11, %v3427_v59, %v3349_v19  ;;  %vm13725_vm11 = vcmask 195584   ;;  %v13733_v59 = vld [vmem:[#allocation8_spill] sm:$0xff] }
 0x840   :  { %vm13726_vm13 = vmmov %vm13725_vm11 }
 0x841   :  { %v3367_v47 = vpop.permute.xlu0 %3366 }
 0x842   :  { %9894 = vmatpush3.bf16.msra.mxu1 %v13717_v48  ;;  %v3365_v38 = vpop.permute.xlu1 %3364  ;;  %v3438_v0 = vsel %vm13520_vm10, %v3433_v12, %v3367_v47  ;;  %v7174_v47 = vld [vmem:[%s13383_s1 + $0xd0] sm:$0xff]  ;;  %v3727_v12 = vsub.s32 1, %v10649_v31 }
 0x843   :  { %9896 = vmatprep.subr.bf16.mxu1 %v13718_v4  ;;  %v3437_v48 = vsel %vm13520_vm10, %v3432_v49, %v3365_v38  ;;  %vm13730_vm10 = vcmask 261120   ;;  %v7179_v49 = vld [vmem:[%s13383_s1 + $0xf8] sm:$0xff] }
 0x845   :  { %v3383_v53 = vpop.permute.xlu0 %3382 }
 0x846   :  { %9898 = vmatpush3.bf16.msra.mxu1 %v13718_v4  ;;  %v3381_v7 = vpop.permute.xlu1 %3380  ;;  %v3443_v54 = vsel %vm13525_vm12, %v3438_v0, %v3383_v53  ;;  %v13727_v4 = vld [vmem:[#allocation34_spill] sm:$0xff]  ;;  %v7175_v53 = vld [vmem:[%s13383_s1 + $0xd8] sm:$0xff] }
 0x847   :  { %9900 = vmatprep.subr.bf16.mxu1 %v13719_v62  ;;  %v3442_v15 = vsel %vm13525_vm12, %v3437_v48, %v3381_v7  ;;  %v9915_v7 = vpack.c.bf16 %v7175_v53, %v7174_v47  ;;  %v12325_v48 = vld [vmem:[%s13384_s2] sm:$0x3f]  ;;  %vm13754_vm12 = vcmask 1043456  }
 0x848   :  { %v3728_v5 = vrot.slane %v12325_v48, %v3727_v12 }
 0x849   :  { %v3399_v17 = vpop.permute.xlu0 %3398 }
 0x84a   :  { %9902 = vmatpush3.bf16.msra.mxu1 %v13719_v62  ;;  %v3397_v40 = vpop.permute.xlu1 %3396  ;;  %v3448_v38 = vsel %vm13726_vm13, %v3443_v54, %v3399_v17  ;;  %v13732_v17 = vld [vmem:[#allocation7_spill] sm:$0xff]  ;;  %vm13734_vm13 = vmmov %vm13730_vm10 }
 0x84b   :  { %9904 = vmatprep.subr.bf16.mxu1 %v13723_v36  ;;  %v3447_v19 = vsel %vm13725_vm11, %v3442_v15, %v3397_v40  ;;  %vm13731_vm11 = vmmov %vm13730_vm10  ;;  %v13735_v40 = vld [vmem:[#allocation9_spill] sm:$0xff] }
 0x84d   :  { %v3415_v1 = vpop.permute.xlu0 %3414 }
 0x84e   :  { %9906 = vmatpush3.bf16.msra.mxu1 %v13723_v36  ;;  %v3413_v34 = vpop.permute.xlu1 %3412  ;;  %v3453_v45 = vsel %vm13729_vm15, %v3448_v38, %v3415_v1  ;;  %vm13738_vm15 = vmmov %vm13730_vm10 }
 0x84f   :  { %9908 = vmatprep.subr.bf16.mxu1 %v13727_v4  ;;  %v3452_v62 = vsel %vm13728_vm14, %v3447_v19, %v3413_v34  ;;  %vm13736_vm14 = vmmov %vm13730_vm10 }
 0x850   :  { %8858 = vmatprep.mubr.msk.f32.mxu1 %vm13730_vm10, %v3452_v62 }
 0x851   :  { %8859 = vmatmul.mubr.msk.f32.gmra.mrb[58].mxu1 %vm13731_vm11, %v3453_v45  ;;  %vm13739_vm11 = vmmov %vm13730_vm10 }
 0x852   :  { %9910 = vmatpush3.bf16.msra.mxu1 %v13727_v4  ;;  %8893 = vmatprep.mubr.f32.mxu1 %v11832_v39  ;;  %v13737_v39 = vld [vmem:[#allocation10_spill] sm:$0xff] }
 0x853   :  { %9912 = vmatprep.subr.bf16.mxu1 %v9911_v42 }
 0x855   :  { %8894 = vmatmul.mubr.f32.vlgmr.msra.gmra.mrb[56].mxu1 %v11830_v41  ;;  %v7176_v41 = vld [vmem:[%s13383_s1 + $0xe0] sm:$0xff] }
 0x856   :  { %8896 = vmatprep.mubr.f32.mxu1 %v11863_v32  ;;  %9914 = vmatpush3.bf16.msra.mxu1 %v9911_v42  ;;  %v7178_v32 = vld [vmem:[%s13383_s1 + $0xf0] sm:$0xff] }
 0x857   :  { %9916 = vmatprep.subr.bf16.mxu1 %v9915_v7  ;;  %v9923_v36 = vpack.c.bf16 %v7179_v49, %v7178_v32 }
 0x859   :  { %8897 = vmatmul.mubr.f32.gmra.mrb[58].mxu1 %v11854_v10  ;;  %v7177_v10 = vld [vmem:[%s13383_s1 + $0xe8] sm:$0xff] }
 0x85a   :  { %9918 = vmatpush3.bf16.msra.mxu1 %v9915_v7  ;;  %8907 = vmatprep.mubr.msk.f32.mxu1 %vm13730_vm10, %v13732_v17  ;;  %v9919_v58 = vpack.c.bf16 %v7177_v10, %v7176_v41 }
 0x85c   :  { %9920 = vmatprep.subr.bf16.mxu0 %v9919_v58 }
 0x85d   :  { %8908 = vmatmul.mubr.msk.f32.vlgmr.msra.gmra.mrb[56].mxu1 %vm13734_vm13, %v13733_v59  ;;  %9922 = vmatpush3.bf16.msra.mxu0 %v9919_v58  ;;  %vm13740_vm13 = vmmov %vm13730_vm10 }
 0x85e   :  { %8910 = vmatprep.mubr.msk.f32.mxu1 %vm13736_vm14, %v13735_v40  ;;  %9924 = vmatprep.subr.bf16.mxu0 %v9923_v36  ;;  %vm13741_vm14 = vmmov %vm13730_vm10 }
 0x861   :  { %8911 = vmatmul.mubr.msk.f32.gmra.mrb[58].mxu1 %vm13738_vm15, %v13737_v39  ;;  %9926 = vmatpush3.bf16.msra.mxu0 %v9923_v36  ;;  %vm13744_vm15 = vmmov %vm13730_vm10 }
 0x930   :  { %v8909_v27 = vpop.f32.mrb[56].mxu1 }
 0x931   :  { %v3730_v0 = vadd.f32 %v8909_v27, %v3728_v5  ;;  %v3702_v15 = vpop.f32.mrb[57].mxu1 }
 0x932   :  { %v3729_v1 = vadd.f32 %v3728_v5, %v3702_v15 }
 0x933   :  { %v3738_v54 = vmul.f32 0.044715, %v3730_v0 }
 0x934   :  { %v3737_v19 = vmul.f32 0.044715, %v3729_v1  ;;  %v8912_v34 = vpop.f32.mrb[58].mxu1 }
 0x935   :  { %v3742_v38 = vmul.f32 %v3738_v54, %v3730_v0  ;;  %v3732_v4 = vadd.f32 %v8912_v34, %v3728_v5  ;;  %v3712_v62 = vpop.f32.mrb[59].mxu1 }
 0x936   :  { %v3741_v42 = vmul.f32 %v3737_v19, %v3729_v1  ;;  %v3731_v45 = vadd.f32 %v3728_v5, %v3712_v62 }
 0x937   :  { %v3746_v47 = vmul.f32 %v3742_v38, %v3730_v0  ;;  %v3740_v53 = vmul.f32 0.044715, %v3732_v4  ;;  %v3734_v38 = vmul.f32 0.5, %v3730_v0 }
 0x938   :  { %v3745_v7 = vmul.f32 %v3741_v42, %v3729_v1  ;;  %v3739_v41 = vmul.f32 0.044715, %v3731_v45  ;;  %v3733_v42 = vmul.f32 0.5, %v3729_v1 }
 0x939   :  { %v3750_v10 = vadd.f32 %v3746_v47, %v3730_v0  ;;  %v3744_v32 = vmul.f32 %v3740_v53, %v3732_v4 }
 0x93a   :  { %v3749_v58 = vadd.f32 %v3745_v7, %v3729_v1  ;;  %v3743_v49 = vmul.f32 %v3739_v41, %v3731_v45 }
 0x93b   :  { %v3754_v36 = vmul.f32 0.7978846, %v3750_v10  ;;  %v3748_v12 = vmul.f32 %v3744_v32, %v3732_v4  ;;  %v3736_v32 = vmul.f32 0.5, %v3732_v4 }
 0x93c   :  { %v3753_v27 = vmul.f32 0.7978846, %v3749_v58  ;;  %v3747_v15 = vmul.f32 %v3743_v49, %v3731_v45 }
 0x93d   :  { %10461 = vtanh.f32 %v3754_v36  ;;  %v3752_v11 = vadd.f32 %v3748_v12, %v3732_v4  ;;  %v3735_v36 = vmul.f32 0.5, %v3731_v45 }
 0x93e   :  { %10463 = vtanh.f32 %v3753_v27  ;;  %v3751_v54 = vadd.f32 %v3747_v15, %v3731_v45  ;;  %v7404_v45 = vld [vmem:[%s13383_s1 + $0x118] sm:$0xff]  ;;  %v7405_v15 = vld [vmem:[%s13383_s1 + $0x120] sm:$0xff] }
 0x93f   :  { %v3756_v34 = vmul.f32 0.7978846, %v3752_v11 }
 0x940   :  { %v3755_v55 = vmul.f32 0.7978846, %v3751_v54  ;;  %v7406_v54 = vld [vmem:[%s13383_s1 + $0x128] sm:$0xff] }
 0x941   :  { %10465 = vtanh.f32 %v3756_v34  ;;  %v12366_v34 = vpack.c.bf16 %v7406_v54, %v7405_v15 }
 0x942   :  { %10467 = vtanh.f32 %v3755_v55 }
 0x947   :  { %v10462_v5 = vpop.eup %10461 }
 0x948   :  { %v10464_v19 = vpop.eup %10463  ;;  %v3762_v62 = vadd.f32 1.0, %v10462_v5  ;;  %v7413_v5 = vld [vmem:[%s13383_s1 + $0x160] sm:$0xff] }
 0x949   :  { %v3761_v47 = vadd.f32 1.0, %v10464_v19  ;;  %v7414_v19 = vld [vmem:[%s13383_s1 + $0x168] sm:$0xff] }
 0x94a   :  { %v3766_v53 = vmul.f32 %v3762_v62, %v3734_v38  ;;  %v7415_v38 = vld [vmem:[%s13383_s1 + $0x170] sm:$0xff]  ;;  %v9951_v62 = vpack.c.bf16 %v7414_v19, %v7413_v5 }
 0x94b   :  { %v10466_v7 = vpop.eup %10465  ;;  %v3765_v41 = vmul.f32 %v3761_v47, %v3733_v42  ;;  %v7416_v42 = vld [vmem:[%s13383_s1 + $0x178] sm:$0xff] }
 0x94c   :  { %v10468_v10 = vpop.eup %10467  ;;  %v3764_v58 = vadd.f32 1.0, %v10466_v7  ;;  %v12332_v12 = vadd.f32 %v3766_v53, %v13733_v59  ;;  %v7402_v59 = vld [vmem:[%s13383_s1 + $0x108] sm:$0xff]  ;;  %v9955_v47 = vpack.c.bf16 %v7416_v42, %v7415_v38  ;;  %9952 = vmatprep.subr.bf16.mxu1 %v9951_v62  ;;  %v3775_v53 = vsub.s32 2, %v10649_v31  ;;  %v13776_v31 = vld [vmem:[#allocation20_spill] sm:$0xff] }
 0x94d   :  { %v12329_v49 = vadd.f32 %v3765_v41, %v13732_v17  ;;  %v3763_v11 = vadd.f32 1.0, %v10468_v10  ;;  %v7401_v17 = vld [vmem:[%s13383_s1 + $0x100] sm:$0xff]  ;;  %9954 = vmatpush3.bf16.msra.mxu1 %v9951_v62 }
 0x94e   :  { %v3768_v55 = vmul.f32 %v3764_v58, %v3736_v32  ;;  %9956 = vmatprep.subr.bf16.mxu1 %v9955_v47  ;;  %v3776_v7 = vrot.slane %v12325_v48, %v3775_v53 }
 0x94f   :  { %8921 = vmatprep.mubr.msk.f32.mxu0 %vm13739_vm11, %v12329_v49  ;;  %v3767_v0 = vmul.f32 %v3763_v11, %v3735_v36  ;;  %vm13745_vm11 = vmmov %vm13730_vm10 }
 0x950   :  { %8922 = vmatmul.mubr.msk.f32.vlgmr.msra.gmra.mrb[50].mxu0 %vm13730_vm10, %v12332_v12  ;;  %v12342_v4 = vadd.f32 %v3768_v55, %v13737_v39  ;;  %v9927_v39 = vpack.c.bf16 %v7402_v59, %v7401_v17 }
 0x951   :  { %v12339_v1 = vadd.f32 %v3767_v0, %v13735_v40  ;;  %v7403_v40 = vld [vmem:[%s13383_s1 + $0x110] sm:$0xff]  ;;  %9958 = vmatpush3.bf16.msra.mxu1 %v9955_v47 }
 0x952   :  { %v9931_v27 = vpack.c.bf16 %v7404_v45, %v7403_v40  ;;  %9928 = vmatprep.subr.bf16.mxu0 %v9927_v39 }
 0x953   :  { %8924 = vmatprep.mubr.msk.f32.mxu0 %vm13740_vm13, %v12339_v1  ;;  %9930 = vmatpush3.bf16.msra.mxu0 %v9927_v39  ;;  %vm13748_vm13 = vmmov %vm13730_vm10 }
 0x954   :  { %8925 = vmatmul.mubr.msk.f32.gmra.mrb[52].mxu0 %vm13741_vm14, %v12342_v4  ;;  %9932 = vmatprep.subr.bf16.mxu0 %v9931_v27  ;;  %vm13749_vm14 = vmmov %vm13730_vm10 }
 0x957   :  { %9934 = vmatpush3.bf16.msra.mxu0 %v9931_v27 }
 0x958   :  { %9936 = vmatprep.subr.bf16.mxu0 %v12366_v34 }
 0xa23   :  { %v8923_v41 = vpop.f32.mrb[50].mxu0 }
 0xa24   :  { %v3861_v10 = vadd.f32 %v8923_v41, %v3776_v7  ;;  %v3855_v32 = vpop.f32.mrb[51].mxu0 }
 0xa25   :  { %v3856_v58 = vadd.f32 %v3855_v32, %v3776_v7 }
 0xa26   :  { %v3879_v36 = vmul.f32 0.044715, %v3861_v10 }
 0xa27   :  { %v3878_v11 = vmul.f32 0.044715, %v3856_v58  ;;  %v8926_v55 = vpop.f32.mrb[52].mxu0 }
 0xa28   :  { %v3883_v0 = vmul.f32 %v3879_v36, %v3861_v10  ;;  %v3871_v17 = vadd.f32 %v8926_v55, %v3776_v7  ;;  %v3865_v59 = vpop.f32.mrb[53].mxu0 }
 0xa29   :  { %v3882_v40 = vmul.f32 %v3878_v11, %v3856_v58  ;;  %v3866_v39 = vadd.f32 %v3865_v59, %v3776_v7 }
 0xa2a   :  { %v3887_v45 = vmul.f32 %v3883_v0, %v3861_v10  ;;  %v3881_v27 = vmul.f32 0.044715, %v3871_v17  ;;  %v3875_v0 = vmul.f32 0.5, %v3861_v10 }
 0xa2b   :  { %v3886_v15 = vmul.f32 %v3882_v40, %v3856_v58  ;;  %v3880_v54 = vmul.f32 0.044715, %v3866_v39  ;;  %v3874_v40 = vmul.f32 0.5, %v3856_v58 }
 0xa2c   :  { %v3891_v5 = vadd.f32 %v3887_v45, %v3861_v10  ;;  %v3885_v19 = vmul.f32 %v3881_v27, %v3871_v17 }
 0xa2d   :  { %v3890_v38 = vadd.f32 %v3886_v15, %v3856_v58  ;;  %v3884_v48 = vmul.f32 %v3880_v54, %v3866_v39 }
 0xa2e   :  { %v3895_v62 = vmul.f32 0.7978846, %v3891_v5  ;;  %v3889_v42 = vmul.f32 %v3885_v19, %v3871_v17  ;;  %v7407_v5 = vld [vmem:[%s13383_s1 + $0x130] sm:$0xff]  ;;  %v7408_v19 = vld [vmem:[%s13383_s1 + $0x138] sm:$0xff] }
 0xa2f   :  { %v3894_v47 = vmul.f32 0.7978846, %v3890_v38  ;;  %v3888_v53 = vmul.f32 %v3884_v48, %v3866_v39  ;;  %v3877_v48 = vmul.f32 0.5, %v3871_v17 }
 0xa30   :  { %10469 = vtanh.f32 %v3895_v62  ;;  %v3893_v41 = vadd.f32 %v3889_v42, %v3871_v17  ;;  %v3876_v42 = vmul.f32 0.5, %v3866_v39  ;;  %v7410_v17 = vld [vmem:[%s13383_s1 + $0x148] sm:$0xff] }
 0xa31   :  { %10471 = vtanh.f32 %v3894_v47  ;;  %v3892_v32 = vadd.f32 %v3888_v53, %v3866_v39 }
 0xa32   :  { %v3897_v36 = vmul.f32 0.7978846, %v3893_v41  ;;  %v9939_v41 = vpack.c.bf16 %v7408_v19, %v7407_v5  ;;  %v13764_v5 = vld [vmem:[#allocation11_spill] sm:$0xff] }
 0xa33   :  { %v3896_v55 = vmul.f32 0.7978846, %v3892_v32 }
 0xa34   :  { %10473 = vtanh.f32 %v3897_v36  ;;  %v7409_v36 = vld [vmem:[%s13383_s1 + $0x140] sm:$0xff] }
 0xa35   :  { %10475 = vtanh.f32 %v3896_v55  ;;  %v9943_v39 = vpack.c.bf16 %v7410_v17, %v7409_v36  ;;  %v7411_v55 = vld [vmem:[%s13383_s1 + $0x150] sm:$0xff]  ;;  %v13769_v17 = vld [vmem:[#allocation16_spill] sm:$0xff] }
 0xa3a   :  { %v10470_v7 = vpop.eup %10469 }
 0xa3b   :  { %v10472_v11 = vpop.eup %10471  ;;  %v3903_v59 = vadd.f32 1.0, %v10470_v7  ;;  %v7412_v7 = vld [vmem:[%s13383_s1 + $0x158] sm:$0xff] }
 0xa3c   :  { %v3902_v45 = vadd.f32 1.0, %v10472_v11 }
 0xa3d   :  { %v3907_v27 = vmul.f32 %v3903_v59, %v3875_v0 }
 0xa3e   :  { %v10474_v15 = vpop.eup %10473  ;;  %v3906_v54 = vmul.f32 %v3902_v45, %v3874_v40 }
 0xa3f   :  { %v10476_v38 = vpop.eup %10475  ;;  %v3905_v62 = vadd.f32 1.0, %v10474_v15  ;;  %v12393_v47 = vadd.f32 %v3907_v27, %v12332_v12 }
 0xa40   :  { %v12390_v10 = vadd.f32 %v3906_v54, %v12329_v49  ;;  %v3904_v58 = vadd.f32 1.0, %v10476_v38  ;;  %v13765_v38 = vld [vmem:[#allocation12_spill] sm:$0xff] }
 0xa41   :  { %13743 = vst [vmem:[#allocation41_spill] sm:$0xff] %v12393_v47  ;;  %v3909_v53 = vmul.f32 %v3905_v62, %v3877_v48  ;;  %v13766_v62 = vld [vmem:[#allocation13_spill] sm:$0xff] }
 0xa42   :  { %13742 = vst [vmem:[#allocation40_spill] sm:$0xff] %v12390_v10  ;;  %8935 = vmatprep.mubr.msk.f32.mxu0 %vm13744_vm15, %v12390_v10  ;;  %v3908_v32 = vmul.f32 %v3904_v58, %v3876_v42  ;;  %vm13750_vm15 = vmmov %vm13730_vm10  ;;  %v13767_v58 = vld [vmem:[#allocation14_spill] sm:$0xff] }
 0xa43   :  { %8936 = vmatmul.mubr.msk.f32.vlgmr.msra.gmra.mrb[54].mxu0 %vm13745_vm11, %v12393_v47  ;;  %v12410_v12 = vadd.f32 %v3909_v53, %v12342_v4  ;;  %vm13751_vm11 = vmmov %vm13730_vm10  ;;  %v13753_v4 = vld [vmem:[#allocation35_spill] sm:$0xff] }
 0xa44   :  { %9938 = vmatpush3.bf16.msra.mxu0 %v12366_v34  ;;  %v12407_v49 = vadd.f32 %v3908_v32, %v12339_v1  ;;  %v9947_v1 = vpack.c.bf16 %v7412_v7, %v7411_v55  ;;  %v13768_v32 = vld [vmem:[#allocation15_spill] sm:$0xff]  ;;  %v13770_v55 = vld [vmem:[#allocation17_spill] sm:$0xff] }
 0xa45   :  { %13747 = vst [vmem:[#allocation43_spill] sm:$0xff] %v12410_v12  ;;  %9940 = vmatprep.subr.bf16.mxu0 %v9939_v41 }
 0xa46   :  { %13746 = vst [vmem:[#allocation42_spill] sm:$0xff] %v12407_v49  ;;  %8938 = vmatprep.mubr.msk.f32.mxu0 %vm13730_vm10, %v12407_v49 }
 0xa47   :  { %8939 = vmatmul.mubr.msk.f32.gmra.mrb[56].mxu0 %vm13748_vm13, %v12410_v12  ;;  %vm13752_vm13 = vmmov %vm13730_vm10 }
 0xa48   :  { %9942 = vmatpush3.bf16.msra.mxu0 %v9939_v41  ;;  %8949 = vmatprep.mubr.msk.f32.mxu0 %vm13749_vm14, %v12390_v10  ;;  %vm13755_vm14 = vmmov %vm13730_vm10 }
 0xa49   :  { %9944 = vmatprep.subr.bf16.mxu0 %v9943_v39 }
 0xa4b   :  { %8950 = vmatmul.mubr.msk.f32.vlgmr.msra.gmra.mrb[58].mxu0 %vm13750_vm15, %v12393_v47  ;;  %vm13756_vm15 = vmmov %vm13730_vm10 }
 0xa4c   :  { %8952 = vmatprep.mubr.msk.f32.mxu0 %vm13751_vm11, %v12407_v49  ;;  %9946 = vmatpush3.bf16.msra.mxu0 %v9943_v39  ;;  %vm13757_vm11 = vmmov %vm13754_vm12 }
 0xa4d   :  { %9948 = vmatprep.subr.bf16.mxu0 %v9947_v1  ;;  %vm13758_vm0 = vmmov %vm13757_vm11 }
 0xa4f   :  { %8953 = vmatmul.mubr.msk.f32.gmra.mrb[60].mxu0 %vm13730_vm10, %v12410_v12 }
 0xa50   :  { %9950 = vmatpush3.bf16.msra.mxu0 %v9947_v1  ;;  %8963 = vmatprep.mubr.msk.f32.mxu0 %vm13752_vm13, %v12390_v10  ;;  %vm13759_vm13 = vmmov %vm13730_vm10  ;;  %v13771_v1 = vld [vmem:[#allocation18_spill] sm:$0xff]  ;;  %v13797_v10 = vld [vmem:[#allocation36_spill] sm:$0xff] }
 0xa51   :  { %8983 = vmatprep.subr.msk.mxu0 %vm13754_vm12, %v13753_v4  ;;  %vm13760_vm12 = vmmov %vm13730_vm10 }
 0xa53   :  { %8964 = vmatmul.mubr.msk.f32.vlgmr.msra.gmra.mrb[62].mxu0 %vm13755_vm14, %v12393_v47  ;;  %vm13761_vm14 = vmmov %vm13730_vm10 }
 0xa54   :  { %8966 = vmatprep.mubr.msk.f32.mxu0 %vm13756_vm15, %v12407_v49  ;;  %8984 = vmatpush3.msk.msra.mxu0 %vm13757_vm11, %v13753_v4  ;;  %v13778_v49 = vld [vmem:[#allocation22_spill] sm:$0xff]  ;;  %vm13786_vm11 = vcmask 31744  }
 0xa55   :  { %9005 = vmatprep.subr.msk.mxu0 %vm13758_vm0, %v13753_v4  ;;  %vm13762_vm0 = vmmov %vm13730_vm10 }
 0xa56   :  { %vm13763_vm15 = vmmov %vm13762_vm0 }
 0xa57   :  { %8967 = vmatmul.mubr.msk.f32.gmra.mrb[64].mxu0 %vm13730_vm10, %v12410_v12  ;;  %v13777_v12 = vld [vmem:[#allocation21_spill] sm:$0xff]  ;;  %vm13787_vm10 = vmmov %vm13786_vm11 }
 0xb16   :  { %v12444_v34 = vpop.f32.mrb[54].mxu0 }
 0xb17   :  { %v4027_v11 = vpop.f32.mrb[55].mxu0 }
 0xb18   :  { %8977 = vmatprep.mubr.msk.f32.mxu1 %vm13759_vm13, %v4027_v11  ;;  %vm13788_vm13 = vcmask 1043456  }
 0xb19   :  { %8978 = vmatmul.mubr.msk.f32.vlgmr.msra.gmra.mrb[60].mxu1 %vm13760_vm12, %v12444_v34  ;;  %vm13789_vm12 = vmmov %vm13788_vm13 }
 0xb1a   :  { %v12449_v0 = vpop.f32.mrb[56].mxu0 }
 0xb1b   :  { %v12451_v59 = vpop.f32.mrb[57].mxu0 }
 0xb1c   :  { %8980 = vmatprep.mubr.msk.f32.mxu1 %vm13761_vm14, %v12451_v59  ;;  %vm13790_vm14 = vmmov %vm13787_vm10 }
 0xb1d   :  { %8981 = vmatmul.mubr.msk.f32.gmra.mrb[62].mxu1 %vm13762_vm0, %v12449_v0  ;;  %vm13791_vm0 = vmmov %vm13787_vm10 }
 0xb1e   :  { %v8951_v40 = vpop.f32.mrb[58].mxu0  ;;  %8999 = vmatprep.mubr.msk.f32.mxu1 %vm13763_vm15, %v4027_v11 }
 0xb1f   :  { %v4112_v45 = vpop.f32.mrb[59].mxu0 }
 0xb20   :  { %4216 = vxpose.xlu1.b32.start [1/4] (short) (narrow) %v4112_v45, 32 }
 0xb22   :  { %v8954_v27 = vpop.f32.mrb[60].mxu0 }
 0xb23   :  { %v4122_v15 = vpop.f32.mrb[61].mxu0 }
 0xb24   :  { %4217 = vxpose.xlu1.b32.cont [2/4] (short) (narrow) %v8951_v40, 32 }
 0xb26   :  { %v8965_v54 = vpop.f32.mrb[62].mxu0 }
 0xb27   :  { %v5569_v19 = vmul.f32 %v8965_v54, %v13764_v5  ;;  %v5573_v48 = vmul.f32 %v8965_v54, %v13765_v38  ;;  %v5577_v42 = vmul.f32 %v8965_v54, %v13766_v62  ;;  %v5581_v53 = vmul.f32 %v8965_v54, %v13767_v58  ;;  %v4197_v41 = vpop.f32.mrb[63].mxu0  ;;  %v13775_v54 = vld [vmem:[#allocation19_spill] sm:$0xff] }
 0xb28   :  { %v5568_v36 = vmul.f32 %v13768_v32, %v4197_v41  ;;  %v5572_v39 = vmul.f32 %v13769_v17, %v4197_v41  ;;  %v5576_v7 = vmul.f32 %v13770_v55, %v4197_v41  ;;  %v5580_v11 = vmul.f32 %v13771_v1, %v4197_v41  ;;  %4218 = vxpose.xlu1.b32.cont [3/4] (short) (narrow) %v4122_v15, 32  ;;  %v13779_v41 = vld [vmem:[#allocation23_spill] sm:$0xff]  ;;  %v13780_v1 = vld [vmem:[#allocation24_spill] sm:$0xff] }
 0xb2a   :  { %v8968_v40 = vpop.f32.mrb[64].mxu0  ;;  %v12466_v45 = vpack.c.bf16 %v5569_v19, %v5568_v36  ;;  %v12468_v5 = vpack.c.bf16 %v5573_v48, %v5572_v39  ;;  %v12470_v38 = vpack.c.bf16 %v5577_v42, %v5576_v7  ;;  %v12472_v62 = vpack.c.bf16 %v5581_v53, %v5580_v11  ;;  %v13781_v36 = vld [vmem:[#allocation25_spill] sm:$0xff]  ;;  %v13782_v39 = vld [vmem:[#allocation26_spill] sm:$0xff] }
 0xb2b   :  { %v5571_v58 = vmul.f32 %v8968_v40, %v13775_v54  ;;  %v5575_v32 = vmul.f32 %v8968_v40, %v13776_v31  ;;  %v5579_v17 = vmul.f32 %v8968_v40, %v13777_v12  ;;  %v5583_v55 = vmul.f32 %v8968_v40, %v13778_v49  ;;  %v4207_v47 = vpop.f32.mrb[65].mxu0 }
 0xb2c   :  { %13772 = vst [vmem:[#allocation44_spill] sm:$0xff] %v12468_v5  ;;  %13773 = vst [vmem:[#allocation45_spill] sm:$0xff] %v12470_v38  ;;  %v5570_v15 = vmul.f32 %v13779_v41, %v4207_v47  ;;  %v5574_v19 = vmul.f32 %v13780_v1, %v4207_v47  ;;  %v5578_v48 = vmul.f32 %v13781_v36, %v4207_v47  ;;  %4219 = vxpose.xlu1.b32.end [4/4] (short) (narrow) %v8954_v27, 32 }
 0xb2d   :  { %13774 = vst [vmem:[#allocation46_spill] sm:$0xff] %v12472_v62  ;;  %v5582_v42 = vmul.f32 %v13782_v39, %v4207_v47  ;;  %v13798_v62 = vld [vmem:[#allocation37_spill] sm:$0xff] }
 0xb2e   :  { %v12482_v53 = vpack.c.bf16 %v5571_v58, %v5570_v15  ;;  %v12484_v7 = vpack.c.bf16 %v5575_v32, %v5574_v19  ;;  %v12486_v11 = vpack.c.bf16 %v5579_v17, %v5578_v48 }
 0xb2f   :  { %v12488_v31 = vpack.c.bf16 %v5583_v55, %v5582_v42 }
 0xb30   :  { %13783 = vst [vmem:[#allocation47_spill] sm:$0xff] %v12484_v7  ;;  %13784 = vst [vmem:[#allocation48_spill] sm:$0xff] %v12486_v11 }
 0xb31   :  { %13785 = vst [vmem:[#allocation49_spill] sm:$0xff] %v12488_v31 }
 0xba0   :  { %v4232_v12 = vpop.trf.xlu1 }
 0xba1   :  { %4252 = vrot.lane.b32.xlu0 %v4232_v12, %s10541_s11 }
 0xba4   :  { %v4233_v49 = vpop.trf.xlu1 }
 0xba5   :  { %4264 = vrot.lane.b32.xlu0 %v4232_v12, %s10543_s13 }
 0xba8   :  { %v12496_v47 = vpop.trf.xlu1 }
 0xba9   :  { %4276 = vrot.lane.b32.xlu0 %v4232_v12, %s10542_s12 }
 0xbac   :  { %v12504_v27 = vpop.trf.xlu1 }
 0xbad   :  { %4254 = vrot.lane.b32.xlu0 %v4233_v49, %s10541_s11 }
 0xbb1   :  { %4266 = vrot.lane.b32.xlu0 %v4233_v49, %s10543_s13 }
 0xbb5   :  { %4278 = vrot.lane.b32.xlu0 %v4233_v49, %s10542_s12 }
 0xbb9   :  { %4256 = vrot.lane.b32.xlu0 %v12496_v47, %s10541_s11 }
 0xbbd   :  { %4268 = vrot.lane.b32.xlu0 %v12496_v47, %s10543_s13 }
 0xbc1   :  { %4280 = vrot.lane.b32.xlu0 %v12496_v47, %s10542_s12 }
 0xbc5   :  { %4258 = vrot.lane.b32.xlu0 %v12504_v27, %s10541_s11 }
 0xbc9   :  { %4270 = vrot.lane.b32.xlu0 %v12504_v27, %s10543_s13 }
 0xbcd   :  { %4282 = vrot.lane.b32.xlu0 %v12504_v27, %s10542_s12 }
 0xbec   :  { %v8979_v40 = vpop.f32.mrb[60].mxu1 }
 0xbed   :  { %v4382_v54 = vpop.f32.mrb[61].mxu1  ;;  %4589 = vrot.lane.b32.xlu0 %v8979_v40, %s10544_s14 }
 0xbee   :  { %8985 = vmatprep.mubr.msk.f32.mxu0 %vm13786_vm11, %v4382_v54  ;;  %4914 = vrot.lane.b32.xlu1 %v4382_v54, %s10547_s17  ;;  %vm13792_vm11 = vcmask 523264  }
 0xbef   :  { %8986 = vmatmul.mubr.msk.f32.vlgmr.msra.gmra.mrb[66].mxu0 %vm13787_vm10, %v8979_v40  ;;  %vm13793_vm10 = vcmask 785408  }
 0xbf0   :  { %v8982_v58 = vpop.f32.mrb[62].mxu1  ;;  %9006 = vmatpush3.msk.msra.mxu0 %vm13788_vm13, %v13753_v4  ;;  %vm13794_vm13 = vmmov %vm13763_vm15 }
 0xbf1   :  { %v4392_v32 = vpop.f32.mrb[63].mxu1  ;;  %4698 = vrot.lane.b32.xlu0 %v8979_v40, %s10545_s15  ;;  %9021 = vmatprep.subr.msk.mxu0 %vm13789_vm12, %v13753_v4  ;;  %vm13795_vm12 = vmmov %vm13792_vm11 }
 0xbf2   :  { %8988 = vmatprep.mubr.msk.f32.mxu0 %vm13790_vm14, %v4392_v32  ;;  %5023 = vrot.lane.b32.xlu1 %v4382_v54, %s10548_s18  ;;  %vm13796_vm14 = vmmov %vm13793_vm10 }
 0xbf3   :  { %8989 = vmatmul.mubr.msk.f32.gmra.mrb[68].mxu0 %vm13791_vm0, %v8982_v58  ;;  %vm13799_vm0 = vmmov %vm13794_vm13 }
 0xbf5   :  { %4807 = vrot.lane.b32.xlu0 %v8979_v40, %s10546_s16 }
 0xbf6   :  { %4591 = vrot.lane.b32.xlu1 %v4392_v32, %s10544_s14 }
 0xbf9   :  { %4916 = vrot.lane.b32.xlu0 %v8979_v40, %s10547_s17 }
 0xbfa   :  { %5132 = vrot.lane.b32.xlu1 %v4382_v54, %s10549_s19 }
 0xbfd   :  { %5025 = vrot.lane.b32.xlu0 %v8979_v40, %s10548_s18 }
 0xbfe   :  { %4809 = vrot.lane.b32.xlu1 %v4392_v32, %s10546_s16 }
 0xc01   :  { %4587 = vrot.lane.b32.xlu0 %v4382_v54, %s10544_s14 }
 0xc02   :  { %4918 = vrot.lane.b32.xlu1 %v4392_v32, %s10547_s17 }
 0xc05   :  { %4696 = vrot.lane.b32.xlu0 %v4382_v54, %s10545_s15 }
 0xc06   :  { %5027 = vrot.lane.b32.xlu1 %v4392_v32, %s10548_s18 }
 0xc09   :  { %4805 = vrot.lane.b32.xlu0 %v4382_v54, %s10546_s16 }
 0xc0a   :  { %5241 = vrot.lane.b32.xlu1 %v4382_v54, %s10550_s20 }
 0xc0d   :  { %4593 = vrot.lane.b32.xlu0 %v8982_v58, %s10544_s14 }
 0xc0e   :  { %5136 = vrot.lane.b32.xlu1 %v4392_v32, %s10549_s19 }
 0xc11   :  { %4702 = vrot.lane.b32.xlu0 %v8982_v58, %s10545_s15 }
 0xc12   :  { %5245 = vrot.lane.b32.xlu1 %v4392_v32, %s10550_s20 }
 0xc13   :  { %v4253_v17 = vpop.permute.xlu0 %4252 }
 0xc14   :  { %v4288_v19 = vsel %vm13763_vm15, %v4232_v12, %v4253_v17  ;;  %vm13800_vm15 = vmmov %vm13792_vm11 }
 0xc15   :  { %4811 = vrot.lane.b32.xlu0 %v8982_v58, %s10546_s16  ;;  %s10558_s16 = smov [#allocation2]  }
 0xc17   :  { %v4265_v55 = vpop.permute.xlu0 %4264 }
 0xc18   :  { %v4292_v36 = vsel %vm13792_vm11, %v4288_v19, %v4265_v55  ;;  %vm13801_vm11 = vmmov %vm13793_vm10 }
 0xc19   :  { %4700 = vrot.lane.b32.xlu0 %v4392_v32, %s10545_s15 }
 0xc1b   :  { %v4277_v41 = vpop.permute.xlu0 %4276 }
 0xc1c   :  { %v4296_v48 = vsel %vm13793_vm10, %v4292_v36, %v4277_v41  ;;  %vm13802_vm10 = vmmov %vm13799_vm0  ;;  %v13805_v36 = vld [vmem:[#allocation38_spill] sm:$0xff] }
 0xc1d   :  { %4920 = vrot.lane.b32.xlu0 %v8982_v58, %s10547_s17  ;;  %v4300_v31 = vmul.f32 %v13797_v10, %v4296_v48  ;;  %v13806_v48 = vld [vmem:[#allocation39_spill] sm:$0xff] }
 0xc1f   :  { %v4255_v15 = vpop.permute.xlu0 %4254 }
 0xc20   :  { %v4289_v39 = vsel %vm13794_vm13, %v4233_v49, %v4255_v15  ;;  %vm13803_vm13 = vmmov %vm13795_vm12 }
 0xc21   :  { %5029 = vrot.lane.b32.xlu0 %v8982_v58, %s10548_s18 }
 0xc23   :  { %v4267_v1 = vpop.permute.xlu0 %4266 }
 0xc24   :  { %v4293_v42 = vsel %vm13795_vm12, %v4289_v39, %v4267_v1  ;;  %vm13804_vm12 = vmmov %vm13801_vm11 }
 0xc25   :  { %5134 = vrot.lane.b32.xlu0 %v8979_v40, %s10549_s19 }
 0xc27   :  { %v4279_v54 = vpop.permute.xlu0 %4278 }
 0xc28   :  { %v4297_v32 = vsel %vm13796_vm14, %v4293_v42, %v4279_v54  ;;  %vm13807_vm14 = vcmask 1043456  }
 0xc29   :  { %v4301_v11 = vmul.f32 %v13798_v62, %v4297_v32  ;;  %5243 = vrot.lane.b32.xlu0 %v8979_v40, %s10550_s20 }
 0xc2b   :  { %v4257_v12 = vpop.permute.xlu0 %4256  ;;  %v9959_v17 = vpack.c.bf16 %v4301_v11, %v4300_v31 }
 0xc2c   :  { %v4290_v1 = vsel %vm13799_vm0, %v12496_v47, %v4257_v12 }
 0xc2d   :  { %9960 = vmatprep.subr.bf16.mxu1 %v9959_v17  ;;  %5138 = vrot.lane.b32.xlu0 %v8982_v58, %s10549_s19 }
 0xc2e   :  { %9962 = vmatpush3.bf16.msra.mxu1 %v9959_v17 }
 0xc2f   :  { %v4269_v55 = vpop.permute.xlu0 %4268 }
 0xc30   :  { %v4294_v10 = vsel %vm13800_vm15, %v4290_v1, %v4269_v55  ;;  %vm13808_vm15 = vmmov %vm13799_vm0 }
 0xc31   :  { %5247 = vrot.lane.b32.xlu0 %v8982_v58, %s10550_s20 }
 0xc33   :  { %v4281_v49 = vpop.permute.xlu0 %4280 }
 0xc34   :  { %v4298_v62 = vsel %vm13801_vm11, %v4294_v10, %v4281_v49  ;;  %vm13809_vm11 = vmmov %vm13807_vm14 }
 0xc35   :  { %v4302_v58 = vmul.f32 %v13805_v36, %v4298_v62 }
 0xc37   :  { %v4259_v41 = vpop.permute.xlu0 %4258 }
 0xc38   :  { %v4291_v11 = vsel %vm13802_vm10, %v12504_v27, %v4259_v41  ;;  %vm13810_vm10 = vmmov %vm13809_vm11 }
 0xc3b   :  { %v4271_v15 = vpop.permute.xlu0 %4270 }
 0xc3c   :  { %v4295_v31 = vsel %vm13803_vm13, %v4291_v11, %v4271_v15  ;;  %vm13811_vm13 = vmmov %vm13799_vm0 }
 0xc3f   :  { %v4283_v40 = vpop.permute.xlu0 %4282 }
 0xc40   :  { %v4299_v19 = vsel %vm13804_vm12, %v4295_v31, %v4283_v40  ;;  %vm13812_vm12 = vcmask 31744  }
 0xc41   :  { %v4303_v39 = vmul.f32 %v13806_v48, %v4299_v19 }
 0xc43   :  { %v9963_v42 = vpack.c.bf16 %v4303_v39, %v4302_v58 }
 0xc45   :  { %9964 = vmatprep.subr.bf16.mxu1 %v9963_v42 }
 0xc46   :  { %9966 = vmatpush3.bf16.msra.mxu1 %v9963_v42 }
 0xc47   :  { %9013 = vmatprep.subr.msk.mxu1 %vm13807_vm14, %v13753_v4  ;;  %vm13813_vm14 = vmmov %vm13812_vm12 }
 0xc49   :  { %9000 = vmatmul.mubr.msk.f32.vlgmr.msra.gmra.mrb[64].mxu1 %vm13799_vm0, %v12444_v34  ;;  %vm13814_vm0 = vmmov %vm13812_vm12 }
 0xc4a   :  { %9002 = vmatprep.mubr.msk.f32.mxu1 %vm13808_vm15, %v12451_v59  ;;  %9014 = vmatpush3.msk.msra.mxu1 %vm13809_vm11, %v13753_v4  ;;  %vm13815_vm15 = vmmov %vm13810_vm10 }
 0xc4b   :  { %9029 = vmatprep.subr.msk.mxu1 %vm13810_vm10, %v13753_v4  ;;  %vm13816_vm11 = vmmov %vm13810_vm10 }
 0xc4c   :  { %vm13817_vm10 = vmmov %vm13814_vm0 }
 0xc4d   :  { %9003 = vmatmul.mubr.msk.f32.gmra.mrb[66].mxu1 %vm13811_vm13, %v12449_v0  ;;  %vm13818_vm13 = vmmov %vm13814_vm0 }
 0xc4e   :  { %vm13819_vm5 = vmmov %vm13816_vm11 }
 0xc4f   :  { %vm13830_vm3 = vmmov %vm13814_vm0 }
 0xc5f   :  { %v4590_v47 = vpop.permute.xlu0 %4589 }
 0xc60   :  { %v4915_v54 = vpop.permute.xlu1 %4914 }
 0xc63   :  { %v4699_v27 = vpop.permute.xlu0 %4698 }
 0xc64   :  { %v5024_v17 = vpop.permute.xlu1 %5023 }
 0xc67   :  { %v4808_v32 = vpop.permute.xlu0 %4807 }
 0xc68   :  { %v4592_v34 = vpop.permute.xlu1 %4591 }
 0xc6b   :  { %v4917_v12 = vpop.permute.xlu0 %4916 }
 0xc6c   :  { %v5133_v0 = vpop.permute.xlu1 %5132 }
 0xc6f   :  { %v5026_v55 = vpop.permute.xlu0 %5025 }
 0xc70   :  { %v4810_v15 = vpop.permute.xlu1 %4809 }
 0xc73   :  { %v4588_v49 = vpop.permute.xlu0 %4587 }
 0xc74   :  { %9007 = vmatprep.mubr.msk.f32.mxu0 %vm13812_vm12, %v4588_v49  ;;  %vm13820_vm12 = vmmov %vm13819_vm5  ;;  %v4919_v62 = vpop.permute.xlu1 %4918 }
 0xc75   :  { %9008 = vmatmul.mubr.msk.f32.vlgmr.msra.gmra.mrb[70].mxu0 %vm13813_vm14, %v4590_v47  ;;  %vm13821_vm14 = vmmov %vm13814_vm0 }
 0xc76   :  { %9010 = vmatprep.mubr.msk.f32.mxu0 %vm13814_vm0, %v4592_v34  ;;  %9022 = vmatpush3.msk.msra.mxu0 %vm13815_vm15, %v13753_v4  ;;  %vm13822_vm15 = vmmov %vm13814_vm0 }
 0xc77   :  { %v4697_v59 = vpop.permute.xlu0 %4696  ;;  %9037 = vmatprep.subr.msk.mxu0 %vm13816_vm11, %v13753_v4  ;;  %vm13823_vm11 = vmmov %vm13814_vm0 }
 0xc78   :  { %9015 = vmatprep.mubr.msk.f32.mxu1 %vm13817_vm10, %v4697_v59  ;;  %vm13824_vm10 = vmmov %vm13819_vm5  ;;  %v5028_v31 = vpop.permute.xlu1 %5027 }
 0xc79   :  { %9016 = vmatmul.mubr.msk.f32.vlgmr.msra.gmra.mrb[68].mxu1 %vm13818_vm13, %v4699_v27  ;;  %vm13825_vm13 = vmmov %vm13814_vm0 }
 0xc7a   :  { %9030 = vmatpush3.msk.msra.mxu1 %vm13819_vm5, %v13753_v4 }
 0xc7b   :  { %v4806_v41 = vpop.permute.xlu0 %4805  ;;  %9045 = vmatprep.subr.msk.mxu1 %vm13820_vm12, %v13753_v4  ;;  %vm13826_vm12 = vmmov %vm13814_vm0 }
 0xc7c   :  { %v5242_v36 = vpop.permute.xlu1 %5241 }
 0xc7f   :  { %v4594_v1 = vpop.permute.xlu0 %4593 }
 0xc80   :  { %9011 = vmatmul.mubr.msk.f32.gmra.mrb[72].mxu0 %vm13821_vm14, %v4594_v1  ;;  %vm13827_vm14 = vmmov %vm13814_vm0  ;;  %v5137_v48 = vpop.permute.xlu1 %5136 }
 0xc81   :  { %9023 = vmatprep.mubr.msk.f32.mxu0 %vm13814_vm0, %v4806_v41 }
 0xc83   :  { %v4703_v10 = vpop.permute.xlu0 %4702 }
 0xc84   :  { %9024 = vmatmul.mubr.msk.f32.vlgmr.msra.gmra.mrb[74].mxu0 %vm13822_vm15, %v4808_v32  ;;  %vm13828_vm15 = vmmov %vm13814_vm0  ;;  %v5246_v47 = vpop.permute.xlu1 %5245 }
 0xc85   :  { %9026 = vmatprep.mubr.msk.f32.mxu0 %vm13823_vm11, %v4810_v15  ;;  %9038 = vmatpush3.msk.msra.mxu0 %vm13824_vm10, %v13753_v4  ;;  %vm13829_vm11 = vmmov %vm13814_vm0 }
 0xc86   :  { %9053 = vmatprep.subr.msk.mxu0 %vm13819_vm5, %v13753_v4  ;;  %vm13831_vm10 = vmmov %vm13819_vm5 }
 0xc87   :  { %v4812_v11 = vpop.permute.xlu0 %4811 }
 0xc88   :  { %9027 = vmatmul.mubr.msk.f32.gmra.mrb[76].mxu0 %vm13825_vm13, %v4812_v11  ;;  %vm13832_vm13 = vmmov %vm13814_vm0 }
 0xc89   :  { %9039 = vmatprep.mubr.msk.f32.mxu0 %vm13826_vm12, %v5024_v17  ;;  %vm13833_vm12 = vmmov %vm13814_vm0 }
 0xc8b   :  { %v4701_v40 = vpop.permute.xlu0 %4700 }
 0xc8c   :  { %9018 = vmatprep.mubr.msk.f32.mxu1 %vm13827_vm14, %v4701_v40  ;;  %9040 = vmatmul.mubr.msk.f32.vlgmr.msra.gmra.mrb[78].mxu0 %vm13814_vm0, %v5026_v55  ;;  %vm13834_vm14 = vmmov %vm13819_vm5 }
 0xc8d   :  { %9019 = vmatmul.mubr.msk.f32.gmra.mrb[70].mxu1 %vm13828_vm15, %v4703_v10  ;;  %9042 = vmatprep.mubr.msk.f32.mxu0 %vm13829_vm11, %v5028_v31  ;;  %vm13836_vm15 = vmmov %vm13814_vm0 }
 0xc8e   :  { %9031 = vmatprep.mubr.msk.f32.mxu1 %vm13830_vm3, %v4915_v54  ;;  %9054 = vmatpush3.msk.msra.mxu0 %vm13831_vm10, %v13753_v4  ;;  %vm13835_vm3 = vmmov %vm13814_vm0 }
 0xc8f   :  { %v4921_v19 = vpop.permute.xlu0 %4920  ;;  %9099 = vmatprep.subr.msk.mxu0 %vm13819_vm5, %v13753_v4  ;;  %vm13837_vm11 = vmmov %vm13814_vm0 }
 0xc90   :  { %vm13838_vm10 = vmmov %vm13814_vm0 }
 0xc91   :  { %9032 = vmatmul.mubr.msk.f32.vlgmr.msra.gmra.mrb[72].mxu1 %vm13832_vm13, %v4917_v12  ;;  %vm13839_vm5 = vmmov %vm13814_vm0 }
 0xc92   :  { %9034 = vmatprep.mubr.msk.f32.mxu1 %vm13833_vm12, %v4919_v62  ;;  %9046 = vmatpush3.msk.msra.mxu1 %vm13834_vm14, %v13753_v4  ;;  %vm13840_vm13 = vmmov %vm13814_vm0 }
 0xc93   :  { %v5030_v58 = vpop.permute.xlu0 %5029  ;;  %9968 = vmatprep.subr.msk.bf16.mxu1 %vm11204_vm6, %v13693_v20  ;;  %vm13841_vm12 = vmmov %vm13814_vm0 }
 0xc94   :  { %9043 = vmatmul.mubr.msk.f32.gmra.mrb[80].mxu0 %vm13835_vm3, %v5030_v58  ;;  %vm13842_vm3 = vmmov %vm13814_vm0 }
 0xc95   :  { %9035 = vmatmul.mubr.msk.f32.gmra.mrb[74].mxu1 %vm13814_vm0, %v4921_v19  ;;  %9055 = vmatprep.mubr.msk.f32.mxu0 %vm13836_vm15, %v5242_v36  ;;  %vm13843_vm15 = vnez %v13701_v50 }
 0xc96   :  { %9047 = vmatprep.mubr.msk.f32.mxu1 %vm13837_vm11, %v5133_v0 }
 0xc97   :  { %v5135_v39 = vpop.permute.xlu0 %5134 }
 0xc99   :  { %9048 = vmatmul.mubr.msk.f32.vlgmr.msra.gmra.mrb[76].mxu1 %vm13838_vm10, %v5135_v39 }
 0xc9a   :  { %9050 = vmatprep.mubr.msk.f32.mxu1 %vm13839_vm5, %v5137_v48  ;;  %9970 = vmatpush3.bf16.msk.msra.mxu1 %vm11204_vm6, %v13693_v20 }
 0xc9b   :  { %v5244_v42 = vpop.permute.xlu0 %5243  ;;  %9972 = vmatprep.subr.msk.bf16.mxu1 %vm11238_vm9, %v13693_v20 }
 0xc9c   :  { %9056 = vmatmul.mubr.msk.f32.vlgmr.msra.gmra.mrb[82].mxu0 %vm13840_vm13, %v5244_v42 }
 0xc9d   :  { %9058 = vmatprep.mubr.msk.f32.mxu0 %vm13841_vm12, %v5246_v47  ;;  %9100 = vmatpush3.msk.msra.mxu0 %vm13834_vm14, %v13753_v4 }
 0xc9e   :  { %9974 = vmatpush3.bf16.msk.msra.mxu1 %vm11238_vm9, %v13693_v20  ;;  %10000 = vmatprep.subr.msk.bf16.mxu0 %vm11204_vm6, %v13693_v20 }
 0xc9f   :  { %v5139_v27 = vpop.permute.xlu0 %5138  ;;  %9976 = vmatprep.subr.msk.bf16.mxu1 %vm11256_vm1, %v13693_v20 }
 0xca0   :  { %9051 = vmatmul.mubr.msk.f32.gmra.mrb[78].mxu1 %vm13842_vm3, %v5139_v27 }
 0xca2   :  { %9978 = vmatpush3.bf16.msk.msra.mxu1 %vm11256_vm1, %v13693_v20 }
 0xca3   :  { %v5248_v4 = vpop.permute.xlu0 %5247  ;;  %9980 = vmatprep.subr.msk.bf16.mxu1 %vm11276_vm4, %v13693_v20 }
 0xca4   :  { %9059 = vmatmul.mubr.msk.f32.gmra.mrb[84].mxu0 %vm13814_vm0, %v5248_v4 }
 0xca6   :  { %9982 = vmatpush3.bf16.msk.msra.mxu1 %vm11276_vm4, %v13693_v20 }
 0xca7   :  { %9984 = vmatprep.subr.msk.bf16.mxu1 %vm11296_vm8, %v13693_v20 }
 0xcaa   :  { %9986 = vmatpush3.bf16.msk.msra.mxu1 %vm11296_vm8, %v13693_v20 }
 0xcab   :  { %9988 = vmatprep.subr.msk.bf16.mxu1 %vm11317_vm2, %v13693_v20 }
 0xcae   :  { %9990 = vmatpush3.bf16.msk.msra.mxu1 %vm11317_vm2, %v13693_v20 }
 0xcaf   :  { %9992 = vmatprep.subr.msk.bf16.mxu1 %vm11334_vm7, %v13693_v20 }
 0xcb2   :  { %9994 = vmatpush3.bf16.msk.msra.mxu1 %vm11334_vm7, %v13693_v20 }
 0xcb3   :  { %9996 = vmatprep.subr.msk.bf16.mxu1 %vm13843_vm15, %v13693_v20 }
 0xcb6   :  { %9998 = vmatpush3.bf16.msk.msra.mxu1 %vm13843_vm15, %v13693_v20 }
 0xcb7   :  { %10032 = vmatprep.subr.msk.bf16.mxu1 %vm11204_vm6, %v13693_v20 }
 0xcc2   :  { %v8987_v54 = vpop.f32.mrb[66].mxu0 }
 0xcc3   :  { %v4479_v32 = vpop.f32.mrb[67].mxu0  ;;  %v4499_v55 = vmul.f32 %v13707_v57, %v8987_v54 }
 0xcc4   :  { %v4498_v34 = vmul.f32 %v13705_v60, %v4479_v32 }
 0xcc6   :  { %v8990_v12 = vpop.f32.mrb[68].mxu0 }
 0xcc7   :  { %v4489_v17 = vpop.f32.mrb[69].mxu0  ;;  %v4501_v15 = vmul.f32 %v11591_v29, %v8990_v12 }
 0xcc8   :  { %v4500_v1 = vmul.f32 %v11545_v46, %v4489_v17 }
 0xd1c   :  { %v9001_v49 = vpop.f32.mrb[64].mxu1 }
 0xd1d   :  { %v4574_v59 = vadd.f32 %v9001_v49, %v4499_v55  ;;  %v4568_v0 = vpop.f32.mrb[65].mxu1 }
 0xd1e   :  { %v4569_v41 = vadd.f32 %v4568_v0, %v4498_v34 }
 0xd20   :  { %v9004_v10 = vpop.f32.mrb[66].mxu1 }
 0xd21   :  { %v4584_v62 = vadd.f32 %v9004_v10, %v4501_v15  ;;  %v4578_v11 = vpop.f32.mrb[67].mxu1 }
 0xd22   :  { %v4579_v31 = vadd.f32 %v4578_v11, %v4500_v1 }
 0xd48   :  { %v9009_v40 = vpop.f32.mrb[70].mxu0 }
 0xd49   :  { %v4689_v19 = vmul.f32 %v13708_v26, %v9009_v40  ;;  %v4669_v36 = vpop.f32.mrb[71].mxu0 }
 0xd4a   :  { %v4688_v58 = vmul.f32 %v13706_v23, %v4669_v36 }
 0xd4b   :  { %v4693_v48 = vadd.f32 %v4689_v19, %v4574_v59 }
 0xd4c   :  { %v4692_v39 = vadd.f32 %v4688_v58, %v4569_v41  ;;  %v9017_v42 = vpop.f32.mrb[68].mxu1 }
 0xd4d   :  { %v4798_v47 = vmul.f32 %v13710_v25, %v9017_v42  ;;  %v4778_v27 = vpop.f32.mrb[69].mxu1 }
 0xd4e   :  { %v4797_v4 = vmul.f32 %v13709_v18, %v4778_v27 }
 0xd4f   :  { %v4802_v54 = vadd.f32 %v4798_v47, %v4693_v48 }
 0xd50   :  { %v4801_v32 = vadd.f32 %v4797_v4, %v4692_v39 }
 0xd53   :  { %v9012_v12 = vpop.f32.mrb[72].mxu0 }
 0xd54   :  { %v4691_v17 = vmul.f32 %v11603_v51, %v9012_v12  ;;  %v4679_v55 = vpop.f32.mrb[73].mxu0 }
 0xd55   :  { %v4690_v34 = vmul.f32 %v11551_v52, %v4679_v55 }
 0xd56   :  { %v4695_v49 = vadd.f32 %v4691_v17, %v4584_v62 }
 0xd57   :  { %v4694_v0 = vadd.f32 %v4690_v34, %v4579_v31  ;;  %v9025_v15 = vpop.f32.mrb[74].mxu0 }
 0xd58   :  { %v4907_v59 = vmul.f32 %v11513_v8, %v9025_v15  ;;  %v4887_v41 = vpop.f32.mrb[75].mxu0 }
 0xd59   :  { %v4906_v1 = vmul.f32 %v11462_v14, %v4887_v41 }
 0xd5a   :  { %v4911_v10 = vadd.f32 %v4907_v59, %v4802_v54 }
 0xd5b   :  { %v4910_v11 = vadd.f32 %v4906_v1, %v4801_v32  ;;  %v9028_v40 = vpop.f32.mrb[76].mxu0 }
 0xd5c   :  { %v4897_v19 = vpop.f32.mrb[77].mxu0  ;;  %v4909_v62 = vmul.f32 %v11627_v6, %v9028_v40 }
 0xd5d   :  { %v4908_v27 = vmul.f32 %v11558_v35, %v4897_v19 }
 0xd5f   :  { %v9041_v36 = vpop.f32.mrb[78].mxu0 }
 0xd60   :  { %v9020_v58 = vpop.f32.mrb[70].mxu1  ;;  %v5105_v48 = vpop.f32.mrb[79].mxu0  ;;  %v5125_v15 = vmul.f32 %v11532_v63, %v9041_v36 }
 0xd61   :  { %v4800_v39 = vmul.f32 %v11607_v30, %v9020_v58  ;;  %v4788_v42 = vpop.f32.mrb[71].mxu1  ;;  %v5124_v1 = vmul.f32 %v11470_v43, %v5105_v48 }
 0xd62   :  { %v4799_v47 = vmul.f32 %v11555_v44, %v4788_v42 }
 0xd63   :  { %v4804_v31 = vadd.f32 %v4800_v39, %v4695_v49 }
 0xd64   :  { %v4803_v4 = vadd.f32 %v4799_v47, %v4694_v0  ;;  %v9033_v12 = vpop.f32.mrb[72].mxu1 }
 0xd65   :  { %v5016_v54 = vmul.f32 %v11519_v3, %v9033_v12  ;;  %v4996_v32 = vpop.f32.mrb[73].mxu1  ;;  %v4913_v17 = vadd.f32 %v4909_v62, %v4804_v31 }
 0xd66   :  { %v5015_v55 = vmul.f32 %v11465_v16, %v4996_v32  ;;  %v4912_v34 = vadd.f32 %v4908_v27, %v4803_v4  ;;  %v13844_v4 = vld [vmem:[#allocation56_spill] sm:$0xff] }
 0xd67   :  { %v5020_v59 = vadd.f32 %v5016_v54, %v4911_v10  ;;  %v9044_v41 = vpop.f32.mrb[80].mxu0  ;;  %v13845_v54 = vld [vmem:[#allocation51_spill] sm:$0xff] }
 0xd68   :  { %v5019_v58 = vadd.f32 %v5015_v55, %v4910_v11  ;;  %v9036_v40 = vpop.f32.mrb[74].mxu1  ;;  %v5115_v49 = vpop.f32.mrb[81].mxu0  ;;  %v5127_v62 = vmul.f32 %v11654_v28, %v9044_v41 }
 0xd69   :  { %v5018_v19 = vmul.f32 %v11647_v33, %v9036_v40  ;;  %v5006_v0 = vpop.f32.mrb[75].mxu1  ;;  %v5129_v39 = vadd.f32 %v5125_v15, %v5020_v59  ;;  %v5126_v27 = vmul.f32 %v11577_v37, %v5115_v49  ;;  %v13846_v59 = vld [vmem:[#allocation57_spill] sm:$0xff] }
 0xd6a   :  { %v5017_v42 = vmul.f32 %v11566_v56, %v5006_v0  ;;  %v5128_v47 = vadd.f32 %v5124_v1, %v5019_v58  ;;  %v13847_v58 = vld [vmem:[#allocation52_spill] sm:$0xff] }
 0xd6b   :  { %v5022_v31 = vadd.f32 %v5018_v19, %v4913_v17 }
 0xd6c   :  { %v5021_v36 = vadd.f32 %v5017_v42, %v4912_v34  ;;  %v9049_v10 = vpop.f32.mrb[76].mxu1  ;;  %v13848_v42 = vld [vmem:[#allocation64_spill] sm:$0xff] }
 0xd6d   :  { %v5234_v12 = vmul.f32 %v13844_v4, %v9049_v10  ;;  %v5214_v48 = vpop.f32.mrb[77].mxu1  ;;  %v5131_v11 = vadd.f32 %v5127_v62, %v5022_v31  ;;  %v13849_v62 = vld [vmem:[#allocation58_spill] sm:$0xff] }
 0xd6e   :  { %v5233_v32 = vmul.f32 %v13845_v54, %v5214_v48  ;;  %v5130_v55 = vadd.f32 %v5126_v27, %v5021_v36  ;;  %v13850_v27 = vld [vmem:[#allocation60_spill] sm:$0xff] }
 0xd6f   :  { %v5238_v40 = vadd.f32 %v5234_v12, %v5129_v39  ;;  %v9057_v38 = vpop.f32.mrb[82].mxu0  ;;  %vm13851_vm11 = vnez %v13850_v27  ;;  %v13852_v39 = vld [vmem:[#allocation61_spill] sm:$0xff]  ;;  %v13855_v12 = vld [vmem:[#allocation63_spill] sm:$0xff] }
 0xd70   :  { %v5237_v15 = vadd.f32 %v5233_v32, %v5128_v47  ;;  %v5343_v0 = vmul.f32 %v13846_v59, %v9057_v38  ;;  %v5323_v1 = vpop.f32.mrb[83].mxu0  ;;  %vm13853_vm10 = vnez %v13852_v39  ;;  %vm13856_vm13 = vnez %v13855_v12  ;;  %v13857_v32 = vld [vmem:[#allocation62_spill] sm:$0xff] }
 0xd71   :  { %v5342_v41 = vmul.f32 %v13847_v58, %v5323_v1  ;;  %vm13854_vm5 = vmand %vm13851_vm11, %vm13853_vm10  ;;  %vm13858_vm12 = vnez %v13857_v32 }
 0xd72   :  { %v5347_v17 = vadd.f32 %v5343_v0, %v5238_v40  ;;  %vm13859_vm14 = vmand %vm13856_vm13, %vm13858_vm12  ;;  %vm13872_vm12 = vcmask 31744  }
 0xd73   :  { %v5346_v19 = vadd.f32 %v5342_v41, %v5237_v15  ;;  %v9052_v49 = vpop.f32.mrb[78].mxu1  ;;  %v13860_v15 = vld [vmem:[#allocation65_spill] sm:$0xff] }
 0xd74   :  { %v5351_v34 = vmul.f32 0.35355338, %v5347_v17  ;;  %v5236_v7 = vmul.f32 %v13848_v42, %v9052_v49  ;;  %v5224_v10 = vpop.f32.mrb[79].mxu1 }
 0xd75   :  { %v5350_v5 = vmul.f32 0.35355338, %v5346_v19  ;;  %v5235_v31 = vmul.f32 %v13849_v62, %v5224_v10 }
 0xd76   :  { %v5240_v48 = vadd.f32 %v5236_v7, %v5131_v11  ;;  %v5355_v38 = vsel %vm13854_vm5, %v5351_v34, -1e+09  ;;  %v13861_v7 = vld [vmem:[#allocation59_spill] sm:$0xff]  ;;  %v13862_v34 = vld [vmem:[#allocation68_spill] sm:$0xff] }
 0xd77   :  { %v5239_v47 = vadd.f32 %v5235_v31, %v5130_v55  ;;  %5360 = vmax.xlane.f32.xlu0 %v5355_v38  ;;  %v9060_v36 = vpop.f32.mrb[84].mxu0  ;;  %v5354_v40 = vsel %vm13859_vm14, %v5350_v5, -1e+09  ;;  %vm13863_vm3 = vnez %v13862_v34  ;;  %v13864_v55 = vld [vmem:[#allocation69_spill] sm:$0xff]  ;;  %v13867_v31 = vld [vmem:[#allocation66_spill] sm:$0xff]  ;;  %v13869_v5 = vld [vmem:[#allocation67_spill] sm:$0xff] }
 0xd78   :  { %v5345_v0 = vmul.f32 %v13860_v15, %v9060_v36  ;;  %5358 = vmax.xlane.f32.xlu1 %v5354_v40  ;;  %v5333_v1 = vpop.f32.mrb[85].mxu0  ;;  %vm13865_vm0 = vnez %v13864_v55  ;;  %vm13868_vm10 = vnez %v13867_v31  ;;  %vm13870_vm5 = vnez %v13869_v5  ;;  %vm13873_vm14 = vmmov %vm13872_vm12 }
 0xd79   :  { %v5344_v11 = vmul.f32 %v13861_v7, %v5333_v1  ;;  %vm13866_vm11 = vmand %vm13863_vm3, %vm13865_vm0 }
 0xd7a   :  { %v5349_v41 = vadd.f32 %v5345_v0, %v5240_v48  ;;  %vm13871_vm13 = vmand %vm13868_vm10, %vm13870_vm5  ;;  %vm13886_vm5 = vcmask 195584  }
 0xd7b   :  { %v5348_v17 = vadd.f32 %v5344_v11, %v5239_v47  ;;  %vm13874_vm3 = vmmov %vm13872_vm12 }
 0xd7c   :  { %v5353_v19 = vmul.f32 0.35355338, %v5349_v41  ;;  %vm13875_vm0 = vmmov %vm13874_vm3 }
 0xd7d   :  { %v5352_v49 = vmul.f32 0.35355338, %v5348_v17 }
 0xd7e   :  { %v5357_v10 = vsel %vm13866_vm11, %v5353_v19, -1e+09  ;;  %vm13884_vm11 = vcmask 162816  }
 0xd7f   :  { %5364 = vmax.xlane.f32.xlu1 %v5357_v10  ;;  %v5356_v27 = vsel %vm13871_vm13, %v5352_v49, -1e+09  ;;  %vm13885_vm10 = vmmov %vm13884_vm11 }
 0xd80   :  { %5362 = vmax.xlane.f32.xlu0 %v5356_v27  ;;  %vm13887_vm13 = vmmov %vm13886_vm5 }
 0xe04   :  { %v5361_v39 = vpop.xlane.xlu0 %5360 }
 0xe05   :  { %v5367_v36 = vsub.f32 %v5355_v38, %v5361_v39  ;;  %v5359_v48 = vpop.xlane.xlu1 %5358 }
 0xe06   :  { %v5366_v47 = vsub.f32 %v5354_v40, %v5359_v48 }
 0xe07   :  { %v5372_v12 = vmul.f32 1.442695, %v5367_v36 }
 0xe08   :  { %v5370_v32 = vmul.f32 1.442695, %v5366_v47 }
 0xe0a   :  { %10477 = vpow2.f32 %v5370_v32 }
 0xe0b   :  { %10479 = vpow2.f32 %v5372_v12 }
 0xe0c   :  { %v5365_v0 = vpop.xlane.xlu1 %5364 }
 0xe0d   :  { %v5369_v1 = vsub.f32 %v5357_v10, %v5365_v0  ;;  %v5363_v11 = vpop.xlane.xlu0 %5362 }
 0xe0e   :  { %v5368_v41 = vsub.f32 %v5356_v27, %v5363_v11 }
 0xe0f   :  { %v5376_v17 = vmul.f32 1.442695, %v5369_v1 }
 0xe10   :  { %v5374_v19 = vmul.f32 1.442695, %v5368_v41 }
 0xe12   :  { %10481 = vpow2.f32 %v5374_v19 }
 0xe13   :  { %10483 = vpow2.f32 %v5376_v17 }
 0xe14   :  { %v10478_v34 = vpop.eup %10477 }
 0xe15   :  { %v10480_v55 = vpop.eup %10479  ;;  %9093 = vmatprep.mubr.f32.mxu1 %v10478_v34 }
 0xe16   :  { %9094 = vmatmul.mubr.f32.vlgmr.msra.gmra.mrb[80].mxu1 %v10480_v55 }
 0xe17   :  { %10034 = vmatpush3.bf16.msk.msra.mxu1 %vm11204_vm6, %v13693_v20 }
 0xe18   :  { %10036 = vmatprep.subr.msk.bf16.mxu1 %vm11238_vm9, %v13693_v20 }
 0xe1b   :  { %10038 = vmatpush3.bf16.msk.msra.mxu1 %vm11238_vm9, %v13693_v20 }
 0xe1c   :  { %v12741_v38 = vpop.eup %10481  ;;  %10040 = vmatprep.subr.msk.bf16.mxu1 %vm11256_vm1, %v13693_v20 }
 0xe1d   :  { %v10484_v40 = vpop.eup %10483  ;;  %9096 = vmatprep.mubr.f32.mxu1 %v12741_v38 }
 0xe1e   :  { %9097 = vmatmul.mubr.f32.gmra.mrb[82].mxu1 %v10484_v40 }
 0xe1f   :  { %10042 = vmatpush3.bf16.msk.msra.mxu1 %vm11256_vm1, %v13693_v20 }
 0xe20   :  { %10044 = vmatprep.subr.msk.bf16.mxu1 %vm11276_vm4, %v13693_v20 }
 0xe23   :  { %10046 = vmatpush3.bf16.msk.msra.mxu1 %vm11276_vm4, %v13693_v20 }
 0xe24   :  { %10048 = vmatprep.subr.msk.bf16.mxu1 %vm11296_vm8, %v13693_v20 }
 0xe27   :  { %10050 = vmatpush3.bf16.msk.msra.mxu1 %vm11296_vm8, %v13693_v20 }
 0xe28   :  { %10052 = vmatprep.subr.msk.bf16.mxu1 %vm11317_vm2, %v13693_v20 }
 0xe2b   :  { %10054 = vmatpush3.bf16.msk.msra.mxu1 %vm11317_vm2, %v13693_v20 }
 0xe2c   :  { %10056 = vmatprep.subr.msk.bf16.mxu1 %vm11334_vm7, %v13693_v20 }
 0xe2f   :  { %10058 = vmatpush3.bf16.msk.msra.mxu1 %vm11334_vm7, %v13693_v20 }
 0xe30   :  { %10060 = vmatprep.subr.msk.bf16.mxu1 %vm13843_vm15, %v13693_v20 }
 0xe33   :  { %10062 = vmatpush3.bf16.msk.msra.mxu1 %vm13843_vm15, %v13693_v20 }
 0xe34   :  { %10096 = vmatprep.subr.msk.bf16.mxu1 %vm11204_vm6, %v13693_v20 }
 0xee9   :  { %v9095_v49 = vpop.f32.mrb[80].mxu1 }
 0xeea   :  { %v5444_v10 = vpop.f32.mrb[81].mxu1 }
 0xeeb   :  { %10485 = vrcp.f32 %v5444_v10 }
 0xeec   :  { %10487 = vrcp.f32 %v9095_v49 }
 0xef1   :  { %v9098_v31 = vpop.f32.mrb[82].mxu1 }
 0xef2   :  { %v5454_v5 = vpop.f32.mrb[83].mxu1 }
 0xef3   :  { %10489 = vrcp.f32 %v5454_v5 }
 0xef4   :  { %10491 = vrcp.f32 %v9098_v31 }
 0xef5   :  { %v10486_v27 = vpop.eup %10485 }
 0xef6   :  { %v10488_v39 = vpop.eup %10487  ;;  %9101 = vmatprep.mubr.msk.f32.mxu0 %vm13872_vm12, %v10486_v27  ;;  %vm13888_vm12 = vcmask 228352  }
 0xef7   :  { %9102 = vmatmul.mubr.msk.f32.vlgmr.msra.gmra.mrb[86].mxu0 %vm13873_vm14, %v10488_v39  ;;  %vm13889_vm14 = vmmov %vm13888_vm12 }
 0xef8   :  { %10002 = vmatpush3.bf16.msk.msra.mxu0 %vm11204_vm6, %v13693_v20 }
 0xef9   :  { %10004 = vmatprep.subr.msk.bf16.mxu0 %vm11238_vm9, %v13693_v20 }
 0xefc   :  { %10006 = vmatpush3.bf16.msk.msra.mxu0 %vm11238_vm9, %v13693_v20 }
 0xefd   :  { %v10490_v36 = vpop.eup %10489  ;;  %10008 = vmatprep.subr.msk.bf16.mxu0 %vm11256_vm1, %v13693_v20 }
 0xefe   :  { %v10492_v48 = vpop.eup %10491  ;;  %9104 = vmatprep.mubr.msk.f32.mxu0 %vm13874_vm3, %v10490_v36  ;;  %vm13890_vm3 = vcmask 261120  }
 0xeff   :  { %9105 = vmatmul.mubr.msk.f32.gmra.mrb[88].mxu0 %vm13875_vm0, %v10492_v48 }
 0xf00   :  { %10010 = vmatpush3.bf16.msk.msra.mxu0 %vm11256_vm1, %v13693_v20 }
 0xf01   :  { %10012 = vmatprep.subr.msk.bf16.mxu0 %vm11276_vm4, %v13693_v20 }
 0xf04   :  { %10014 = vmatpush3.bf16.msk.msra.mxu0 %vm11276_vm4, %v13693_v20 }
 0xf05   :  { %10016 = vmatprep.subr.msk.bf16.mxu0 %vm11296_vm8, %v13693_v20 }
 0xf08   :  { %10018 = vmatpush3.bf16.msk.msra.mxu0 %vm11296_vm8, %v13693_v20 }
 0xf09   :  { %10020 = vmatprep.subr.msk.bf16.mxu0 %vm11317_vm2, %v13693_v20 }
 0xf0c   :  { %10022 = vmatpush3.bf16.msk.msra.mxu0 %vm11317_vm2, %v13693_v20 }
 0xf0d   :  { %10024 = vmatprep.subr.msk.bf16.mxu0 %vm11334_vm7, %v13693_v20 }
 0xf10   :  { %10026 = vmatpush3.bf16.msk.msra.mxu0 %vm11334_vm7, %v13693_v20 }
 0xf11   :  { %10028 = vmatprep.subr.msk.bf16.mxu0 %vm13843_vm15, %v13693_v20 }
 0xf14   :  { %10030 = vmatpush3.bf16.msk.msra.mxu0 %vm13843_vm15, %v13693_v20 }
 0xf15   :  { %10064 = vmatprep.subr.msk.bf16.mxu0 %vm11204_vm6, %v13693_v20 }
 0xfca   :  { %v9103_v47 = vpop.f32.mrb[86].mxu0 }
 0xfcb   :  { %v12835_v12 = vmul.f32 %v10480_v55, %v9103_v47  ;;  %v5545_v32 = vpop.f32.mrb[87].mxu0 }
 0xfcc   :  { %v12837_v0 = vmul.f32 %v10478_v34, %v5545_v32 }
 0xfcd   :  { %v5585_v41 = vmul.f32 %v13707_v57, %v12835_v12  ;;  %v5674_v17 = vmul.f32 %v13708_v26, %v12835_v12  ;;  %v6119_v21 = vmul.f32 %v13844_v4, %v12835_v12  ;;  %v6208_v2 = vmul.f32 %v13846_v59, %v12835_v12 }
 0xfce   :  { %v5584_v1 = vmul.f32 %v13705_v60, %v12837_v0  ;;  %v5673_v11 = vmul.f32 %v13706_v23, %v12837_v0 }
 0xfd0   :  { %9139 = vmatprep.mubr.f32.mxu0 %v5584_v1  ;;  %9177 = vmatprep.mubr.f32.mxu1 %v5673_v11 }
 0xfd1   :  { %9140 = vmatmul.mubr.f32.vlgmr.msra.gmra.mrb[90].mxu0 %v5585_v41  ;;  %9178 = vmatmul.mubr.f32.vlgmr.msra.gmra.mrb[84].mxu1 %v5674_v17 }
 0xfd2   :  { %10066 = vmatpush3.bf16.msk.msra.mxu0 %vm11204_vm6, %v13693_v20  ;;  %10098 = vmatpush3.bf16.msk.msra.mxu1 %vm11204_vm6, %v13693_v20  ;;  %v9106_v60 = vpop.f32.mrb[88].mxu0 }
 0xfd3   :  { %v12853_v23 = vmul.f32 %v10484_v40, %v9106_v60  ;;  %v5555_v19 = vpop.f32.mrb[89].mxu0  ;;  %10068 = vmatprep.subr.msk.bf16.mxu0 %vm11238_vm9, %v13693_v20  ;;  %10100 = vmatprep.subr.msk.bf16.mxu1 %vm11238_vm9, %v13693_v20 }
 0xfd4   :  { %v12862_v57 = vmul.f32 %v12741_v38, %v5555_v19 }
 0xfd5   :  { %v5587_v55 = vmul.f32 %v11591_v29, %v12853_v23  ;;  %v5676_v38 = vmul.f32 %v11603_v51, %v12853_v23  ;;  %v5852_v29 = vmul.f32 %v11513_v8, %v12835_v12  ;;  %v5765_v8 = vmul.f32 %v11607_v30, %v12853_v23 }
 0xfd6   :  { %10070 = vmatpush3.bf16.msk.msra.mxu0 %vm11238_vm9, %v13693_v20  ;;  %10102 = vmatpush3.bf16.msk.msra.mxu1 %vm11238_vm9, %v13693_v20  ;;  %v5586_v26 = vmul.f32 %v11545_v46, %v12862_v57  ;;  %v5675_v34 = vmul.f32 %v11551_v52, %v12862_v57  ;;  %v5762_v52 = vmul.f32 %v13709_v18, %v12837_v0 }
 0xfd7   :  { %10072 = vmatprep.subr.msk.bf16.mxu0 %vm11256_vm1, %v13693_v20  ;;  %10104 = vmatprep.subr.msk.bf16.mxu1 %vm11256_vm1, %v13693_v20  ;;  %v5851_v46 = vmul.f32 %v11462_v14, %v12837_v0  ;;  %v5763_v14 = vmul.f32 %v13710_v25, %v12835_v12  ;;  %v5764_v51 = vmul.f32 %v11555_v44, %v12862_v57 }
 0xfd8   :  { %9142 = vmatprep.mubr.f32.mxu0 %v5586_v26  ;;  %9180 = vmatprep.mubr.f32.mxu1 %v5675_v34  ;;  %v5853_v18 = vmul.f32 %v11558_v35, %v12862_v57  ;;  %v5854_v44 = vmul.f32 %v11627_v6, %v12853_v23  ;;  %v5940_v35 = vmul.f32 %v11465_v16, %v12837_v0 }
 0xfd9   :  { %9143 = vmatmul.mubr.f32.gmra.mrb[92].mxu0 %v5587_v55  ;;  %9181 = vmatmul.mubr.f32.gmra.mrb[86].mxu1 %v5676_v38  ;;  %v6029_v25 = vmul.f32 %v11470_v43, %v12837_v0  ;;  %v5941_v16 = vmul.f32 %v11519_v3, %v12835_v12  ;;  %v6030_v43 = vmul.f32 %v11532_v63, %v12835_v12 }
 0xfda   :  { %10074 = vmatpush3.bf16.msk.msra.mxu0 %vm11256_vm1, %v13693_v20  ;;  %10106 = vmatpush3.bf16.msk.msra.mxu1 %vm11256_vm1, %v13693_v20  ;;  %v5942_v30 = vmul.f32 %v11566_v56, %v12862_v57  ;;  %v6031_v6 = vmul.f32 %v11577_v37, %v12862_v57  ;;  %v5943_v3 = vmul.f32 %v11647_v33, %v12853_v23  ;;  %v7417_v33 = vld [vmem:[%s13383_s1 + $0x180] sm:$0xff] }
 0xfdb   :  { %9215 = vmatprep.mubr.f32.mxu0 %v5762_v52  ;;  %9253 = vmatprep.mubr.f32.mxu1 %v5851_v46  ;;  %v6032_v63 = vmul.f32 %v11654_v28, %v12853_v23  ;;  %v6118_v56 = vmul.f32 %v13845_v54, %v12837_v0  ;;  %v6207_v37 = vmul.f32 %v13847_v58, %v12837_v0  ;;  %v7418_v28 = vld [vmem:[%s13383_s1 + $0x188] sm:$0xff] }
 0xfdc   :  { %10076 = vmatprep.subr.msk.bf16.mxu0 %vm11276_vm4, %v13693_v20  ;;  %10108 = vmatprep.subr.msk.bf16.mxu1 %vm11276_vm4, %v13693_v20  ;;  %v10255_v24 = vpack.c.bf16 %v7418_v28, %v7417_v33  ;;  %v6120_v22 = vmul.f32 %v13849_v62, %v12862_v57  ;;  %v6209_v9 = vmul.f32 %v13861_v7, %v12862_v57 }
 0xfdd   :  { %v10259_v54 = vpack.c.bf16 %v7420_v13, %v7419_v61  ;;  %v6210_v50 = vmul.f32 %v13860_v15, %v12853_v23 }
 0xfde   :  { %10078 = vmatpush3.bf16.msk.msra.mxu0 %vm11276_vm4, %v13693_v20  ;;  %10110 = vmatpush3.bf16.msk.msra.mxu1 %vm11276_vm4, %v13693_v20 }
 0xfdf   :  { %10080 = vmatprep.subr.msk.bf16.mxu0 %vm11296_vm8, %v13693_v20  ;;  %10112 = vmatprep.subr.msk.bf16.mxu1 %vm11296_vm8, %v13693_v20 }
 0xfe2   :  { %10082 = vmatpush3.bf16.msk.msra.mxu0 %vm11296_vm8, %v13693_v20  ;;  %10114 = vmatpush3.bf16.msk.msra.mxu1 %vm11296_vm8, %v13693_v20 }
 0xfe3   :  { %10084 = vmatprep.subr.msk.bf16.mxu0 %vm11317_vm2, %v13693_v20  ;;  %10116 = vmatprep.subr.msk.bf16.mxu1 %vm11317_vm2, %v13693_v20 }
 0xfe6   :  { %10086 = vmatpush3.bf16.msk.msra.mxu0 %vm11317_vm2, %v13693_v20  ;;  %10118 = vmatpush3.bf16.msk.msra.mxu1 %vm11317_vm2, %v13693_v20 }
 0xfe7   :  { %10088 = vmatprep.subr.msk.bf16.mxu0 %vm11334_vm7, %v13693_v20  ;;  %10120 = vmatprep.subr.msk.bf16.mxu1 %vm11334_vm7, %v13693_v20 }
 0xfea   :  { %10090 = vmatpush3.bf16.msk.msra.mxu0 %vm11334_vm7, %v13693_v20  ;;  %10122 = vmatpush3.bf16.msk.msra.mxu1 %vm11334_vm7, %v13693_v20 }
 0xfeb   :  { %10092 = vmatprep.subr.msk.bf16.mxu0 %vm13843_vm15, %v13693_v20  ;;  %10124 = vmatprep.subr.msk.bf16.mxu1 %vm13843_vm15, %v13693_v20 }
 0xfee   :  { %10094 = vmatpush3.bf16.msk.msra.mxu0 %vm13843_vm15, %v13693_v20  ;;  %10126 = vmatpush3.bf16.msk.msra.mxu1 %vm13843_vm15, %v13693_v20 }
 0xfef   :  { %10128 = vmatprep.subr.msk.bf16.mxu0 %vm11204_vm6, %v13693_v20  ;;  %10160 = vmatprep.subr.msk.bf16.mxu1 %vm11204_vm6, %v13693_v20 }
 0xff1   :  { %9216 = vmatmul.mubr.f32.vlgmr.msra.gmra.mrb[94].mxu0 %v5763_v14  ;;  %9254 = vmatmul.mubr.f32.vlgmr.msra.gmra.mrb[88].mxu1 %v5852_v29 }
 0xff2   :  { %9218 = vmatprep.mubr.f32.mxu0 %v5764_v51  ;;  %9256 = vmatprep.mubr.f32.mxu1 %v5853_v18 }
 0xff3   :  { %10130 = vmatpush3.bf16.msk.msra.mxu0 %vm11204_vm6, %v13693_v20  ;;  %10162 = vmatpush3.bf16.msk.msra.mxu1 %vm11204_vm6, %v13693_v20 }
 0xff4   :  { %10132 = vmatprep.subr.msk.bf16.mxu0 %vm11238_vm9, %v13693_v20  ;;  %10164 = vmatprep.subr.msk.bf16.mxu1 %vm11238_vm9, %v13693_v20 }
 0xff5   :  { %9219 = vmatmul.mubr.f32.gmra.mrb[96].mxu0 %v5765_v8  ;;  %9257 = vmatmul.mubr.f32.gmra.mrb[90].mxu1 %v5854_v44 }
 0xff6   :  { %9291 = vmatprep.mubr.f32.mxu0 %v5940_v35  ;;  %9329 = vmatprep.mubr.f32.mxu1 %v6029_v25 }
 0xff7   :  { %10134 = vmatpush3.bf16.msk.msra.mxu0 %vm11238_vm9, %v13693_v20  ;;  %10166 = vmatpush3.bf16.msk.msra.mxu1 %vm11238_vm9, %v13693_v20 }
 0xff8   :  { %10136 = vmatprep.subr.msk.bf16.mxu0 %vm11256_vm1, %v13693_v20  ;;  %10168 = vmatprep.subr.msk.bf16.mxu1 %vm11256_vm1, %v13693_v20 }
 0xffb   :  { %10138 = vmatpush3.bf16.msk.msra.mxu0 %vm11256_vm1, %v13693_v20  ;;  %10170 = vmatpush3.bf16.msk.msra.mxu1 %vm11256_vm1, %v13693_v20 }
 0xffc   :  { %10140 = vmatprep.subr.msk.bf16.mxu0 %vm11276_vm4, %v13693_v20  ;;  %10172 = vmatprep.subr.msk.bf16.mxu1 %vm11276_vm4, %v13693_v20 }
 0xfff   :  { %10142 = vmatpush3.bf16.msk.msra.mxu0 %vm11276_vm4, %v13693_v20  ;;  %10174 = vmatpush3.bf16.msk.msra.mxu1 %vm11276_vm4, %v13693_v20 }
0x1000   :  { %10144 = vmatprep.subr.msk.bf16.mxu0 %vm11296_vm8, %v13693_v20  ;;  %10176 = vmatprep.subr.msk.bf16.mxu1 %vm11296_vm8, %v13693_v20 }
0x1003   :  { %10146 = vmatpush3.bf16.msk.msra.mxu0 %vm11296_vm8, %v13693_v20  ;;  %10178 = vmatpush3.bf16.msk.msra.mxu1 %vm11296_vm8, %v13693_v20 }
0x1004   :  { %10148 = vmatprep.subr.msk.bf16.mxu0 %vm11317_vm2, %v13693_v20  ;;  %10180 = vmatprep.subr.msk.bf16.mxu1 %vm11317_vm2, %v13693_v20 }
0x1007   :  { %10150 = vmatpush3.bf16.msk.msra.mxu0 %vm11317_vm2, %v13693_v20  ;;  %10182 = vmatpush3.bf16.msk.msra.mxu1 %vm11317_vm2, %v13693_v20 }
0x1008   :  { %10152 = vmatprep.subr.msk.bf16.mxu0 %vm11334_vm7, %v13693_v20  ;;  %10184 = vmatprep.subr.msk.bf16.mxu1 %vm11334_vm7, %v13693_v20 }
0x100b   :  { %10154 = vmatpush3.bf16.msk.msra.mxu0 %vm11334_vm7, %v13693_v20  ;;  %10186 = vmatpush3.bf16.msk.msra.mxu1 %vm11334_vm7, %v13693_v20 }
0x100c   :  { %10156 = vmatprep.subr.msk.bf16.mxu0 %vm13843_vm15, %v13693_v20  ;;  %10188 = vmatprep.subr.msk.bf16.mxu1 %vm13843_vm15, %v13693_v20 }
0x100f   :  { %10158 = vmatpush3.bf16.msk.msra.mxu0 %vm13843_vm15, %v13693_v20  ;;  %10190 = vmatpush3.bf16.msk.msra.mxu1 %vm13843_vm15, %v13693_v20 }
0x1010   :  { %10192 = vmatprep.subr.msk.bf16.mxu0 %vm11204_vm6, %v13693_v20  ;;  %10224 = vmatprep.subr.msk.bf16.mxu1 %vm11204_vm6, %v13693_v20 }
0x1012   :  { %9292 = vmatmul.mubr.f32.vlgmr.msra.gmra.mrb[98].mxu0 %v5941_v16  ;;  %9330 = vmatmul.mubr.f32.vlgmr.msra.gmra.mrb[92].mxu1 %v6030_v43 }
0x1013   :  { %9294 = vmatprep.mubr.f32.mxu0 %v5942_v30  ;;  %9332 = vmatprep.mubr.f32.mxu1 %v6031_v6 }
0x1014   :  { %10194 = vmatpush3.bf16.msk.msra.mxu0 %vm11204_vm6, %v13693_v20  ;;  %10226 = vmatpush3.bf16.msk.msra.mxu1 %vm11204_vm6, %v13693_v20  ;;  %vm13876_vm6 = vmmov %vm13875_vm0 }
0x1015   :  { %10196 = vmatprep.subr.msk.bf16.mxu0 %vm11238_vm9, %v13693_v20  ;;  %10228 = vmatprep.subr.msk.bf16.mxu1 %vm11238_vm9, %v13693_v20 }
0x1016   :  { %9295 = vmatmul.mubr.f32.gmra.mrb[100].mxu0 %v5943_v3  ;;  %9333 = vmatmul.mubr.f32.gmra.mrb[94].mxu1 %v6032_v63 }
0x1017   :  { %9367 = vmatprep.mubr.f32.mxu0 %v6118_v56  ;;  %9405 = vmatprep.mubr.f32.mxu1 %v6207_v37 }
0x1018   :  { %10198 = vmatpush3.bf16.msk.msra.mxu0 %vm11238_vm9, %v13693_v20  ;;  %10230 = vmatpush3.bf16.msk.msra.mxu1 %vm11238_vm9, %v13693_v20  ;;  %vm13877_vm9 = vmmov %vm13875_vm0 }
0x1019   :  { %10200 = vmatprep.subr.msk.bf16.mxu0 %vm11256_vm1, %v13693_v20  ;;  %10232 = vmatprep.subr.msk.bf16.mxu1 %vm11256_vm1, %v13693_v20  ;;  %vm13891_vm0 = vmmov %vm13890_vm3 }
0x101c   :  { %10202 = vmatpush3.bf16.msk.msra.mxu0 %vm11256_vm1, %v13693_v20  ;;  %10234 = vmatpush3.bf16.msk.msra.mxu1 %vm11256_vm1, %v13693_v20  ;;  %vm13878_vm1 = vcmask 64512  }
0x101d   :  { %10204 = vmatprep.subr.msk.bf16.mxu0 %vm11276_vm4, %v13693_v20  ;;  %10236 = vmatprep.subr.msk.bf16.mxu1 %vm11276_vm4, %v13693_v20 }
0x1020   :  { %10206 = vmatpush3.bf16.msk.msra.mxu0 %vm11276_vm4, %v13693_v20  ;;  %10238 = vmatpush3.bf16.msk.msra.mxu1 %vm11276_vm4, %v13693_v20  ;;  %vm13879_vm4 = vmmov %vm13878_vm1 }
0x1021   :  { %10208 = vmatprep.subr.msk.bf16.mxu0 %vm11296_vm8, %v13693_v20  ;;  %10240 = vmatprep.subr.msk.bf16.mxu1 %vm11296_vm8, %v13693_v20 }
0x1024   :  { %10210 = vmatpush3.bf16.msk.msra.mxu0 %vm11296_vm8, %v13693_v20  ;;  %10242 = vmatpush3.bf16.msk.msra.mxu1 %vm11296_vm8, %v13693_v20  ;;  %vm13880_vm8 = vcmask 97280  }
0x1025   :  { %10212 = vmatprep.subr.msk.bf16.mxu0 %vm11317_vm2, %v13693_v20  ;;  %10244 = vmatprep.subr.msk.bf16.mxu1 %vm11317_vm2, %v13693_v20 }
0x1028   :  { %10214 = vmatpush3.bf16.msk.msra.mxu0 %vm11317_vm2, %v13693_v20  ;;  %10246 = vmatpush3.bf16.msk.msra.mxu1 %vm11317_vm2, %v13693_v20  ;;  %vm13881_vm2 = vmmov %vm13880_vm8 }
0x1029   :  { %10216 = vmatprep.subr.msk.bf16.mxu0 %vm11334_vm7, %v13693_v20  ;;  %10248 = vmatprep.subr.msk.bf16.mxu1 %vm11334_vm7, %v13693_v20 }
0x102c   :  { %10218 = vmatpush3.bf16.msk.msra.mxu0 %vm11334_vm7, %v13693_v20  ;;  %10250 = vmatpush3.bf16.msk.msra.mxu1 %vm11334_vm7, %v13693_v20  ;;  %vm13882_vm7 = vcmask 130048  }
0x102d   :  { %10220 = vmatprep.subr.msk.bf16.mxu0 %vm13843_vm15, %v13693_v20  ;;  %10252 = vmatprep.subr.msk.bf16.mxu1 %vm13843_vm15, %v13693_v20 }
0x1030   :  { %10222 = vmatpush3.bf16.msk.msra.mxu0 %vm13843_vm15, %v13693_v20  ;;  %10254 = vmatpush3.bf16.msk.msra.mxu1 %vm13843_vm15, %v13693_v20  ;;  %v6121_v20 = vmul.f32 %v13848_v42, %v12853_v23  ;;  %vm13883_vm15 = vmmov %vm13882_vm7 }
0x1031   :  { %10256 = vmatprep.subr.bf16.mxu0 %v10255_v24 }
0x1033   :  { %9368 = vmatmul.mubr.f32.vlgmr.msra.gmra.mrb[102].mxu0 %v6119_v21  ;;  %9406 = vmatmul.mubr.f32.vlgmr.msra.gmra.mrb[96].mxu1 %v6208_v2 }
0x1034   :  { %9370 = vmatprep.mubr.f32.mxu0 %v6120_v22  ;;  %9408 = vmatprep.mubr.f32.mxu1 %v6209_v9 }
0x1035   :  { %10258 = vmatpush3.bf16.msra.mxu0 %v10255_v24 }
0x1036   :  { %10260 = vmatprep.subr.bf16.mxu0 %v10259_v54 }
0x1037   :  { %9371 = vmatmul.mubr.f32.gmra.mrb[104].mxu0 %v6121_v20  ;;  %9409 = vmatmul.mubr.f32.gmra.mrb[98].mxu1 %v6210_v50 }
0x1039   :  { %10262 = vmatpush3.bf16.msra.mxu0 %v10259_v54 }
0x103a   :  { %10264 = vmatprep.subr.bf16.mxu0 %v12466_v45 }
0x10a4   :  { %v13203_v4 = vpop.f32.mrb[90].mxu0  ;;  %v9179_v59 = vpop.f32.mrb[84].mxu1 }
0x10a5   :  { %6302 = vrot.lane.b32.xlu1 %v9179_v59, %s10551_s29  ;;  %v13206_v58 = vpop.f32.mrb[91].mxu0  ;;  %v5743_v62 = vpop.f32.mrb[85].mxu1 }
0x10a6   :  { %6300 = vrot.lane.b32.xlu0 %v5743_v62, %s10551_s29 }
0x10ac   :  { %v13209_v42 = vpop.f32.mrb[92].mxu0  ;;  %v9182_v7 = vpop.f32.mrb[86].mxu1 }
0x10ad   :  { %v13211_v15 = vpop.f32.mrb[93].mxu0  ;;  %v5753_v40 = vpop.f32.mrb[87].mxu1 }
0x10c4   :  { %v9217_v49 = vpop.f32.mrb[94].mxu0  ;;  %v9255_v10 = vpop.f32.mrb[88].mxu1 }
0x10c5   :  { %v5921_v31 = vpop.f32.mrb[89].mxu1  ;;  %6318 = vrot.lane.b32.xlu0 %v9217_v49, %s10552_s30  ;;  %v5832_v5 = vpop.f32.mrb[95].mxu0  ;;  %v13892_v49 = vld [vmem:[#allocation44_spill] sm:$0xff] }
0x10c6   :  { %6316 = vrot.lane.b32.xlu1 %v5832_v5, %s10552_s30  ;;  %v13893_v5 = vld [vmem:[#allocation47_spill] sm:$0xff] }
0x10c8   :  { %v9220_v27 = vpop.f32.mrb[96].mxu0  ;;  %v9258_v39 = vpop.f32.mrb[90].mxu1 }
0x10c9   :  { %v5931_v36 = vpop.f32.mrb[91].mxu1  ;;  %6334 = vrot.lane.b32.xlu0 %v9255_v10, %s10553_s0  ;;  %v5842_v48 = vpop.f32.mrb[97].mxu0 }
0x10ca   :  { %6332 = vrot.lane.b32.xlu1 %v5921_v31, %s10553_s0 }
0x10e5   :  { %v9293_v47 = vpop.f32.mrb[98].mxu0  ;;  %v9331_v32 = vpop.f32.mrb[92].mxu1 }
0x10e6   :  { %v6099_v1 = vpop.f32.mrb[93].mxu1  ;;  %6350 = vrot.lane.b32.xlu0 %v9293_v47, %s10554_s5  ;;  %v6010_v11 = vpop.f32.mrb[99].mxu0 }
0x10e7   :  { %6348 = vrot.lane.b32.xlu1 %v6010_v11, %s10554_s5 }
0x10e9   :  { %v9296_v41 = vpop.f32.mrb[100].mxu0  ;;  %v9334_v17 = vpop.f32.mrb[94].mxu1 }
0x10ea   :  { %v6109_v60 = vpop.f32.mrb[95].mxu1  ;;  %6366 = vrot.lane.b32.xlu0 %v9331_v32, %s10555_s6  ;;  %v6020_v19 = vpop.f32.mrb[101].mxu0 }
0x10eb   :  { %6364 = vrot.lane.b32.xlu1 %v6099_v1, %s10555_s6 }
0x1106   :  { %v9369_v26 = vpop.f32.mrb[102].mxu0  ;;  %v9407_v34 = vpop.f32.mrb[96].mxu1 }
0x1107   :  { %v6277_v55 = vpop.f32.mrb[97].mxu1  ;;  %6382 = vrot.lane.b32.xlu0 %v9369_v26, %s10556_s7  ;;  %v6188_v38 = vpop.f32.mrb[103].mxu0 }
0x1108   :  { %6380 = vrot.lane.b32.xlu1 %v6188_v38, %s10556_s7 }
0x110a   :  { %v9372_v52 = vpop.f32.mrb[104].mxu0  ;;  %v9410_v46 = vpop.f32.mrb[98].mxu1 }
0x110b   :  { %v6287_v14 = vpop.f32.mrb[99].mxu1  ;;  %6398 = vrot.lane.b32.xlu0 %v9407_v34, %s10557_s8  ;;  %v6198_v29 = vpop.f32.mrb[105].mxu0 }
0x110c   :  { %6396 = vrot.lane.b32.xlu1 %v6277_v55, %s10557_s8 }
0x110f   :  { %6306 = vrot.lane.b32.xlu0 %v9182_v7, %s10551_s29 }
0x1110   :  { %6304 = vrot.lane.b32.xlu1 %v5753_v40, %s10551_s29 }
0x1113   :  { %6322 = vrot.lane.b32.xlu0 %v9220_v27, %s10552_s30 }
0x1114   :  { %6320 = vrot.lane.b32.xlu1 %v5842_v48, %s10552_s30 }
0x1117   :  { %6338 = vrot.lane.b32.xlu0 %v9258_v39, %s10553_s0  ;;  %v6303_v18 = vpop.permute.xlu1 %6302 }
0x1118   :  { %6336 = vrot.lane.b32.xlu1 %v5931_v36, %s10553_s0  ;;  %v6301_v51 = vpop.permute.xlu0 %6300  ;;  %v6409_v56 = vsel %vm13877_vm9, %v13203_v4, %v6303_v18  ;;  %vm13896_vm9 = vmmov %vm13876_vm6  ;;  %v13903_v18 = vld [vmem:[#allocation49_spill] sm:$0xff] }
0x1119   :  { %v6408_v3 = vsel %vm13876_vm6, %v13206_v58, %v6301_v51 }
0x111b   :  { %6354 = vrot.lane.b32.xlu0 %v9296_v41, %s10554_s5 }
0x111c   :  { %6352 = vrot.lane.b32.xlu1 %v6020_v19, %s10554_s5  ;;  %v13899_v19 = vld [vmem:[#allocation46_spill] sm:$0xff] }
0x111f   :  { %6370 = vrot.lane.b32.xlu0 %v9334_v17, %s10555_s6 }
0x1120   :  { %6368 = vrot.lane.b32.xlu1 %v6109_v60, %s10555_s6 }
0x1123   :  { %6386 = vrot.lane.b32.xlu0 %v9372_v52, %s10556_s7 }
0x1124   :  { %6384 = vrot.lane.b32.xlu1 %v6198_v29, %s10556_s7 }
0x1127   :  { %6402 = vrot.lane.b32.xlu0 %v9410_v46, %s10557_s8 }
0x1128   :  { %6400 = vrot.lane.b32.xlu1 %v6287_v14, %s10557_s8 }
0x1137   :  { %v6319_v8 = vpop.permute.xlu0 %6318 }
0x1138   :  { %v6317_v44 = vpop.permute.xlu1 %6316  ;;  %v6413_v28 = vsel %vm13879_vm4, %v6409_v56, %v6319_v8  ;;  %vm13897_vm4 = vmmov %vm13878_vm1  ;;  %v7428_v56 = vld [vmem:[%s13383_s1 + $0x1d8] sm:$0xff] }
0x1139   :  { %v6412_v37 = vsel %vm13878_vm1, %v6408_v3, %v6317_v44  ;;  %v13910_v3 = vld [vmem:[#allocation42_spill] sm:$0xff] }
0x113b   :  { %v6335_v35 = vpop.permute.xlu0 %6334 }
0x113c   :  { %v6333_v25 = vpop.permute.xlu1 %6332  ;;  %v6417_v61 = vsel %vm13881_vm2, %v6413_v28, %v6335_v35  ;;  %v13915_v28 = vld [vmem:[#allocation6_spill] sm:$0xff] }
0x113d   :  { %v6416_v24 = vsel %vm13880_vm8, %v6412_v37, %v6333_v25  ;;  %vm13898_vm8 = vmmov %vm13881_vm2  ;;  %v7423_v25 = vld [vmem:[%s13383_s1 + $0x1b0] sm:$0xff] }
0x1158   :  { %v6351_v16 = vpop.permute.xlu0 %6350 }
0x1159   :  { %v6349_v43 = vpop.permute.xlu1 %6348  ;;  %v6421_v21 = vsel %vm13883_vm15, %v6417_v61, %v6351_v16  ;;  %vm13900_vm15 = vmmov %vm13882_vm7  ;;  %v7424_v16 = vld [vmem:[%s13383_s1 + $0x1b8] sm:$0xff]  ;;  %v13331_v61 = vld [vmem:[%s13384_s2] sm:$0x3f] }
0x115a   :  { %v6420_v13 = vsel %vm13882_vm7, %v6416_v24, %v6349_v43  ;;  %v10299_v43 = vpack.c.bf16 %v7424_v16, %v7423_v25  ;;  %v6709_v24 = vsub.s32 3, %v13915_v28 }
0x115c   :  { %v6367_v30 = vpop.permute.xlu0 %6366 }
0x115d   :  { %v6365_v6 = vpop.permute.xlu1 %6364  ;;  %v6425_v9 = vsel %vm13885_vm10, %v6421_v21, %v6367_v30  ;;  %v13906_v30 = vld [vmem:[#allocation40_spill] sm:$0xff] }
0x115e   :  { %v6424_v2 = vsel %vm13884_vm11, %v6420_v13, %v6365_v6  ;;  %vm13901_vm11 = vmmov %vm13885_vm10  ;;  %v13908_v6 = vld [vmem:[#allocation41_spill] sm:$0xff]  ;;  %v6710_v13 = vrot.slane %v13331_v61, %v6709_v24 }
0x1179   :  { %v6383_v63 = vpop.permute.xlu0 %6382 }
0x117a   :  { %v6381_v33 = vpop.permute.xlu1 %6380  ;;  %v6429_v50 = vsel %vm13887_vm13, %v6425_v9, %v6383_v63  ;;  %vm13902_vm13 = vmmov %vm13886_vm5 }
0x117b   :  { %v6428_v54 = vsel %vm13886_vm5, %v6424_v2, %v6381_v33  ;;  %v13914_v33 = vmov 0.0|0.0  }
0x117d   :  { %v6399_v22 = vpop.permute.xlu0 %6398 }
0x117e   :  { %v6397_v20 = vpop.permute.xlu1 %6396  ;;  %v6433_v59 = vsel %vm13889_vm14, %v6429_v50, %v6399_v22  ;;  %vm13904_vm14 = vmmov %vm13888_vm12 }
0x117f   :  { %v6432_v4 = vsel %vm13888_vm12, %v6428_v54, %v6397_v20 }
0x1180   :  { %9419 = vmatprep.mubr.msk.f32.mxu0 %vm13890_vm3, %v6432_v4  ;;  %vm13905_vm3 = vmmov %vm13891_vm0 }
0x1181   :  { %v6307_v58 = vpop.permute.xlu0 %6306  ;;  %9420 = vmatmul.mubr.msk.f32.vlgmr.msra.gmra.mrb[106].mxu0 %vm13891_vm0, %v6433_v59 }
0x1182   :  { %10266 = vmatpush3.bf16.msra.mxu0 %v12466_v45  ;;  %v6305_v62 = vpop.permute.xlu1 %6304  ;;  %v13894_v45 = vld [vmem:[#allocation45_spill] sm:$0xff]  ;;  %v6411_v1 = vsel %vm13896_vm9, %v13209_v42, %v6307_v58  ;;  %vm13909_vm9 = vmmov %vm13891_vm0 }
0x1183   :  { %10268 = vmatprep.subr.bf16.mxu0 %v12482_v53  ;;  %v6410_v47 = vsel %vm13876_vm6, %v13211_v15, %v6305_v62  ;;  %v7421_v15 = vld [vmem:[%s13383_s1 + $0x1a0] sm:$0xff]  ;;  %v7422_v42 = vld [vmem:[%s13383_s1 + $0x1a8] sm:$0xff]  ;;  %vm13907_vm6 = vmmov %vm13891_vm0 }
0x1184   :  { %v10295_v44 = vpack.c.bf16 %v7422_v42, %v7421_v15 }
0x1185   :  { %v6323_v7 = vpop.permute.xlu0 %6322 }
0x1186   :  { %10270 = vmatpush3.bf16.msra.mxu0 %v12482_v53  ;;  %v6321_v40 = vpop.permute.xlu1 %6320  ;;  %v13895_v53 = vld [vmem:[#allocation48_spill] sm:$0xff]  ;;  %v6415_v17 = vsel %vm13897_vm4, %v6411_v1, %v6323_v7  ;;  %vm13913_vm4 = vmmov %vm13891_vm0 }
0x1187   :  { %10272 = vmatprep.subr.bf16.mxu0 %v13892_v49  ;;  %v6414_v11 = vsel %vm13878_vm1, %v6410_v47, %v6321_v40  ;;  %vm13911_vm1 = vmmov %vm13891_vm0 }
0x1189   :  { %v6339_v10 = vpop.permute.xlu0 %6338 }
0x118a   :  { %10274 = vmatpush3.bf16.msra.mxu0 %v13892_v49  ;;  %v6337_v31 = vpop.permute.xlu1 %6336  ;;  %v6419_v26 = vsel %vm13881_vm2, %v6415_v17, %v6339_v10  ;;  %vm13917_vm2 = vmmov %vm13891_vm0 }
0x118b   :  { %10276 = vmatprep.subr.bf16.mxu0 %v13893_v5  ;;  %v6418_v60 = vsel %vm13898_vm8, %v6414_v11, %v6337_v31  ;;  %vm13916_vm8 = vmmov %vm13891_vm0 }
0x118d   :  { %v6355_v27 = vpop.permute.xlu0 %6354 }
0x118e   :  { %10278 = vmatpush3.bf16.msra.mxu0 %v13893_v5  ;;  %v6353_v39 = vpop.permute.xlu1 %6352  ;;  %v6423_v55 = vsel %vm13900_vm15, %v6419_v26, %v6355_v27  ;;  %vm13919_vm15 = vmmov %vm13891_vm0 }
0x118f   :  { %10280 = vmatprep.subr.bf16.mxu0 %v13894_v45  ;;  %v6422_v34 = vsel %vm13882_vm7, %v6418_v60, %v6353_v39  ;;  %vm13918_vm7 = vmmov %vm13891_vm0 }
0x1191   :  { %v6371_v36 = vpop.permute.xlu0 %6370 }
0x1192   :  { %10282 = vmatpush3.bf16.msra.mxu0 %v13894_v45  ;;  %v6369_v48 = vpop.permute.xlu1 %6368  ;;  %v6427_v46 = vsel %vm13885_vm10, %v6423_v55, %v6371_v36 }
0x1193   :  { %10284 = vmatprep.subr.bf16.mxu0 %v13895_v53  ;;  %v6426_v38 = vsel %vm13901_vm11, %v6422_v34, %v6369_v48  ;;  %vm13921_vm11 = vmmov 0  }
0x1195   :  { %v6387_v32 = vpop.permute.xlu0 %6386 }
0x1196   :  { %10286 = vmatpush3.bf16.msra.mxu0 %v13895_v53  ;;  %v6385_v41 = vpop.permute.xlu1 %6384  ;;  %v6431_v51 = vsel %vm13902_vm13, %v6427_v46, %v6387_v32  ;;  %vm13924_vm13 = vmmov %vm13891_vm0 }
0x1197   :  { %10288 = vmatprep.subr.bf16.mxu0 %v13899_v19  ;;  %v6430_v14 = vsel %vm13886_vm5, %v6426_v38, %v6385_v41  ;;  %vm13923_vm5 = vmmov %vm13891_vm0 }
0x1199   :  { %v6403_v52 = vpop.permute.xlu0 %6402 }
0x119a   :  { %10290 = vmatpush3.bf16.msra.mxu0 %v13899_v19  ;;  %v6401_v29 = vpop.permute.xlu1 %6400  ;;  %v6435_v35 = vsel %vm13904_vm14, %v6431_v51, %v6403_v52 }
0x119b   :  { %10292 = vmatprep.subr.bf16.mxu0 %v13903_v18  ;;  %v6434_v8 = vsel %vm13888_vm12, %v6430_v14, %v6401_v29 }
0x119c   :  { %9422 = vmatprep.mubr.msk.f32.mxu0 %vm13905_vm3, %v6434_v8 }
0x119d   :  { %9423 = vmatmul.mubr.msk.f32.gmra.mrb[108].mxu0 %vm13891_vm0, %v6435_v35 }
0x119e   :  { %10294 = vmatpush3.bf16.msra.mxu0 %v13903_v18  ;;  %9457 = vmatprep.mubr.f32.mxu0 %v12837_v0  ;;  %v13912_v0 = vld [vmem:[#allocation43_spill] sm:$0xff] }
0x119f   :  { %10296 = vmatprep.subr.bf16.mxu0 %v10295_v44 }
0x11a1   :  { %9458 = vmatmul.mubr.f32.vlgmr.msra.gmra.mrb[106].mxu0 %v12835_v12  ;;  %v7425_v12 = vld [vmem:[%s13383_s1 + $0x1c0] sm:$0xff] }
0x11a2   :  { %9460 = vmatprep.mubr.f32.mxu0 %v12862_v57  ;;  %10298 = vmatpush3.bf16.msra.mxu0 %v10295_v44  ;;  %v7427_v57 = vld [vmem:[%s13383_s1 + $0x1d0] sm:$0xff] }
0x11a3   :  { %10300 = vmatprep.subr.bf16.mxu0 %v10299_v43  ;;  %v10307_v37 = vpack.c.bf16 %v7428_v56, %v7427_v57 }
0x11a5   :  { %9461 = vmatmul.mubr.f32.gmra.mrb[108].mxu0 %v12853_v23  ;;  %v7426_v23 = vld [vmem:[%s13383_s1 + $0x1c8] sm:$0xff] }
0x11a6   :  { %10302 = vmatpush3.bf16.msra.mxu0 %v10299_v43  ;;  %9471 = vmatprep.mubr.msk.f32.mxu0 %vm13907_vm6, %v13906_v30  ;;  %v10303_v63 = vpack.c.bf16 %v7426_v23, %v7425_v12  ;;  %v13920_v43 = vmov 0.0  }
0x11a8   :  { %10304 = vmatprep.subr.bf16.mxu1 %v10303_v63 }
0x11a9   :  { %9472 = vmatmul.mubr.msk.f32.vlgmr.msra.gmra.mrb[106].mxu0 %vm13909_vm9, %v13908_v6  ;;  %10306 = vmatpush3.bf16.msra.mxu1 %v10303_v63 }
0x11aa   :  { %9474 = vmatprep.mubr.msk.f32.mxu0 %vm13911_vm1, %v13910_v3  ;;  %10308 = vmatprep.subr.bf16.mxu1 %v10307_v37 }
0x11ad   :  { %9475 = vmatmul.mubr.msk.f32.gmra.mrb[108].mxu0 %vm13913_vm4, %v13912_v0  ;;  %10310 = vmatpush3.bf16.msra.mxu1 %v10307_v37 }
0x11ae   :  { %10311 = vmatprep.subr.bf16.mxu1 %v13914_v33 }
0x127c   :  { %v9473_v21 = vpop.f32.mrb[106].mxu0 }
0x127d   :  { %v6712_v2 = vadd.f32 %v9473_v21, %v6710_v13  ;;  %v6684_v22 = vpop.f32.mrb[107].mxu0 }
0x127e   :  { %v6711_v9 = vadd.f32 %v6710_v13, %v6684_v22 }
0x127f   :  { %v6720_v54 = vmul.f32 0.044715, %v6712_v2  ;;  %v6716_v19 = vmul.f32 0.5, %v6712_v2 }
0x1280   :  { %v6719_v20 = vmul.f32 0.044715, %v6711_v9  ;;  %v9476_v50 = vpop.f32.mrb[108].mxu0  ;;  %v6715_v34 = vmul.f32 0.5, %v6711_v9 }
0x1281   :  { %v6724_v4 = vmul.f32 %v6720_v54, %v6712_v2  ;;  %v6714_v59 = vadd.f32 %v9476_v50, %v6710_v13  ;;  %v6694_v58 = vpop.f32.mrb[109].mxu0 }
0x1282   :  { %v6723_v62 = vmul.f32 %v6719_v20, %v6711_v9  ;;  %v6713_v7 = vadd.f32 %v6710_v13, %v6694_v58 }
0x1283   :  { %v6728_v40 = vmul.f32 %v6724_v4, %v6712_v2  ;;  %v6722_v49 = vmul.f32 0.044715, %v6714_v59  ;;  %v6718_v46 = vmul.f32 0.5, %v6714_v59 }
0x1284   :  { %v6727_v10 = vmul.f32 %v6723_v62, %v6711_v9  ;;  %v6721_v31 = vmul.f32 0.044715, %v6713_v7  ;;  %v6717_v51 = vmul.f32 0.5, %v6713_v7 }
0x1285   :  { %v6732_v5 = vadd.f32 %v6728_v40, %v6712_v2  ;;  %v6726_v27 = vmul.f32 %v6722_v49, %v6714_v59 }
0x1286   :  { %v6731_v39 = vadd.f32 %v6727_v10, %v6711_v9  ;;  %v6725_v45 = vmul.f32 %v6721_v31, %v6713_v7 }
0x1287   :  { %v6736_v36 = vmul.f32 0.7978846, %v6732_v5  ;;  %v6730_v48 = vmul.f32 %v6726_v27, %v6714_v59 }
0x1288   :  { %v6735_v53 = vmul.f32 0.7978846, %v6731_v39  ;;  %v6729_v47 = vmul.f32 %v6725_v45, %v6713_v7 }
0x1289   :  { %10493 = vtanh.f32 %v6736_v36  ;;  %v6734_v32 = vadd.f32 %v6730_v48, %v6714_v59 }
0x128a   :  { %10495 = vtanh.f32 %v6735_v53  ;;  %v6733_v1 = vadd.f32 %v6729_v47, %v6713_v7 }
0x128b   :  { %v6738_v11 = vmul.f32 0.7978846, %v6734_v32 }
0x128c   :  { %v6737_v41 = vmul.f32 0.7978846, %v6733_v1 }
0x128d   :  { %10497 = vtanh.f32 %v6738_v11 }
0x128e   :  { %10499 = vtanh.f32 %v6737_v41 }
0x1293   :  { %v10494_v17 = vpop.eup %10493 }
0x1294   :  { %v10496_v60 = vpop.eup %10495  ;;  %v6744_v26 = vadd.f32 1.0, %v10494_v17 }
0x1295   :  { %v6743_v15 = vadd.f32 1.0, %v10496_v60 }
0x1296   :  { %v6748_v42 = vmul.f32 %v6744_v26, %v6716_v19 }
0x1297   :  { %v10498_v55 = vpop.eup %10497  ;;  %v6747_v38 = vmul.f32 %v6743_v15, %v6715_v34 }
0x1298   :  { %v10500_v52 = vpop.eup %10499  ;;  %v6746_v14 = vadd.f32 1.0, %v10498_v55  ;;  %v6752_v8 = vadd.f32 %v6748_v42, %v13908_v6  ;;  %v13922_v55 = vld [vmem:[#allocation5_spill] sm:$0xff] }
0x1299   :  { %v6751_v29 = vadd.f32 %v6747_v38, %v13906_v30  ;;  %v6745_v18 = vadd.f32 1.0, %v10500_v52  ;;  %v6757_v30 = vsub.s32 4, %v13915_v28  ;;  %v6896_v38 = vshra.s32 %v13922_v55, 4 }
0x129a   :  { %v6750_v44 = vmul.f32 %v6746_v14, %v6718_v46 }
0x129b   :  { %9485 = vmatprep.mubr.msk.f32.mxu1 %vm13916_vm8, %v6751_v29  ;;  %v6749_v35 = vmul.f32 %v6745_v18, %v6717_v51  ;;  %v6758_v6 = vrot.slane %v13331_v61, %v6757_v30  ;;  %vm6897_vm10 = vcmp.eq.s32.totalorder %v13915_v28, %v6896_v38  ;;  %v23_v18 = vld [vmem:[%s13385_s3] sm:$0xff] }
0x129c   :  { %9486 = vmatmul.mubr.msk.f32.vlgmr.msra.gmra.mrb[100].mxu1 %vm13917_vm2, %v6752_v8  ;;  %v6754_v16 = vadd.f32 %v6750_v44, %v13912_v0  ;;  %v7650_v44 = vsel %vm6897_vm10, 1.0, %v13920_v43 }
0x129d   :  { %v6753_v25 = vadd.f32 %v6749_v35, %v13910_v3 }
0x129f   :  { %9488 = vmatprep.mubr.msk.f32.mxu1 %vm13918_vm7, %v6753_v25 }
0x12a0   :  { %9489 = vmatmul.mubr.msk.f32.gmra.mrb[102].mxu1 %vm13919_vm15, %v6754_v16 }
0x12a1   :  { %9499 = vmatprep.mubr.msk.f32.mxu1 %vm13921_vm11, %v13920_v43 }
0x136f   :  { %v9487_v12 = vpop.f32.mrb[100].mxu1 }
0x1370   :  { %v6843_v23 = vadd.f32 %v9487_v12, %v6758_v6  ;;  %v6837_v57 = vpop.f32.mrb[101].mxu1 }
0x1371   :  { %v6838_v63 = vadd.f32 %v6837_v57, %v6758_v6 }
0x1372   :  { %v6861_v56 = vmul.f32 0.044715, %v6843_v23  ;;  %v6857_v36 = vmul.f32 0.5, %v6843_v23 }
0x1373   :  { %v6860_v37 = vmul.f32 0.044715, %v6838_v63  ;;  %v9490_v3 = vpop.f32.mrb[102].mxu1  ;;  %v6856_v53 = vmul.f32 0.5, %v6838_v63 }
0x1374   :  { %v6865_v24 = vmul.f32 %v6861_v56, %v6843_v23  ;;  %v6853_v0 = vadd.f32 %v9490_v3, %v6758_v6  ;;  %v6847_v13 = vpop.f32.mrb[103].mxu1 }
0x1375   :  { %v6864_v21 = vmul.f32 %v6860_v37, %v6838_v63  ;;  %v6848_v2 = vadd.f32 %v6847_v13, %v6758_v6 }
0x1376   :  { %v6869_v22 = vmul.f32 %v6865_v24, %v6843_v23  ;;  %v6863_v9 = vmul.f32 0.044715, %v6853_v0  ;;  %v6859_v17 = vmul.f32 0.5, %v6853_v0 }
0x1377   :  { %v6868_v54 = vmul.f32 %v6864_v21, %v6838_v63  ;;  %v6862_v20 = vmul.f32 0.044715, %v6848_v2  ;;  %v6858_v26 = vmul.f32 0.5, %v6848_v2 }
0x1378   :  { %v6873_v50 = vadd.f32 %v6869_v22, %v6843_v23  ;;  %v6867_v4 = vmul.f32 %v6863_v9, %v6853_v0  ;;  %v6975_v23 = vsub.s32 5, %v13915_v28 }
0x1379   :  { %v6872_v59 = vadd.f32 %v6868_v54, %v6838_v63  ;;  %v6866_v58 = vmul.f32 %v6862_v20, %v6848_v2 }
0x137a   :  { %v6877_v62 = vmul.f32 0.7978846, %v6873_v50  ;;  %v6871_v7 = vmul.f32 %v6867_v4, %v6853_v0  ;;  %v6976_v57 = vrot.slane %v13331_v61, %v6975_v23 }
0x137b   :  { %v6876_v40 = vmul.f32 0.7978846, %v6872_v59  ;;  %v6870_v49 = vmul.f32 %v6866_v58, %v6848_v2 }
0x137c   :  { %10501 = vtanh.f32 %v6877_v62  ;;  %v6875_v10 = vadd.f32 %v6871_v7, %v6853_v0 }
0x137d   :  { %10503 = vtanh.f32 %v6876_v40  ;;  %v6874_v31 = vadd.f32 %v6870_v49, %v6848_v2 }
0x137e   :  { %v6879_v5 = vmul.f32 0.7978846, %v6875_v10 }
0x137f   :  { %v6878_v27 = vmul.f32 0.7978846, %v6874_v31 }
0x1380   :  { %10505 = vtanh.f32 %v6879_v5 }
0x1381   :  { %10507 = vtanh.f32 %v6878_v27 }
0x1386   :  { %v10502_v39 = vpop.eup %10501 }
0x1387   :  { %v10504_v45 = vpop.eup %10503  ;;  %v6885_v48 = vadd.f32 1.0, %v10502_v39 }
0x1388   :  { %v6884_v47 = vadd.f32 1.0, %v10504_v45 }
0x1389   :  { %v6889_v32 = vmul.f32 %v6885_v48, %v6857_v36 }
0x138a   :  { %v10506_v1 = vpop.eup %10505  ;;  %v6888_v11 = vmul.f32 %v6884_v47, %v6856_v53 }
0x138b   :  { %v10508_v41 = vpop.eup %10507  ;;  %v6893_v60 = vadd.f32 %v6889_v32, %v6752_v8  ;;  %v6887_v19 = vadd.f32 1.0, %v10506_v1 }
0x138c   :  { %v6892_v34 = vadd.f32 %v6888_v11, %v6751_v29  ;;  %v6886_v15 = vadd.f32 1.0, %v10508_v41  ;;  %v24_v29 = vld [vmem:[%s13385_s3 + $0x8] sm:$0xff] }
0x138d   :  { %v6891_v42 = vmul.f32 %v6887_v19, %v6859_v17  ;;  %v10318_v35 = vpack.c.bf16 %v24_v29, %v23_v18 }
0x138e   :  { %v10312_v52 = vpack.c.bf16 %v6893_v60, %v6892_v34  ;;  %v6890_v46 = vmul.f32 %v6886_v15, %v6858_v26 }
0x138f   :  { %v6895_v14 = vadd.f32 %v6891_v42, %v6754_v16  ;;  %v26_v16 = vld [vmem:[%s13385_s3 + $0x18] sm:$0xff] }
0x1390   :  { %10313 = vmatpush3.bf16.msra.mxu1 %v10312_v52  ;;  %v6894_v51 = vadd.f32 %v6890_v46, %v6753_v25  ;;  %v25_v25 = vld [vmem:[%s13385_s3 + $0x10] sm:$0xff]  ;;  %s7057_s3 = sshll.u32 %s10558_s16, 4  ;;  %s7058_s3 = int_to_ptr.vmem [resolvable:$true] %s7057_s3 }
0x1391   :  { %10314 = vmatprep.subr.bf16.mxu1 %v13914_v33  ;;  %v10321_v30 = vpack.c.bf16 %v26_v16, %v25_v25  ;;  %s10511_s17 = scalar_lea.vmem %s7058_s3, 32  ;;  %p10516_p1 = scmp.lt.s32.totalorder %s7058_s3, %s7058_s3 }
0x1392   :  { %v10315_v8 = vpack.c.bf16 %v6895_v14, %v6894_v51  ;;  %p10512_p0 = scmp.ne.s32.totalorder %s7058_s3, %s10511_s17  ;;  %p10517_p2 = scmp.lt.s32.totalorder %s10511_s17, %s10511_s17 }
0x1394   :  { %10316 = vmatpush3.bf16.msra.mxu1 %v10315_v8  ;;  %p10518_p3 = por %p10517_p2, %p10516_p1 }
0x1395   :  { %10317 = vmatprep.subr.bf16.mxu1 %v13914_v33 }
0x1396   :  { %p10519_p4 = pnand %p10518_p3, %p10512_p0 }
0x1397   :  { %9500 = vmatmul.mubr.msk.f32.vlgmr.msra.gmra.mrb[104].mxu1 %vm13923_vm5, %v7650_v44 }
0x1398   :  { %10319 = vmatpush3.bf16.msra.mxu1 %v10318_v35  ;;  %9510 = vmatprep.mubr.msk.f32.mxu1 %vm13921_vm11, %v13920_v43 }
0x1399   :  { %10320 = vmatprep.subr.bf16.mxu1 %v13914_v33 }
0x139c   :  { %10322 = vmatpush3.bf16.msra.mxu1 %v10321_v30 }
0x146a   :  { %v6969_v6 = vpop.f32.mrb[104].mxu1 }
0x146b   :  { %v9501_v12 = vpop.f32.mrb[105].mxu1  ;;  %9511 = vmatmul.mubr.msk.f32.vlgmr.msra.gmra.mrb[106].mxu1 %vm13924_vm13, %v6969_v6 }
0x153e   :  { %v7046_v63 = vpop.f32.mrb[106].mxu1 }
0x153f   :  { %v7047_v56 = vadd.f32 %v7046_v63, %v6976_v57  ;;  %v9512_v37 = vpop.f32.mrb[107].mxu1 }
0x1541   :  { %7050 = vst [vmem:[#allocation2] sm:$0x3] %v7047_v56 }
0x1542   :  { %10522 = shalt.err (!%p10519_p4)
}
0x1543   :  { %s10523_s20 = scalar_lea.hbm %s13386_s4, 32 }
0x1544   :  { %p10524_p5 = scmp.ne.s32.totalorder %s13386_s4, %s10523_s20  ;;  %p10527_p6 = scmp.lt.u32.totalorder %s10523_s20, %s13386_s4 }
0x1546   :  { %p10529_p7 = pnand %p10527_p6, %p10524_p5 }
0x1548   :  { %10532 = shalt.err (!%p10529_p7)
}
0x1549   :  { %7060 = dma.vmem_to_hbm [thread:$0]  %s7058_s3, 32, %s13386_s4, [#allocation3]  }
0x154a   :  { %10533 = dma.done.wait [#allocation3], 32  }
0x154b   :  { %10534 = vsyncadd [#allocation3], 4294967264 }
0x154c   :  { %7064 = vsyncpa [#allocation3], 1 }

</bundles_post_ra>
